<compile_context>
chip_gen: v7x
topology: tpu7x:2x2x1
jax: 0.10.0
libtpu: 0.0.40
codegen_flags: <defaults>
</compile_context>

<pallas_src>
import functools

import jax
import jax.numpy as jnp
from jax import lax
from jax.experimental import pallas as pl
from jax.experimental.pallas import tpu as pltpu

_B = 8            # images per grid step (batch block)
_LANES = 128      # channel lanes (10/20/50/10 real, zero padded)


# ------------------------------ Pallas kernels ------------------------------ #

def _conv1_pool_relu(p_ref, w1_ref, b1_ref):
    """conv1 (5x5, 1->10) + 2x2 max-pool + ReLU for a block of B images.

    p_ref : (B, 576, 32)  im2col patches; row = q*144 + ph*12 + pw with
            q = dh*2+dw the pool-quadrant, lane t = kh*5+kw (taps 25..31 zero).
    w1_ref: (32, 128)     w1[t, o] = conv1_w[o, 0, kh, kw]   (zero padded)
    b1_ref: (1, 128)
    Returns (B, 144, 128): pooled+ReLU value at row ph*12+pw, channel in lane o.
    """
    B = p_ref.shape[0]
    p = p_ref[...].reshape(B * 576, 32)
    c = jnp.dot(p, w1_ref[...], preferred_element_type=jnp.float32)  # (B*576,128)
    c = c.reshape(B, 4, 144, _LANES)
    # 2x2 / stride-2 max pool == elementwise max over the 4 quadrant slabs.
    m = jnp.maximum(jnp.maximum(c[:, 0], c[:, 1]),
                    jnp.maximum(c[:, 2], c[:, 3]))
    # bias after pool (per-channel constant commutes with max), then ReLU.
    return jnp.maximum(m + b1_ref[...], 0.0)                          # (B,144,128)


def _feature_kernel(p_ref, w1_ref, b1_ref, o_ref):
    """is_test=False path: relu(maxpool2(conv1(x))) as a lane-dense tile."""
    o_ref[...] = _conv1_pool_relu(p_ref, w1_ref, b1_ref)


def _logits_kernel(p_ref, w1_ref, b1_ref, w2_ref, b2_ref,
                   wfc1_ref, bfc1_ref, wfc2_ref, bfc2_ref, o_ref):
    """is_test=True path: full forward -> masked log_softmax, (B, 128) output."""
    B = p_ref.shape[0]
    R = B * 144

    m1 = _conv1_pool_relu(p_ref, w1_ref, b1_ref)          # (B,144,128) f32
    # Flatten batch into rows (per-image stride 144); pad 56 zero rows so the
    # tap shifts (<= 4*12+4 = 52) never slice out of bounds.  Rows that would
    # bleed across image boundaries are only read for conv2 output positions
    # (oh or ow > 7) that are never consumed downstream.
    m1 = m1.reshape(R, _LANES)
    m1 = jnp.concatenate([m1, jnp.zeros((56, _LANES), jnp.float32)], axis=0)
    m1 = m1.astype(jnp.bfloat16)                          # (R+56, 128)

    # conv2 (5x5, 10->20): kw taps folded into the contraction dim (K = 640),
    # one bf16 MXU dot per kh, 5 accumulations.  acc2 row g = b*144 + oh*12+ow.
    acc2 = None
    for kh in range(5):
        views = [m1[kh * 12 + kw: kh * 12 + kw + R, :] for kw in range(5)]
        lhs = jnp.concatenate(views, axis=-1)             # (R, 640) bf16
        part = jnp.dot(lhs, w2_ref[kh * 640:(kh + 1) * 640, :],
                       preferred_element_type=jnp.float32)
        acc2 = part if acc2 is None else acc2 + part      # (R, 128) f32
    # TODO(synk): nn.Dropout2d after conv2 is eval-mode identity (no RNG dropout).

    # pool2 (2x2/stride2 on the 8x8 conv2 grid) + bias + ReLU.
    m2 = jnp.maximum(jnp.maximum(acc2[0:R - 13, :], acc2[1:R - 12, :]),
                     jnp.maximum(acc2[12:R - 1, :], acc2[13:R, :]))
    m2 = jnp.maximum(m2 + b2_ref[...], 0.0)               # (R-13, 128), 20 real lanes

    # Flatten: PyTorch's NCHW .view(-1, 320) order is folded into wfc1's layout.
    # Feature block p = oh2*4 + ow2 (128 lanes each) <- row b*144 + 24*oh2 + 2*ow2.
    flats = []
    for b in range(B):
        rows = []
        for oh2 in range(4):
            for ow2 in range(4):
                r = b * 144 + 24 * oh2 + 2 * ow2
                rows.append(m2[r:r + 1, :])               # (1, 128)
        flats.append(jnp.concatenate(rows, axis=-1))      # (1, 2048)
    flat = jnp.concatenate(flats, axis=0).astype(jnp.bfloat16)   # (B, 2048)

    h = jnp.dot(flat, wfc1_ref[...], preferred_element_type=jnp.float32)
    h = jnp.maximum(h + bfc1_ref[...], 0.0)               # fc1 + ReLU, (B, 128)
    # TODO(synk): F.dropout after fc1 is eval-mode identity (no RNG dropout).
    logits = jnp.dot(h, wfc2_ref[...],
                     preferred_element_type=jnp.float32) + bfc2_ref[...]

    # log_softmax over the 10 real classes (padding lanes masked out).
    lane = lax.broadcasted_iota(jnp.int32, (1, _LANES), 1)
    z = jnp.where(lane < 10, logits, jnp.full_like(logits, -1e30))
    z = z - jnp.max(z, axis=-1, keepdims=True)
    z = z - jnp.log(jnp.sum(jnp.exp(z), axis=-1, keepdims=True))
    o_ref[...] = z


# --------------------------- parameter preparation --------------------------- #

def init_params(key):
    """Deterministic parameter init (uniform(-1/sqrt(fan_in), 1/sqrt(fan_in)))."""
    def uni(k, shape, fan_in):
        bound = 1.0 / jnp.sqrt(float(fan_in))
        return jax.random.uniform(k, shape, jnp.float32, -bound, bound)

    ks = jax.random.split(key, 8)
    return {
        "conv1_w": uni(ks[0], (10, 1, 5, 5), 25),
        "conv1_b": uni(ks[1], (10,), 25),
        "conv2_w": uni(ks[2], (20, 10, 5, 5), 250),
        "conv2_b": uni(ks[3], (20,), 250),
        "fc1_w":   uni(ks[4], (50, 320), 320),
        "fc1_b":   uni(ks[5], (50,), 320),
        "fc2_w":   uni(ks[6], (10, 50), 50),
        "fc2_b":   uni(ks[7], (10,), 50),
    }


def prepare_params(params):
    """One-time re-layout of PyTorch-style weights into lane-dense kernel layouts."""
    f32 = jnp.float32
    # conv1: w1[t, o] = conv1_w[o, 0, kh, kw], t = kh*5+kw, padded to (32,128).
    w1 = jnp.zeros((32, _LANES), f32).at[:25, :10].set(
        params["conv1_w"].astype(f32).reshape(10, 25).T)
    b1 = jnp.zeros((1, _LANES), f32).at[0, :10].set(params["conv1_b"].astype(f32))

    # conv2: w2[kh*640 + kw*128 + ci, co] = conv2_w[co, ci, kh, kw]  (bf16).
    w2core = params["conv2_w"].astype(f32).transpose(2, 3, 1, 0)      # (kh,kw,ci,co)
    w2 = jnp.zeros((5, 5, _LANES, _LANES), f32).at[:, :, :10, :20].set(w2core)
    w2 = w2.reshape(25 * _LANES, _LANES).astype(jnp.bfloat16)
    b2 = jnp.zeros((1, _LANES), f32).at[0, :20].set(params["conv2_b"].astype(f32))

    # fc1: wfc1[p*128 + c, j] = fc1_w[j, c*16 + p]  (bf16), p = oh2*4 + ow2.
    fw = params["fc1_w"].astype(f32).reshape(50, 20, 16).transpose(2, 1, 0)  # (p,c,j)
    wfc1 = jnp.zeros((16, _LANES, _LANES), f32).at[:, :20, :50].set(fw)
    wfc1 = wfc1.reshape(16 * _LANES, _LANES).astype(jnp.bfloat16)
    bfc1 = jnp.zeros((1, _LANES), f32).at[0, :50].set(params["fc1_b"].astype(f32))

    wfc2 = jnp.zeros((_LANES, _LANES), f32).at[:50, :10].set(
        params["fc2_w"].astype(f32).T)
    bfc2 = jnp.zeros((1, _LANES), f32).at[0, :10].set(params["fc2_b"].astype(f32))

    return {"w1": w1, "b1": b1, "w2": w2, "b2": b2,
            "wfc1": wfc1, "bfc1": bfc1, "wfc2": wfc2, "bfc2": bfc2}


# ------------------------------ forward wrapper ------------------------------ #

def _bcast_spec(shape):
    zeros = (0,) * len(shape)
    return pl.BlockSpec(shape, lambda n: zeros)


_COMPILER_PARAMS = pltpu.CompilerParams(
    dimension_semantics=("parallel",),           # batch-block grid -> both v7x TCs
    vmem_limit_bytes=32 * 1024 * 1024,
)


def _im2col_quadrants(x, n_pad):
    """(N,1,28,28) -> (Npad, 576, 32) pool-quadrant-major im2col patches."""
    N = x.shape[0]
    img = x.astype(jnp.float32).reshape(N, 28, 28)
    cols = [img[:, kh:kh + 24, kw:kw + 24] for kh in range(5) for kw in range(5)]
    stk = jnp.stack(cols, axis=-1)                        # (N, 24, 24, 25)
    # split (i,j) = (2*ph+dh, 2*pw+dw) and make (dh,dw) the leading row blocks.
    stk = stk.reshape(N, 12, 2, 12, 2, 25).transpose(0, 2, 4, 1, 3, 5)
    patches = stk.reshape(N, 576, 25)
    return jnp.pad(patches, ((0, n_pad - N), (0, 0), (0, 7)))   # taps 25 -> 32


@functools.partial(jax.jit, static_argnames=("is_test",))
def demo_net_forward(prep, x, is_test=False):
    """DemoNet.forward for the default teacher model (is_teacher=True)."""
    N = x.shape[0]
    G = (N + _B - 1) // _B
    Npad = G * _B
    patches = _im2col_quadrants(x, Npad)                  # (Npad, 576, 32) f32

    if not is_test:
        out = pl.pallas_call(
            _feature_kernel,
            out_shape=jax.ShapeDtypeStruct((Npad, 144, _LANES), jnp.float32),
            grid=(G,),
            in_specs=[
                pl.BlockSpec((_B, 576, 32), lambda n: (n, 0, 0)),
                _bcast_spec((32, _LANES)),
                _bcast_spec((1, _LANES)),
            ],
            out_specs=pl.BlockSpec((_B, 144, _LANES), lambda n: (n, 0, 0)),
            compiler_params=_COMPILER_PARAMS,
        )(patches, prep["w1"], prep["b1"])
        # lane-dense kernel output -> NCHW (N, 10, 12, 12)   (layout plumbing only)
        return out[:N, :, :10].reshape(N, 12, 12, 10).transpose(0, 3, 1, 2)

    out = pl.pallas_call(
        _logits_kernel,
        out_shape=jax.ShapeDtypeStruct((Npad, _LANES), jnp.float32),
        grid=(G,),
        in_specs=[
            pl.BlockSpec((_B, 576, 32), lambda n: (n, 0, 0)),
            _bcast_spec((32, _LANES)),
            _bcast_spec((1, _LANES)),
            _bcast_spec((25 * _LANES, _LANES)),
            _bcast_spec((1, _LANES)),
            _bcast_spec((16 * _LANES, _LANES)),
            _bcast_spec((1, _LANES)),
            _bcast_spec((_LANES, _LANES)),
            _bcast_spec((1, _LANES)),
        ],
        out_specs=pl.BlockSpec((_B, _LANES), lambda n: (n, 0)),
        compiler_params=_COMPILER_PARAMS,
    )(patches, prep["w1"], prep["b1"], prep["w2"], prep["b2"],
      prep["wfc1"], prep["bfc1"], prep["wfc2"], prep["bfc2"])
    return out[:N, :10]


# ------------------------------ pure-JAX reference --------------------------- #

def _reference_forward(params, x, is_test=False):
    hp = lax.Precision.HIGHEST

    def conv(v, w, b):
        y = lax.conv_general_dilated(v, w, (1, 1), "VALID",
                                     dimension_numbers=("NCHW", "OIHW", "NCHW"),
                                     precision=hp)
        return y + b.reshape(1, -1, 1, 1)

    def pool_relu(v):
        y = lax.reduce_window(v, -jnp.inf, lax.max, (1, 1, 2, 2), (1, 1, 2, 2),
                              "VALID")
        return jnp.maximum(y, 0.0)

    h = pool_relu(conv(x, params["conv1_w"], params["conv1_b"]))
    if not is_test:
        return h
    h = pool_relu(conv(h, params["conv2_w"], params["conv2_b"]))
    h = h.reshape(h.shape[0], -1)                                  # (N, 320)
    h = jnp.maximum(jnp.dot(h, params["fc1_w"].T, precision=hp)
                    + params["fc1_b"], 0.0)
    logits = jnp.dot(h, params["fc2_w"].T, precision=hp) + params["fc2_b"]
    return jax.nn.log_softmax(logits, axis=-1)


# ---------------------------------- main ------------------------------------- #

if __name__ == "__main__":
    key = jax.random.PRNGKey(0)
    pkey, xkey = jax.random.split(key)
    params = init_params(pkey)
    prep = prepare_params(params)

    # MNIST-like input: (batch=2, channels=1, 28, 28) — required so that the
    # flatten after conv2+pool yields exactly 320 features.
    x = jax.random.normal(xkey, (2, 1, 28, 28), jnp.float32)

    # Early-return path (teacher, is_test=False): (2, 10, 12, 12)
    feat = jax.block_until_ready(demo_net_forward(prep, x, is_test=False))
    assert feat.shape == (2, 10, 12, 12)

    # Full path (is_test=True): log-probabilities (2, 10)
    logp = jax.block_until_ready(demo_net_forward(prep, x, is_test=True))
    assert logp.shape == (2, 10)

    # Numerical check vs. a pure-JAX reference of the PyTorch forward.
    ref_feat = _reference_forward(params, x, is_test=False)
    ref_logp = _reference_forward(params, x, is_test=True)
    assert float(jnp.max(jnp.abs(feat - ref_feat))) < 2e-2
    assert float(jnp.max(jnp.abs(logp - ref_logp))) < 2e-2
    assert bool(jnp.all(jnp.abs(jnp.sum(jnp.exp(logp), axis=-1) - 1.0) < 1e-4))

    print("KERNEL_OK")
</pallas_src>

<mosaic_0001>
module attributes {stable_mosaic.version = 11 : i64} {
  func.func @_feature_kernel(%arg0: i32, %arg1: memref<8x576x32xf32, #tpu.memory_space<vmem>>, %arg2: memref<32x128xf32, #tpu.memory_space<vmem>>, %arg3: memref<1x128xf32, #tpu.memory_space<vmem>>, %arg4: memref<8x144x128xf32, #tpu.memory_space<vmem>>) attributes {dimension_semantics = [#tpu.dimension_semantics<parallel>], iteration_bounds = array<i64: 1>, scalar_prefetch = 0 : i64, scratch_operands = 0 : i64, tpu.core_type = #tpu.core_type<tc>, window_params = [{transform_indices = @transform_0, window_bounds = array<i64: 8, 576, 32>}, {pipeline_mode = #tpu.pipeline_mode<synchronous>, transform_indices = @transform_1, window_bounds = array<i64: 32, 128>}, {pipeline_mode = #tpu.pipeline_mode<synchronous>, transform_indices = @transform_2, window_bounds = array<i64: 1, 128>}, {transform_indices = @transform_3, window_bounds = array<i64: 8, 144, 128>}]} {
    %c0 = arith.constant 0 : index
    %c0_0 = arith.constant 0 : index
    %c0_1 = arith.constant 0 : index
    %0 = vector.load %arg1[%c0, %c0_0, %c0_1] : memref<8x576x32xf32, #tpu.memory_space<vmem>>, vector<8x576x32xf32>
    %1 = vector.shape_cast %0 : vector<8x576x32xf32> to vector<4608x32xf32>
    %c0_2 = arith.constant 0 : index
    %c0_3 = arith.constant 0 : index
    %2 = vector.load %arg2[%c0_2, %c0_3] : memref<32x128xf32, #tpu.memory_space<vmem>>, vector<32x128xf32>
    %cst = arith.constant dense<0.000000e+00> : vector<4608x128xf32>
    %3 = tpu.matmul %1, %2, %cst {dimension_numbers = #tpu.dot_dimension_numbers<[1], [0], [0], [1], [0, 0, 1, 1], [], []>} : vector<4608x32xf32>, vector<32x128xf32>, vector<4608x128xf32> -> vector<4608x128xf32>
    %4 = vector.shape_cast %3 : vector<4608x128xf32> to vector<8x4x144x128xf32>
    %5 = vector.extract_strided_slice %4 {offsets = [0, 0, 0, 0], sizes = [8, 1, 144, 128], strides = [1, 1, 1, 1]} : vector<8x4x144x128xf32> to vector<8x1x144x128xf32>
    %6 = vector.shape_cast %5 : vector<8x1x144x128xf32> to vector<8x144x128xf32>
    %7 = vector.extract_strided_slice %4 {offsets = [0, 1, 0, 0], sizes = [8, 1, 144, 128], strides = [1, 1, 1, 1]} : vector<8x4x144x128xf32> to vector<8x1x144x128xf32>
    %8 = vector.shape_cast %7 : vector<8x1x144x128xf32> to vector<8x144x128xf32>
    %9 = arith.maximumf %6, %8 : vector<8x144x128xf32>
    %10 = vector.extract_strided_slice %4 {offsets = [0, 2, 0, 0], sizes = [8, 1, 144, 128], strides = [1, 1, 1, 1]} : vector<8x4x144x128xf32> to vector<8x1x144x128xf32>
    %11 = vector.shape_cast %10 : vector<8x1x144x128xf32> to vector<8x144x128xf32>
    %12 = vector.extract_strided_slice %4 {offsets = [0, 3, 0, 0], sizes = [8, 1, 144, 128], strides = [1, 1, 1, 1]} : vector<8x4x144x128xf32> to vector<8x1x144x128xf32>
    %13 = vector.shape_cast %12 : vector<8x1x144x128xf32> to vector<8x144x128xf32>
    %14 = arith.maximumf %11, %13 : vector<8x144x128xf32>
    %15 = arith.maximumf %9, %14 : vector<8x144x128xf32>
    %c0_4 = arith.constant 0 : index
    %c0_5 = arith.constant 0 : index
    %16 = vector.load %arg3[%c0_4, %c0_5] : memref<1x128xf32, #tpu.memory_space<vmem>>, vector<1x128xf32>
    %17 = vector.shape_cast %16 : vector<1x128xf32> to vector<1x1x128xf32>
    %18 = vector.broadcast %17 : vector<1x1x128xf32> to vector<8x144x128xf32>
    %19 = arith.addf %15, %18 : vector<8x144x128xf32>
    %cst_6 = arith.constant 0.000000e+00 : f32
    %20 = vector.broadcast %cst_6 : f32 to vector<8x144x128xf32>
    %21 = arith.maximumf %19, %20 : vector<8x144x128xf32>
    %c0_7 = arith.constant 0 : index
    %c0_8 = arith.constant 0 : index
    %c0_9 = arith.constant 0 : index
    %22 = vector.load %arg4[%c0_7, %c0_8, %c0_9] : memref<8x144x128xf32, #tpu.memory_space<vmem>>, vector<8x144x128xf32>
    tpu.vector_store %arg4[%c0_7, %c0_8, %c0_9], %21 {strides = array<i32>} : memref<8x144x128xf32, #tpu.memory_space<vmem>>, vector<8x144x128xf32>,
    return
  }
  func.func @transform_0(%arg0: i32) -> (i32, i32, i32) {
    %c0_i32 = arith.constant 0 : i32
    %c0_i32_0 = arith.constant 0 : i32
    %c0_i32_1 = arith.constant 0 : i32
    return %arg0, %c0_i32, %c0_i32_0 : i32, i32, i32
  }
  func.func @transform_1(%arg0: i32) -> (i32, i32) {
    %c0_i32 = arith.constant 0 : i32
    %c0_i32_0 = arith.constant 0 : i32
    %c0_i32_1 = arith.constant 0 : i32
    return %c0_i32, %c0_i32_0 : i32, i32
  }
  func.func @transform_2(%arg0: i32) -> (i32, i32) {
    %c0_i32 = arith.constant 0 : i32
    %c0_i32_0 = arith.constant 0 : i32
    %c0_i32_1 = arith.constant 0 : i32
    return %c0_i32, %c0_i32_0 : i32, i32
  }
  func.func @transform_3(%arg0: i32) -> (i32, i32, i32) {
    %c0_i32 = arith.constant 0 : i32
    %c0_i32_0 = arith.constant 0 : i32
    %c0_i32_1 = arith.constant 0 : i32
    return %arg0, %c0_i32, %c0_i32_0 : i32, i32, i32
  }
}

</mosaic_0001>

<bundles_post_ra>
// kernel: demo_net_forward.1
= control target key start
LH: loop header
LB: loop body
LE: loop exit
PB: predicated region body
PF: predicated region fallthrough
CT: control target
= control target key end

     0   :  { %vm594_vm0 = vcmask 261120   ;;  %s12794_s1 = inlined_call_operand.vmem [shape: f32[32,128], index: 1, kind: input, shape index: {}]   ;;  %s12795_s0 = inlined_call_operand.vmem [shape: f32[8,576,32], index: 0, kind: input, shape index: {}]   ;;  %s12796_s2 = inlined_call_operand.vmem [shape: f32[1,128], index: 2, kind: input, shape index: {}]   ;;  %s12797_s3 = inlined_call_operand.vmem [shape: f32[8,144,128], index: 3, kind: output, shape index: {}]  }
   0x1   :  { %v590_v0 = vld [vmem:[%s12794_s1] sm:$0xff]  ;;  %v591_v1 = vld [vmem:[%s12794_s1 + $0x8] sm:$0xff]  ;;  %v592_v2 = vld [vmem:[%s12794_s1 + $0x10] sm:$0xff] }
   0x2   :  { %v8172_v3 = vpack.c.bf16 %v591_v1, %v590_v0  ;;  %v593_v4 = vld [vmem:[%s12794_s1 + $0x18] sm:$0xff]  ;;  %v14_v5 = vld [vmem:[%s12795_s0] sm:$0xff]  ;;  %v15_v8 = vld [vmem:[%s12795_s0 + $0x8] sm:$0xff] }
   0x3   :  { %v302_v6 = vld [vmem:[%s12795_s0 + $0x900] sm:$0xff]  ;;  %v8176_v7 = vpack.c.bf16 %v593_v4, %v592_v2  ;;  %7308 = vmatprep.mubr.msk.f32.mxu0 %vm594_vm0, %v14_v5  ;;  %v303_v9 = vld [vmem:[%s12795_s0 + $0x908] sm:$0xff]  ;;  %v16_v10 = vld [vmem:[%s12795_s0 + $0x10] sm:$0xff] }
   0x4   :  { %7740 = vmatprep.mubr.msk.f32.mxu1 %vm594_vm0, %v302_v6  ;;  %8173 = vmatprep.subr.bf16.mxu0 %v8172_v3  ;;  %v304_v11 = vld [vmem:[%s12795_s0 + $0x910] sm:$0xff]  ;;  %v17_v12 = vld [vmem:[%s12795_s0 + $0x18] sm:$0xff]  ;;  %v18_v14 = vld [vmem:[%s12795_s0 + $0x20] sm:$0xff] }
   0x5   :  { %8180 = vmatprep.subr.bf16.mxu1 %v8172_v3  ;;  %8175 = vmatpush3.bf16.msra.mxu0 %v8172_v3  ;;  %v305_v13 = vld [vmem:[%s12795_s0 + $0x918] sm:$0xff]  ;;  %v306_v15 = vld [vmem:[%s12795_s0 + $0x920] sm:$0xff]  ;;  %v19_v16 = vld [vmem:[%s12795_s0 + $0x28] sm:$0xff] }
   0x6   :  { %8182 = vmatpush3.bf16.msra.mxu1 %v8172_v3  ;;  %8177 = vmatprep.subr.bf16.mxu0 %v8176_v7  ;;  %v307_v17 = vld [vmem:[%s12795_s0 + $0x928] sm:$0xff]  ;;  %v20_v18 = vld [vmem:[%s12795_s0 + $0x30] sm:$0xff]  ;;  %v21_v20 = vld [vmem:[%s12795_s0 + $0x38] sm:$0xff] }
   0x7   :  { %8181 = vmatprep.subr.bf16.mxu1 %v8176_v7  ;;  %v308_v19 = vld [vmem:[%s12795_s0 + $0x930] sm:$0xff]  ;;  %v309_v21 = vld [vmem:[%s12795_s0 + $0x938] sm:$0xff]  ;;  %v22_v22 = vld [vmem:[%s12795_s0 + $0x40] sm:$0xff] }
   0x8   :  { %v310_v23 = vld [vmem:[%s12795_s0 + $0x940] sm:$0xff]  ;;  %v23_v24 = vld [vmem:[%s12795_s0 + $0x48] sm:$0xff]  ;;  %v24_v26 = vld [vmem:[%s12795_s0 + $0x50] sm:$0xff] }
   0x9   :  { %8179 = vmatpush3.bf16.msra.mxu0 %v8176_v7  ;;  %v311_v25 = vld [vmem:[%s12795_s0 + $0x948] sm:$0xff]  ;;  %v312_v27 = vld [vmem:[%s12795_s0 + $0x950] sm:$0xff]  ;;  %v25_v28 = vld [vmem:[%s12795_s0 + $0x58] sm:$0xff] }
   0xa   :  { %8183 = vmatpush3.bf16.msra.mxu1 %v8176_v7  ;;  %v313_v29 = vld [vmem:[%s12795_s0 + $0x958] sm:$0xff]  ;;  %v26_v30 = vld [vmem:[%s12795_s0 + $0x60] sm:$0xff]  ;;  %v27_v32 = vld [vmem:[%s12795_s0 + $0x68] sm:$0xff] }
   0xb   :  { %v314_v31 = vld [vmem:[%s12795_s0 + $0x960] sm:$0xff]  ;;  %v315_v33 = vld [vmem:[%s12795_s0 + $0x968] sm:$0xff]  ;;  %v28_v34 = vld [vmem:[%s12795_s0 + $0x70] sm:$0xff] }
   0xc   :  { %7309 = vmatmul.mubr.msk.f32.vlgmr.msra.gmra.mrb[0].mxu0 %vm594_vm0, %v15_v8  ;;  %v316_v35 = vld [vmem:[%s12795_s0 + $0x970] sm:$0xff]  ;;  %v29_v36 = vld [vmem:[%s12795_s0 + $0x78] sm:$0xff]  ;;  %v30_v38 = vld [vmem:[%s12795_s0 + $0x80] sm:$0xff] }
   0xd   :  { %7741 = vmatmul.mubr.msk.f32.vlgmr.msra.gmra.mrb[0].mxu1 %vm594_vm0, %v303_v9  ;;  %7311 = vmatprep.mubr.msk.f32.mxu0 %vm594_vm0, %v16_v10  ;;  %v317_v37 = vld [vmem:[%s12795_s0 + $0x978] sm:$0xff]  ;;  %v318_v39 = vld [vmem:[%s12795_s0 + $0x980] sm:$0xff]  ;;  %v31_v40 = vld [vmem:[%s12795_s0 + $0x88] sm:$0xff] }
   0xe   :  { %7743 = vmatprep.mubr.msk.f32.mxu1 %vm594_vm0, %v304_v11  ;;  %v319_v41 = vld [vmem:[%s12795_s0 + $0x988] sm:$0xff]  ;;  %v32_v42 = vld [vmem:[%s12795_s0 + $0x90] sm:$0xff]  ;;  %v33_v44 = vld [vmem:[%s12795_s0 + $0x98] sm:$0xff] }
   0xf   :  { %v320_v43 = vld [vmem:[%s12795_s0 + $0x990] sm:$0xff]  ;;  %v321_v45 = vld [vmem:[%s12795_s0 + $0x998] sm:$0xff]  ;;  %v34_v46 = vld [vmem:[%s12795_s0 + $0xa0] sm:$0xff] }
  0x10   :  { %7312 = vmatmul.mubr.msk.f32.gmra.mrb[2].mxu0 %vm594_vm0, %v17_v12  ;;  %v322_v47 = vld [vmem:[%s12795_s0 + $0x9a0] sm:$0xff]  ;;  %v35_v48 = vld [vmem:[%s12795_s0 + $0xa8] sm:$0xff]  ;;  %v36_v50 = vld [vmem:[%s12795_s0 + $0xb0] sm:$0xff] }
  0x11   :  { %7744 = vmatmul.mubr.msk.f32.gmra.mrb[2].mxu1 %vm594_vm0, %v305_v13  ;;  %7314 = vmatprep.mubr.msk.f32.mxu0 %vm594_vm0, %v18_v14  ;;  %v323_v49 = vld [vmem:[%s12795_s0 + $0x9a8] sm:$0xff]  ;;  %v324_v51 = vld [vmem:[%s12795_s0 + $0x9b0] sm:$0xff]  ;;  %v37_v52 = vld [vmem:[%s12795_s0 + $0xb8] sm:$0xff] }
  0x12   :  { %7746 = vmatprep.mubr.msk.f32.mxu1 %vm594_vm0, %v306_v15  ;;  %v325_v53 = vld [vmem:[%s12795_s0 + $0x9b8] sm:$0xff]  ;;  %v38_v54 = vld [vmem:[%s12795_s0 + $0xc0] sm:$0xff]  ;;  %v39_v56 = vld [vmem:[%s12795_s0 + $0xc8] sm:$0xff] }
  0x13   :  { %v326_v55 = vld [vmem:[%s12795_s0 + $0x9c0] sm:$0xff]  ;;  %v327_v57 = vld [vmem:[%s12795_s0 + $0x9c8] sm:$0xff]  ;;  %v40_v58 = vld [vmem:[%s12795_s0 + $0xd0] sm:$0xff] }
  0x14   :  { %7315 = vmatmul.mubr.msk.f32.gmra.mrb[4].mxu0 %vm594_vm0, %v19_v16  ;;  %v328_v59 = vld [vmem:[%s12795_s0 + $0x9d0] sm:$0xff]  ;;  %v41_v60 = vld [vmem:[%s12795_s0 + $0xd8] sm:$0xff]  ;;  %v42_v62 = vld [vmem:[%s12795_s0 + $0xe0] sm:$0xff] }
  0x15   :  { %7747 = vmatmul.mubr.msk.f32.gmra.mrb[4].mxu1 %vm594_vm0, %v307_v17  ;;  %7317 = vmatprep.mubr.msk.f32.mxu0 %vm594_vm0, %v20_v18  ;;  %v329_v61 = vld [vmem:[%s12795_s0 + $0x9d8] sm:$0xff]  ;;  %v330_v63 = vld [vmem:[%s12795_s0 + $0x9e0] sm:$0xff]  ;;  %v43_v0 = vld [vmem:[%s12795_s0 + $0xe8] sm:$0xff] }
  0x16   :  { %7749 = vmatprep.mubr.msk.f32.mxu1 %vm594_vm0, %v308_v19  ;;  %v331_v1 = vld [vmem:[%s12795_s0 + $0x9e8] sm:$0xff]  ;;  %v44_v2 = vld [vmem:[%s12795_s0 + $0xf0] sm:$0xff]  ;;  %v45_v4 = vld [vmem:[%s12795_s0 + $0xf8] sm:$0xff] }
  0x17   :  { %v332_v3 = vld [vmem:[%s12795_s0 + $0x9f0] sm:$0xff]  ;;  %v333_v5 = vld [vmem:[%s12795_s0 + $0x9f8] sm:$0xff]  ;;  %v46_v6 = vld [vmem:[%s12795_s0 + $0x100] sm:$0xff] }
  0x18   :  { %7318 = vmatmul.mubr.msk.f32.gmra.mrb[6].mxu0 %vm594_vm0, %v21_v20  ;;  %v334_v7 = vld [vmem:[%s12795_s0 + $0xa00] sm:$0xff]  ;;  %v47_v8 = vld [vmem:[%s12795_s0 + $0x108] sm:$0xff]  ;;  %v48_v10 = vld [vmem:[%s12795_s0 + $0x110] sm:$0xff] }
  0x19   :  { %7750 = vmatmul.mubr.msk.f32.gmra.mrb[6].mxu1 %vm594_vm0, %v309_v21  ;;  %7320 = vmatprep.mubr.msk.f32.mxu0 %vm594_vm0, %v22_v22  ;;  %v335_v9 = vld [vmem:[%s12795_s0 + $0xa08] sm:$0xff]  ;;  %v336_v11 = vld [vmem:[%s12795_s0 + $0xa10] sm:$0xff]  ;;  %v49_v12 = vld [vmem:[%s12795_s0 + $0x118] sm:$0xff] }
  0x1a   :  { %7752 = vmatprep.mubr.msk.f32.mxu1 %vm594_vm0, %v310_v23  ;;  %v337_v13 = vld [vmem:[%s12795_s0 + $0xa18] sm:$0xff]  ;;  %v50_v14 = vld [vmem:[%s12795_s0 + $0x120] sm:$0xff]  ;;  %v51_v16 = vld [vmem:[%s12795_s0 + $0x128] sm:$0xff] }
  0x1b   :  { %v338_v15 = vld [vmem:[%s12795_s0 + $0xa20] sm:$0xff]  ;;  %v339_v17 = vld [vmem:[%s12795_s0 + $0xa28] sm:$0xff]  ;;  %v52_v18 = vld [vmem:[%s12795_s0 + $0x130] sm:$0xff] }
  0x1c   :  { %7321 = vmatmul.mubr.msk.f32.gmra.mrb[8].mxu0 %vm594_vm0, %v23_v24  ;;  %v340_v19 = vld [vmem:[%s12795_s0 + $0xa30] sm:$0xff]  ;;  %v53_v20 = vld [vmem:[%s12795_s0 + $0x138] sm:$0xff]  ;;  %v54_v22 = vld [vmem:[%s12795_s0 + $0x140] sm:$0xff] }
  0x1d   :  { %7753 = vmatmul.mubr.msk.f32.gmra.mrb[8].mxu1 %vm594_vm0, %v311_v25  ;;  %7323 = vmatprep.mubr.msk.f32.mxu0 %vm594_vm0, %v24_v26  ;;  %v341_v21 = vld [vmem:[%s12795_s0 + $0xa38] sm:$0xff]  ;;  %v342_v23 = vld [vmem:[%s12795_s0 + $0xa40] sm:$0xff]  ;;  %v55_v24 = vld [vmem:[%s12795_s0 + $0x148] sm:$0xff] }
  0x1e   :  { %7755 = vmatprep.mubr.msk.f32.mxu1 %vm594_vm0, %v312_v27  ;;  %v343_v25 = vld [vmem:[%s12795_s0 + $0xa48] sm:$0xff]  ;;  %v56_v26 = vld [vmem:[%s12795_s0 + $0x150] sm:$0xff] }
  0x1f   :  { %v344_v27 = vld [vmem:[%s12795_s0 + $0xa50] sm:$0xff] }
  0x20   :  { %7324 = vmatmul.mubr.msk.f32.gmra.mrb[10].mxu0 %vm594_vm0, %v25_v28  ;;  %v57_v28 = vld [vmem:[%s12795_s0 + $0x158] sm:$0xff] }
  0x21   :  { %7756 = vmatmul.mubr.msk.f32.gmra.mrb[10].mxu1 %vm594_vm0, %v313_v29  ;;  %7326 = vmatprep.mubr.msk.f32.mxu0 %vm594_vm0, %v26_v30  ;;  %v345_v29 = vld [vmem:[%s12795_s0 + $0xa58] sm:$0xff]  ;;  %v58_v30 = vld [vmem:[%s12795_s0 + $0x160] sm:$0xff] }
  0x22   :  { %7758 = vmatprep.mubr.msk.f32.mxu1 %vm594_vm0, %v314_v31  ;;  %v346_v31 = vld [vmem:[%s12795_s0 + $0xa60] sm:$0xff] }
  0x24   :  { %7327 = vmatmul.mubr.msk.f32.gmra.mrb[12].mxu0 %vm594_vm0, %v27_v32  ;;  %v59_v32 = vld [vmem:[%s12795_s0 + $0x168] sm:$0xff] }
  0x25   :  { %7759 = vmatmul.mubr.msk.f32.gmra.mrb[12].mxu1 %vm594_vm0, %v315_v33  ;;  %7329 = vmatprep.mubr.msk.f32.mxu0 %vm594_vm0, %v28_v34  ;;  %v347_v33 = vld [vmem:[%s12795_s0 + $0xa68] sm:$0xff]  ;;  %v60_v34 = vld [vmem:[%s12795_s0 + $0x170] sm:$0xff] }
  0x26   :  { %7761 = vmatprep.mubr.msk.f32.mxu1 %vm594_vm0, %v316_v35  ;;  %v348_v35 = vld [vmem:[%s12795_s0 + $0xa70] sm:$0xff] }
  0x28   :  { %7330 = vmatmul.mubr.msk.f32.gmra.mrb[14].mxu0 %vm594_vm0, %v29_v36  ;;  %v61_v36 = vld [vmem:[%s12795_s0 + $0x178] sm:$0xff] }
  0x29   :  { %7762 = vmatmul.mubr.msk.f32.gmra.mrb[14].mxu1 %vm594_vm0, %v317_v37  ;;  %7332 = vmatprep.mubr.msk.f32.mxu0 %vm594_vm0, %v30_v38  ;;  %v349_v37 = vld [vmem:[%s12795_s0 + $0xa78] sm:$0xff]  ;;  %v62_v38 = vld [vmem:[%s12795_s0 + $0x180] sm:$0xff] }
  0x2a   :  { %7764 = vmatprep.mubr.msk.f32.mxu1 %vm594_vm0, %v318_v39  ;;  %v350_v39 = vld [vmem:[%s12795_s0 + $0xa80] sm:$0xff] }
  0x2c   :  { %7333 = vmatmul.mubr.msk.f32.gmra.mrb[16].mxu0 %vm594_vm0, %v31_v40  ;;  %v63_v40 = vld [vmem:[%s12795_s0 + $0x188] sm:$0xff] }
  0x2d   :  { %7765 = vmatmul.mubr.msk.f32.gmra.mrb[16].mxu1 %vm594_vm0, %v319_v41  ;;  %7335 = vmatprep.mubr.msk.f32.mxu0 %vm594_vm0, %v32_v42  ;;  %v351_v41 = vld [vmem:[%s12795_s0 + $0xa88] sm:$0xff]  ;;  %v64_v42 = vld [vmem:[%s12795_s0 + $0x190] sm:$0xff] }
  0x2e   :  { %7767 = vmatprep.mubr.msk.f32.mxu1 %vm594_vm0, %v320_v43  ;;  %v352_v43 = vld [vmem:[%s12795_s0 + $0xa90] sm:$0xff] }
  0x30   :  { %7336 = vmatmul.mubr.msk.f32.gmra.mrb[18].mxu0 %vm594_vm0, %v33_v44  ;;  %v65_v44 = vld [vmem:[%s12795_s0 + $0x198] sm:$0xff] }
  0x31   :  { %7768 = vmatmul.mubr.msk.f32.gmra.mrb[18].mxu1 %vm594_vm0, %v321_v45  ;;  %7338 = vmatprep.mubr.msk.f32.mxu0 %vm594_vm0, %v34_v46  ;;  %v353_v45 = vld [vmem:[%s12795_s0 + $0xa98] sm:$0xff]  ;;  %v66_v46 = vld [vmem:[%s12795_s0 + $0x1a0] sm:$0xff] }
  0x32   :  { %7770 = vmatprep.mubr.msk.f32.mxu1 %vm594_vm0, %v322_v47  ;;  %v354_v47 = vld [vmem:[%s12795_s0 + $0xaa0] sm:$0xff] }
  0x34   :  { %7339 = vmatmul.mubr.msk.f32.gmra.mrb[20].mxu0 %vm594_vm0, %v35_v48  ;;  %v67_v48 = vld [vmem:[%s12795_s0 + $0x1a8] sm:$0xff] }
  0x35   :  { %7771 = vmatmul.mubr.msk.f32.gmra.mrb[20].mxu1 %vm594_vm0, %v323_v49  ;;  %7341 = vmatprep.mubr.msk.f32.mxu0 %vm594_vm0, %v36_v50  ;;  %v355_v49 = vld [vmem:[%s12795_s0 + $0xaa8] sm:$0xff]  ;;  %v68_v50 = vld [vmem:[%s12795_s0 + $0x1b0] sm:$0xff] }
  0x36   :  { %7773 = vmatprep.mubr.msk.f32.mxu1 %vm594_vm0, %v324_v51  ;;  %v356_v51 = vld [vmem:[%s12795_s0 + $0xab0] sm:$0xff] }
  0x38   :  { %7342 = vmatmul.mubr.msk.f32.gmra.mrb[22].mxu0 %vm594_vm0, %v37_v52  ;;  %v69_v52 = vld [vmem:[%s12795_s0 + $0x1b8] sm:$0xff] }
  0x39   :  { %7774 = vmatmul.mubr.msk.f32.gmra.mrb[22].mxu1 %vm594_vm0, %v325_v53  ;;  %7344 = vmatprep.mubr.msk.f32.mxu0 %vm594_vm0, %v38_v54  ;;  %v357_v53 = vld [vmem:[%s12795_s0 + $0xab8] sm:$0xff]  ;;  %v70_v54 = vld [vmem:[%s12795_s0 + $0x1c0] sm:$0xff] }
  0x3a   :  { %7776 = vmatprep.mubr.msk.f32.mxu1 %vm594_vm0, %v326_v55  ;;  %v358_v55 = vld [vmem:[%s12795_s0 + $0xac0] sm:$0xff] }
  0x3c   :  { %7345 = vmatmul.mubr.msk.f32.gmra.mrb[24].mxu0 %vm594_vm0, %v39_v56  ;;  %v71_v56 = vld [vmem:[%s12795_s0 + $0x1c8] sm:$0xff] }
  0x3d   :  { %7777 = vmatmul.mubr.msk.f32.gmra.mrb[24].mxu1 %vm594_vm0, %v327_v57  ;;  %7347 = vmatprep.mubr.msk.f32.mxu0 %vm594_vm0, %v40_v58  ;;  %v359_v57 = vld [vmem:[%s12795_s0 + $0xac8] sm:$0xff]  ;;  %v72_v58 = vld [vmem:[%s12795_s0 + $0x1d0] sm:$0xff] }
  0x3e   :  { %7779 = vmatprep.mubr.msk.f32.mxu1 %vm594_vm0, %v328_v59  ;;  %v360_v59 = vld [vmem:[%s12795_s0 + $0xad0] sm:$0xff] }
  0x40   :  { %7348 = vmatmul.mubr.msk.f32.gmra.mrb[26].mxu0 %vm594_vm0, %v41_v60  ;;  %v73_v60 = vld [vmem:[%s12795_s0 + $0x1d8] sm:$0xff] }
  0x41   :  { %7780 = vmatmul.mubr.msk.f32.gmra.mrb[26].mxu1 %vm594_vm0, %v329_v61  ;;  %7350 = vmatprep.mubr.msk.f32.mxu0 %vm594_vm0, %v42_v62  ;;  %v361_v61 = vld [vmem:[%s12795_s0 + $0xad8] sm:$0xff]  ;;  %v74_v62 = vld [vmem:[%s12795_s0 + $0x1e0] sm:$0xff] }
  0x42   :  { %7782 = vmatprep.mubr.msk.f32.mxu1 %vm594_vm0, %v330_v63  ;;  %v362_v63 = vld [vmem:[%s12795_s0 + $0xae0] sm:$0xff] }
  0x44   :  { %7351 = vmatmul.mubr.msk.f32.gmra.mrb[28].mxu0 %vm594_vm0, %v43_v0  ;;  %v75_v0 = vld [vmem:[%s12795_s0 + $0x1e8] sm:$0xff] }
  0x45   :  { %7783 = vmatmul.mubr.msk.f32.gmra.mrb[28].mxu1 %vm594_vm0, %v331_v1  ;;  %7353 = vmatprep.mubr.msk.f32.mxu0 %vm594_vm0, %v44_v2  ;;  %v363_v1 = vld [vmem:[%s12795_s0 + $0xae8] sm:$0xff]  ;;  %v76_v2 = vld [vmem:[%s12795_s0 + $0x1f0] sm:$0xff] }
  0x46   :  { %7785 = vmatprep.mubr.msk.f32.mxu1 %vm594_vm0, %v332_v3  ;;  %v364_v3 = vld [vmem:[%s12795_s0 + $0xaf0] sm:$0xff] }
  0x48   :  { %7354 = vmatmul.mubr.msk.f32.gmra.mrb[30].mxu0 %vm594_vm0, %v45_v4  ;;  %v77_v4 = vld [vmem:[%s12795_s0 + $0x1f8] sm:$0xff] }
  0x49   :  { %7786 = vmatmul.mubr.msk.f32.gmra.mrb[30].mxu1 %vm594_vm0, %v333_v5  ;;  %7356 = vmatprep.mubr.msk.f32.mxu0 %vm594_vm0, %v46_v6  ;;  %v365_v5 = vld [vmem:[%s12795_s0 + $0xaf8] sm:$0xff]  ;;  %v78_v6 = vld [vmem:[%s12795_s0 + $0x200] sm:$0xff] }
  0x4a   :  { %7788 = vmatprep.mubr.msk.f32.mxu1 %vm594_vm0, %v334_v7  ;;  %v366_v7 = vld [vmem:[%s12795_s0 + $0xb00] sm:$0xff] }
  0x4c   :  { %7357 = vmatmul.mubr.msk.f32.gmra.mrb[32].mxu0 %vm594_vm0, %v47_v8  ;;  %v79_v8 = vld [vmem:[%s12795_s0 + $0x208] sm:$0xff] }
  0x4d   :  { %7789 = vmatmul.mubr.msk.f32.gmra.mrb[32].mxu1 %vm594_vm0, %v335_v9  ;;  %7359 = vmatprep.mubr.msk.f32.mxu0 %vm594_vm0, %v48_v10  ;;  %v367_v9 = vld [vmem:[%s12795_s0 + $0xb08] sm:$0xff]  ;;  %v80_v10 = vld [vmem:[%s12795_s0 + $0x210] sm:$0xff] }
  0x4e   :  { %7791 = vmatprep.mubr.msk.f32.mxu1 %vm594_vm0, %v336_v11  ;;  %v368_v11 = vld [vmem:[%s12795_s0 + $0xb10] sm:$0xff] }
  0x50   :  { %7360 = vmatmul.mubr.msk.f32.gmra.mrb[34].mxu0 %vm594_vm0, %v49_v12  ;;  %v81_v12 = vld [vmem:[%s12795_s0 + $0x218] sm:$0xff] }
  0x51   :  { %7792 = vmatmul.mubr.msk.f32.gmra.mrb[34].mxu1 %vm594_vm0, %v337_v13  ;;  %7362 = vmatprep.mubr.msk.f32.mxu0 %vm594_vm0, %v50_v14  ;;  %v369_v13 = vld [vmem:[%s12795_s0 + $0xb18] sm:$0xff]  ;;  %v82_v14 = vld [vmem:[%s12795_s0 + $0x220] sm:$0xff] }
  0x52   :  { %7794 = vmatprep.mubr.msk.f32.mxu1 %vm594_vm0, %v338_v15  ;;  %v370_v15 = vld [vmem:[%s12795_s0 + $0xb20] sm:$0xff] }
  0x54   :  { %7363 = vmatmul.mubr.msk.f32.gmra.mrb[36].mxu0 %vm594_vm0, %v51_v16  ;;  %v83_v16 = vld [vmem:[%s12795_s0 + $0x228] sm:$0xff] }
  0x55   :  { %7795 = vmatmul.mubr.msk.f32.gmra.mrb[36].mxu1 %vm594_vm0, %v339_v17  ;;  %7365 = vmatprep.mubr.msk.f32.mxu0 %vm594_vm0, %v52_v18  ;;  %v371_v17 = vld [vmem:[%s12795_s0 + $0xb28] sm:$0xff]  ;;  %v84_v18 = vld [vmem:[%s12795_s0 + $0x230] sm:$0xff] }
  0x56   :  { %7797 = vmatprep.mubr.msk.f32.mxu1 %vm594_vm0, %v340_v19  ;;  %v372_v19 = vld [vmem:[%s12795_s0 + $0xb30] sm:$0xff] }
  0x58   :  { %7366 = vmatmul.mubr.msk.f32.gmra.mrb[38].mxu0 %vm594_vm0, %v53_v20  ;;  %v85_v20 = vld [vmem:[%s12795_s0 + $0x238] sm:$0xff] }
  0x59   :  { %7798 = vmatmul.mubr.msk.f32.gmra.mrb[38].mxu1 %vm594_vm0, %v341_v21  ;;  %7368 = vmatprep.mubr.msk.f32.mxu0 %vm594_vm0, %v54_v22  ;;  %v373_v21 = vld [vmem:[%s12795_s0 + $0xb38] sm:$0xff]  ;;  %v86_v22 = vld [vmem:[%s12795_s0 + $0x240] sm:$0xff] }
  0x5a   :  { %7800 = vmatprep.mubr.msk.f32.mxu1 %vm594_vm0, %v342_v23  ;;  %v374_v23 = vld [vmem:[%s12795_s0 + $0xb40] sm:$0xff] }
  0x5c   :  { %7369 = vmatmul.mubr.msk.f32.gmra.mrb[40].mxu0 %vm594_vm0, %v55_v24  ;;  %v87_v24 = vld [vmem:[%s12795_s0 + $0x248] sm:$0xff] }
  0x5d   :  { %7801 = vmatmul.mubr.msk.f32.gmra.mrb[40].mxu1 %vm594_vm0, %v343_v25  ;;  %7371 = vmatprep.mubr.msk.f32.mxu0 %vm594_vm0, %v56_v26  ;;  %v375_v25 = vld [vmem:[%s12795_s0 + $0xb48] sm:$0xff]  ;;  %v88_v26 = vld [vmem:[%s12795_s0 + $0x250] sm:$0xff] }
  0x5e   :  { %7803 = vmatprep.mubr.msk.f32.mxu1 %vm594_vm0, %v344_v27  ;;  %v376_v27 = vld [vmem:[%s12795_s0 + $0xb50] sm:$0xff] }
  0x60   :  { %7372 = vmatmul.mubr.msk.f32.gmra.mrb[42].mxu0 %vm594_vm0, %v57_v28  ;;  %v89_v28 = vld [vmem:[%s12795_s0 + $0x258] sm:$0xff] }
  0x61   :  { %7804 = vmatmul.mubr.msk.f32.gmra.mrb[42].mxu1 %vm594_vm0, %v345_v29  ;;  %7374 = vmatprep.mubr.msk.f32.mxu0 %vm594_vm0, %v58_v30  ;;  %v377_v29 = vld [vmem:[%s12795_s0 + $0xb58] sm:$0xff]  ;;  %v90_v30 = vld [vmem:[%s12795_s0 + $0x260] sm:$0xff] }
  0x62   :  { %7806 = vmatprep.mubr.msk.f32.mxu1 %vm594_vm0, %v346_v31  ;;  %v378_v31 = vld [vmem:[%s12795_s0 + $0xb60] sm:$0xff] }
  0x64   :  { %7375 = vmatmul.mubr.msk.f32.gmra.mrb[44].mxu0 %vm594_vm0, %v59_v32  ;;  %v91_v32 = vld [vmem:[%s12795_s0 + $0x268] sm:$0xff] }
  0x65   :  { %7807 = vmatmul.mubr.msk.f32.gmra.mrb[44].mxu1 %vm594_vm0, %v347_v33  ;;  %7377 = vmatprep.mubr.msk.f32.mxu0 %vm594_vm0, %v60_v34  ;;  %v379_v33 = vld [vmem:[%s12795_s0 + $0xb68] sm:$0xff]  ;;  %v92_v34 = vld [vmem:[%s12795_s0 + $0x270] sm:$0xff] }
  0x66   :  { %7809 = vmatprep.mubr.msk.f32.mxu1 %vm594_vm0, %v348_v35  ;;  %v380_v35 = vld [vmem:[%s12795_s0 + $0xb70] sm:$0xff] }
  0x68   :  { %7378 = vmatmul.mubr.msk.f32.gmra.mrb[46].mxu0 %vm594_vm0, %v61_v36  ;;  %v93_v36 = vld [vmem:[%s12795_s0 + $0x278] sm:$0xff] }
  0x69   :  { %7810 = vmatmul.mubr.msk.f32.gmra.mrb[46].mxu1 %vm594_vm0, %v349_v37  ;;  %7380 = vmatprep.mubr.msk.f32.mxu0 %vm594_vm0, %v62_v38  ;;  %v381_v37 = vld [vmem:[%s12795_s0 + $0xb78] sm:$0xff]  ;;  %v94_v38 = vld [vmem:[%s12795_s0 + $0x280] sm:$0xff] }
  0x6a   :  { %7812 = vmatprep.mubr.msk.f32.mxu1 %vm594_vm0, %v350_v39  ;;  %v382_v39 = vld [vmem:[%s12795_s0 + $0xb80] sm:$0xff] }
  0x6c   :  { %7381 = vmatmul.mubr.msk.f32.gmra.mrb[48].mxu0 %vm594_vm0, %v63_v40  ;;  %v95_v40 = vld [vmem:[%s12795_s0 + $0x288] sm:$0xff] }
  0x6d   :  { %7813 = vmatmul.mubr.msk.f32.gmra.mrb[48].mxu1 %vm594_vm0, %v351_v41  ;;  %7383 = vmatprep.mubr.msk.f32.mxu0 %vm594_vm0, %v64_v42  ;;  %v383_v41 = vld [vmem:[%s12795_s0 + $0xb88] sm:$0xff]  ;;  %v96_v42 = vld [vmem:[%s12795_s0 + $0x290] sm:$0xff] }
  0x6e   :  { %7815 = vmatprep.mubr.msk.f32.mxu1 %vm594_vm0, %v352_v43  ;;  %v384_v43 = vld [vmem:[%s12795_s0 + $0xb90] sm:$0xff] }
  0x70   :  { %7384 = vmatmul.mubr.msk.f32.gmra.mrb[50].mxu0 %vm594_vm0, %v65_v44  ;;  %v97_v44 = vld [vmem:[%s12795_s0 + $0x298] sm:$0xff] }
  0x71   :  { %7816 = vmatmul.mubr.msk.f32.gmra.mrb[50].mxu1 %vm594_vm0, %v353_v45  ;;  %7386 = vmatprep.mubr.msk.f32.mxu0 %vm594_vm0, %v66_v46  ;;  %v385_v45 = vld [vmem:[%s12795_s0 + $0xb98] sm:$0xff]  ;;  %v98_v46 = vld [vmem:[%s12795_s0 + $0x2a0] sm:$0xff] }
  0x72   :  { %7818 = vmatprep.mubr.msk.f32.mxu1 %vm594_vm0, %v354_v47  ;;  %v386_v47 = vld [vmem:[%s12795_s0 + $0xba0] sm:$0xff] }
  0x74   :  { %7387 = vmatmul.mubr.msk.f32.gmra.mrb[52].mxu0 %vm594_vm0, %v67_v48  ;;  %v99_v48 = vld [vmem:[%s12795_s0 + $0x2a8] sm:$0xff] }
  0x75   :  { %7819 = vmatmul.mubr.msk.f32.gmra.mrb[52].mxu1 %vm594_vm0, %v355_v49  ;;  %7389 = vmatprep.mubr.msk.f32.mxu0 %vm594_vm0, %v68_v50  ;;  %v387_v49 = vld [vmem:[%s12795_s0 + $0xba8] sm:$0xff]  ;;  %v100_v50 = vld [vmem:[%s12795_s0 + $0x2b0] sm:$0xff] }
  0x76   :  { %7821 = vmatprep.mubr.msk.f32.mxu1 %vm594_vm0, %v356_v51  ;;  %v388_v51 = vld [vmem:[%s12795_s0 + $0xbb0] sm:$0xff] }
  0x78   :  { %7390 = vmatmul.mubr.msk.f32.gmra.mrb[54].mxu0 %vm594_vm0, %v69_v52  ;;  %v101_v52 = vld [vmem:[%s12795_s0 + $0x2b8] sm:$0xff] }
  0x79   :  { %7822 = vmatmul.mubr.msk.f32.gmra.mrb[54].mxu1 %vm594_vm0, %v357_v53  ;;  %7392 = vmatprep.mubr.msk.f32.mxu0 %vm594_vm0, %v70_v54  ;;  %v389_v53 = vld [vmem:[%s12795_s0 + $0xbb8] sm:$0xff]  ;;  %v102_v54 = vld [vmem:[%s12795_s0 + $0x2c0] sm:$0xff] }
  0x7a   :  { %7824 = vmatprep.mubr.msk.f32.mxu1 %vm594_vm0, %v358_v55  ;;  %v390_v55 = vld [vmem:[%s12795_s0 + $0xbc0] sm:$0xff] }
  0x7c   :  { %7393 = vmatmul.mubr.msk.f32.gmra.mrb[56].mxu0 %vm594_vm0, %v71_v56  ;;  %v103_v56 = vld [vmem:[%s12795_s0 + $0x2c8] sm:$0xff] }
  0x7d   :  { %7825 = vmatmul.mubr.msk.f32.gmra.mrb[56].mxu1 %vm594_vm0, %v359_v57  ;;  %7395 = vmatprep.mubr.msk.f32.mxu0 %vm594_vm0, %v72_v58  ;;  %v391_v57 = vld [vmem:[%s12795_s0 + $0xbc8] sm:$0xff]  ;;  %v104_v58 = vld [vmem:[%s12795_s0 + $0x2d0] sm:$0xff] }
  0x7e   :  { %7827 = vmatprep.mubr.msk.f32.mxu1 %vm594_vm0, %v360_v59  ;;  %v392_v59 = vld [vmem:[%s12795_s0 + $0xbd0] sm:$0xff] }
  0x80   :  { %7396 = vmatmul.mubr.msk.f32.gmra.mrb[58].mxu0 %vm594_vm0, %v73_v60  ;;  %v105_v60 = vld [vmem:[%s12795_s0 + $0x2d8] sm:$0xff] }
  0x81   :  { %7828 = vmatmul.mubr.msk.f32.gmra.mrb[58].mxu1 %vm594_vm0, %v361_v61  ;;  %7398 = vmatprep.mubr.msk.f32.mxu0 %vm594_vm0, %v74_v62  ;;  %v393_v61 = vld [vmem:[%s12795_s0 + $0xbd8] sm:$0xff]  ;;  %v106_v62 = vld [vmem:[%s12795_s0 + $0x2e0] sm:$0xff] }
  0x82   :  { %7830 = vmatprep.mubr.msk.f32.mxu1 %vm594_vm0, %v362_v63  ;;  %v394_v63 = vld [vmem:[%s12795_s0 + $0xbe0] sm:$0xff] }
  0x84   :  { %7399 = vmatmul.mubr.msk.f32.gmra.mrb[60].mxu0 %vm594_vm0, %v75_v0  ;;  %v107_v0 = vld [vmem:[%s12795_s0 + $0x2e8] sm:$0xff] }
  0x85   :  { %7831 = vmatmul.mubr.msk.f32.gmra.mrb[60].mxu1 %vm594_vm0, %v363_v1  ;;  %7401 = vmatprep.mubr.msk.f32.mxu0 %vm594_vm0, %v76_v2  ;;  %v395_v1 = vld [vmem:[%s12795_s0 + $0xbe8] sm:$0xff]  ;;  %v108_v2 = vld [vmem:[%s12795_s0 + $0x2f0] sm:$0xff] }
  0x86   :  { %7833 = vmatprep.mubr.msk.f32.mxu1 %vm594_vm0, %v364_v3  ;;  %v396_v3 = vld [vmem:[%s12795_s0 + $0xbf0] sm:$0xff] }
  0x88   :  { %7402 = vmatmul.mubr.msk.f32.gmra.mrb[62].mxu0 %vm594_vm0, %v77_v4  ;;  %v109_v4 = vld [vmem:[%s12795_s0 + $0x2f8] sm:$0xff] }
  0x89   :  { %7834 = vmatmul.mubr.msk.f32.gmra.mrb[62].mxu1 %vm594_vm0, %v365_v5  ;;  %7404 = vmatprep.mubr.msk.f32.mxu0 %vm594_vm0, %v78_v6  ;;  %v397_v5 = vld [vmem:[%s12795_s0 + $0xbf8] sm:$0xff]  ;;  %v110_v6 = vld [vmem:[%s12795_s0 + $0x300] sm:$0xff] }
  0x8a   :  { %7836 = vmatprep.mubr.msk.f32.mxu1 %vm594_vm0, %v366_v7  ;;  %v398_v7 = vld [vmem:[%s12795_s0 + $0xc00] sm:$0xff] }
  0x8c   :  { %7405 = vmatmul.mubr.msk.f32.gmra.mrb[64].mxu0 %vm594_vm0, %v79_v8  ;;  %v111_v8 = vld [vmem:[%s12795_s0 + $0x308] sm:$0xff] }
  0x8d   :  { %7837 = vmatmul.mubr.msk.f32.gmra.mrb[64].mxu1 %vm594_vm0, %v367_v9  ;;  %7407 = vmatprep.mubr.msk.f32.mxu0 %vm594_vm0, %v80_v10  ;;  %v399_v9 = vld [vmem:[%s12795_s0 + $0xc08] sm:$0xff]  ;;  %v112_v10 = vld [vmem:[%s12795_s0 + $0x310] sm:$0xff] }
  0x8e   :  { %7839 = vmatprep.mubr.msk.f32.mxu1 %vm594_vm0, %v368_v11  ;;  %v400_v11 = vld [vmem:[%s12795_s0 + $0xc10] sm:$0xff] }
  0x90   :  { %7408 = vmatmul.mubr.msk.f32.gmra.mrb[66].mxu0 %vm594_vm0, %v81_v12  ;;  %v113_v12 = vld [vmem:[%s12795_s0 + $0x318] sm:$0xff] }
  0x91   :  { %7840 = vmatmul.mubr.msk.f32.gmra.mrb[66].mxu1 %vm594_vm0, %v369_v13  ;;  %7410 = vmatprep.mubr.msk.f32.mxu0 %vm594_vm0, %v82_v14  ;;  %v401_v13 = vld [vmem:[%s12795_s0 + $0xc18] sm:$0xff]  ;;  %v114_v14 = vld [vmem:[%s12795_s0 + $0x320] sm:$0xff] }
  0x92   :  { %7842 = vmatprep.mubr.msk.f32.mxu1 %vm594_vm0, %v370_v15  ;;  %v402_v15 = vld [vmem:[%s12795_s0 + $0xc20] sm:$0xff] }
  0x94   :  { %7411 = vmatmul.mubr.msk.f32.gmra.mrb[68].mxu0 %vm594_vm0, %v83_v16  ;;  %v115_v16 = vld [vmem:[%s12795_s0 + $0x328] sm:$0xff] }
  0x95   :  { %7843 = vmatmul.mubr.msk.f32.gmra.mrb[68].mxu1 %vm594_vm0, %v371_v17  ;;  %7413 = vmatprep.mubr.msk.f32.mxu0 %vm594_vm0, %v84_v18  ;;  %v403_v17 = vld [vmem:[%s12795_s0 + $0xc28] sm:$0xff]  ;;  %v116_v18 = vld [vmem:[%s12795_s0 + $0x330] sm:$0xff] }
  0x96   :  { %7845 = vmatprep.mubr.msk.f32.mxu1 %vm594_vm0, %v372_v19  ;;  %v404_v19 = vld [vmem:[%s12795_s0 + $0xc30] sm:$0xff] }
  0x98   :  { %7414 = vmatmul.mubr.msk.f32.gmra.mrb[70].mxu0 %vm594_vm0, %v85_v20  ;;  %v117_v20 = vld [vmem:[%s12795_s0 + $0x338] sm:$0xff] }
  0x99   :  { %7846 = vmatmul.mubr.msk.f32.gmra.mrb[70].mxu1 %vm594_vm0, %v373_v21  ;;  %7416 = vmatprep.mubr.msk.f32.mxu0 %vm594_vm0, %v86_v22  ;;  %v405_v21 = vld [vmem:[%s12795_s0 + $0xc38] sm:$0xff]  ;;  %v118_v22 = vld [vmem:[%s12795_s0 + $0x340] sm:$0xff] }
  0x9a   :  { %7848 = vmatprep.mubr.msk.f32.mxu1 %vm594_vm0, %v374_v23  ;;  %v406_v23 = vld [vmem:[%s12795_s0 + $0xc40] sm:$0xff] }
  0x9c   :  { %7417 = vmatmul.mubr.msk.f32.gmra.mrb[72].mxu0 %vm594_vm0, %v87_v24  ;;  %v119_v24 = vld [vmem:[%s12795_s0 + $0x348] sm:$0xff] }
  0x9d   :  { %7849 = vmatmul.mubr.msk.f32.gmra.mrb[72].mxu1 %vm594_vm0, %v375_v25  ;;  %7419 = vmatprep.mubr.msk.f32.mxu0 %vm594_vm0, %v88_v26  ;;  %v407_v25 = vld [vmem:[%s12795_s0 + $0xc48] sm:$0xff]  ;;  %v120_v26 = vld [vmem:[%s12795_s0 + $0x350] sm:$0xff] }
  0x9e   :  { %7851 = vmatprep.mubr.msk.f32.mxu1 %vm594_vm0, %v376_v27  ;;  %v408_v27 = vld [vmem:[%s12795_s0 + $0xc50] sm:$0xff] }
  0xa0   :  { %7420 = vmatmul.mubr.msk.f32.gmra.mrb[74].mxu0 %vm594_vm0, %v89_v28  ;;  %v121_v28 = vld [vmem:[%s12795_s0 + $0x358] sm:$0xff] }
  0xa1   :  { %7852 = vmatmul.mubr.msk.f32.gmra.mrb[74].mxu1 %vm594_vm0, %v377_v29  ;;  %7422 = vmatprep.mubr.msk.f32.mxu0 %vm594_vm0, %v90_v30  ;;  %v409_v29 = vld [vmem:[%s12795_s0 + $0xc58] sm:$0xff]  ;;  %v122_v30 = vld [vmem:[%s12795_s0 + $0x360] sm:$0xff] }
  0xa2   :  { %7854 = vmatprep.mubr.msk.f32.mxu1 %vm594_vm0, %v378_v31  ;;  %v410_v31 = vld [vmem:[%s12795_s0 + $0xc60] sm:$0xff] }
  0xa4   :  { %7423 = vmatmul.mubr.msk.f32.gmra.mrb[76].mxu0 %vm594_vm0, %v91_v32 }
  0xa5   :  { %7855 = vmatmul.mubr.msk.f32.gmra.mrb[76].mxu1 %vm594_vm0, %v379_v33  ;;  %7425 = vmatprep.mubr.msk.f32.mxu0 %vm594_vm0, %v92_v34 }
  0xa6   :  { %7857 = vmatprep.mubr.msk.f32.mxu1 %vm594_vm0, %v380_v35 }
  0xa8   :  { %7426 = vmatmul.mubr.msk.f32.gmra.mrb[78].mxu0 %vm594_vm0, %v93_v36  ;;  %v123_v36 = vld [vmem:[%s12795_s0 + $0x368] sm:$0xff] }
  0xa9   :  { %7858 = vmatmul.mubr.msk.f32.gmra.mrb[78].mxu1 %vm594_vm0, %v381_v37  ;;  %7428 = vmatprep.mubr.msk.f32.mxu0 %vm594_vm0, %v94_v38  ;;  %v411_v37 = vld [vmem:[%s12795_s0 + $0xc68] sm:$0xff]  ;;  %v124_v38 = vld [vmem:[%s12795_s0 + $0x370] sm:$0xff] }
  0xaa   :  { %7860 = vmatprep.mubr.msk.f32.mxu1 %vm594_vm0, %v382_v39  ;;  %v412_v39 = vld [vmem:[%s12795_s0 + $0xc70] sm:$0xff] }
  0xac   :  { %7429 = vmatmul.mubr.msk.f32.gmra.mrb[80].mxu0 %vm594_vm0, %v95_v40 }
  0xad   :  { %7861 = vmatmul.mubr.msk.f32.gmra.mrb[80].mxu1 %vm594_vm0, %v383_v41  ;;  %7431 = vmatprep.mubr.msk.f32.mxu0 %vm594_vm0, %v96_v42 }
  0xae   :  { %7863 = vmatprep.mubr.msk.f32.mxu1 %vm594_vm0, %v384_v43 }
  0xb0   :  { %7432 = vmatmul.mubr.msk.f32.gmra.mrb[82].mxu0 %vm594_vm0, %v97_v44  ;;  %v125_v44 = vld [vmem:[%s12795_s0 + $0x378] sm:$0xff] }
  0xb1   :  { %7864 = vmatmul.mubr.msk.f32.gmra.mrb[82].mxu1 %vm594_vm0, %v385_v45  ;;  %7434 = vmatprep.mubr.msk.f32.mxu0 %vm594_vm0, %v98_v46  ;;  %v413_v45 = vld [vmem:[%s12795_s0 + $0xc78] sm:$0xff]  ;;  %v126_v46 = vld [vmem:[%s12795_s0 + $0x380] sm:$0xff] }
  0xb2   :  { %7866 = vmatprep.mubr.msk.f32.mxu1 %vm594_vm0, %v386_v47  ;;  %v414_v47 = vld [vmem:[%s12795_s0 + $0xc80] sm:$0xff] }
  0xb4   :  { %7435 = vmatmul.mubr.msk.f32.gmra.mrb[84].mxu0 %vm594_vm0, %v99_v48 }
  0xb5   :  { %7867 = vmatmul.mubr.msk.f32.gmra.mrb[84].mxu1 %vm594_vm0, %v387_v49  ;;  %7437 = vmatprep.mubr.msk.f32.mxu0 %vm594_vm0, %v100_v50 }
  0xb6   :  { %7869 = vmatprep.mubr.msk.f32.mxu1 %vm594_vm0, %v388_v51 }
  0xb8   :  { %7438 = vmatmul.mubr.msk.f32.gmra.mrb[86].mxu0 %vm594_vm0, %v101_v52  ;;  %v127_v52 = vld [vmem:[%s12795_s0 + $0x388] sm:$0xff] }
  0xb9   :  { %7870 = vmatmul.mubr.msk.f32.gmra.mrb[86].mxu1 %vm594_vm0, %v389_v53  ;;  %7440 = vmatprep.mubr.msk.f32.mxu0 %vm594_vm0, %v102_v54  ;;  %v415_v53 = vld [vmem:[%s12795_s0 + $0xc88] sm:$0xff]  ;;  %v128_v54 = vld [vmem:[%s12795_s0 + $0x390] sm:$0xff] }
  0xba   :  { %7872 = vmatprep.mubr.msk.f32.mxu1 %vm594_vm0, %v390_v55  ;;  %v416_v55 = vld [vmem:[%s12795_s0 + $0xc90] sm:$0xff] }
  0xbc   :  { %7441 = vmatmul.mubr.msk.f32.gmra.mrb[88].mxu0 %vm594_vm0, %v103_v56 }
  0xbd   :  { %7873 = vmatmul.mubr.msk.f32.gmra.mrb[88].mxu1 %vm594_vm0, %v391_v57  ;;  %7443 = vmatprep.mubr.msk.f32.mxu0 %vm594_vm0, %v104_v58 }
  0xbe   :  { %7875 = vmatprep.mubr.msk.f32.mxu1 %vm594_vm0, %v392_v59 }
  0xc0   :  { %7444 = vmatmul.mubr.msk.f32.gmra.mrb[90].mxu0 %vm594_vm0, %v105_v60  ;;  %v129_v60 = vld [vmem:[%s12795_s0 + $0x398] sm:$0xff] }
  0xc1   :  { %7876 = vmatmul.mubr.msk.f32.gmra.mrb[90].mxu1 %vm594_vm0, %v393_v61  ;;  %7446 = vmatprep.mubr.msk.f32.mxu0 %vm594_vm0, %v106_v62  ;;  %v417_v61 = vld [vmem:[%s12795_s0 + $0xc98] sm:$0xff]  ;;  %v130_v62 = vld [vmem:[%s12795_s0 + $0x3a0] sm:$0xff] }
  0xc2   :  { %7878 = vmatprep.mubr.msk.f32.mxu1 %vm594_vm0, %v394_v63  ;;  %v418_v63 = vld [vmem:[%s12795_s0 + $0xca0] sm:$0xff] }
  0xc4   :  { %7447 = vmatmul.mubr.msk.f32.gmra.mrb[92].mxu0 %vm594_vm0, %v107_v0 }
  0xc5   :  { %7879 = vmatmul.mubr.msk.f32.gmra.mrb[92].mxu1 %vm594_vm0, %v395_v1  ;;  %7449 = vmatprep.mubr.msk.f32.mxu0 %vm594_vm0, %v108_v2 }
  0xc6   :  { %7881 = vmatprep.mubr.msk.f32.mxu1 %vm594_vm0, %v396_v3 }
  0xc8   :  { %7450 = vmatmul.mubr.msk.f32.gmra.mrb[94].mxu0 %vm594_vm0, %v109_v4  ;;  %v131_v4 = vld [vmem:[%s12795_s0 + $0x3a8] sm:$0xff] }
  0xc9   :  { %7882 = vmatmul.mubr.msk.f32.gmra.mrb[94].mxu1 %vm594_vm0, %v397_v5  ;;  %7452 = vmatprep.mubr.msk.f32.mxu0 %vm594_vm0, %v110_v6  ;;  %v419_v5 = vld [vmem:[%s12795_s0 + $0xca8] sm:$0xff]  ;;  %v132_v6 = vld [vmem:[%s12795_s0 + $0x3b0] sm:$0xff] }
  0xca   :  { %7884 = vmatprep.mubr.msk.f32.mxu1 %vm594_vm0, %v398_v7  ;;  %v420_v7 = vld [vmem:[%s12795_s0 + $0xcb0] sm:$0xff] }
  0xcc   :  { %7453 = vmatmul.mubr.msk.f32.gmra.mrb[96].mxu0 %vm594_vm0, %v111_v8 }
  0xcd   :  { %7885 = vmatmul.mubr.msk.f32.gmra.mrb[96].mxu1 %vm594_vm0, %v399_v9  ;;  %7455 = vmatprep.mubr.msk.f32.mxu0 %vm594_vm0, %v112_v10 }
  0xce   :  { %7887 = vmatprep.mubr.msk.f32.mxu1 %vm594_vm0, %v400_v11 }
  0xd0   :  { %7456 = vmatmul.mubr.msk.f32.gmra.mrb[98].mxu0 %vm594_vm0, %v113_v12  ;;  %v133_v12 = vld [vmem:[%s12795_s0 + $0x3b8] sm:$0xff] }
  0xd1   :  { %7888 = vmatmul.mubr.msk.f32.gmra.mrb[98].mxu1 %vm594_vm0, %v401_v13  ;;  %7458 = vmatprep.mubr.msk.f32.mxu0 %vm594_vm0, %v114_v14  ;;  %v421_v13 = vld [vmem:[%s12795_s0 + $0xcb8] sm:$0xff]  ;;  %v134_v14 = vld [vmem:[%s12795_s0 + $0x3c0] sm:$0xff] }
  0xd2   :  { %7890 = vmatprep.mubr.msk.f32.mxu1 %vm594_vm0, %v402_v15  ;;  %v422_v15 = vld [vmem:[%s12795_s0 + $0xcc0] sm:$0xff] }
  0xd4   :  { %7459 = vmatmul.mubr.msk.f32.gmra.mrb[100].mxu0 %vm594_vm0, %v115_v16 }
  0xd5   :  { %7891 = vmatmul.mubr.msk.f32.gmra.mrb[100].mxu1 %vm594_vm0, %v403_v17  ;;  %7461 = vmatprep.mubr.msk.f32.mxu0 %vm594_vm0, %v116_v18 }
  0xd6   :  { %7893 = vmatprep.mubr.msk.f32.mxu1 %vm594_vm0, %v404_v19 }
  0xd8   :  { %7462 = vmatmul.mubr.msk.f32.gmra.mrb[102].mxu0 %vm594_vm0, %v117_v20  ;;  %v135_v20 = vld [vmem:[%s12795_s0 + $0x3c8] sm:$0xff] }
  0xd9   :  { %7894 = vmatmul.mubr.msk.f32.gmra.mrb[102].mxu1 %vm594_vm0, %v405_v21  ;;  %7464 = vmatprep.mubr.msk.f32.mxu0 %vm594_vm0, %v118_v22  ;;  %v423_v21 = vld [vmem:[%s12795_s0 + $0xcc8] sm:$0xff]  ;;  %v136_v22 = vld [vmem:[%s12795_s0 + $0x3d0] sm:$0xff] }
  0xda   :  { %7896 = vmatprep.mubr.msk.f32.mxu1 %vm594_vm0, %v406_v23  ;;  %v424_v23 = vld [vmem:[%s12795_s0 + $0xcd0] sm:$0xff] }
  0xdc   :  { %7465 = vmatmul.mubr.msk.f32.gmra.mrb[104].mxu0 %vm594_vm0, %v119_v24 }
  0xdd   :  { %7897 = vmatmul.mubr.msk.f32.gmra.mrb[104].mxu1 %vm594_vm0, %v407_v25  ;;  %7467 = vmatprep.mubr.msk.f32.mxu0 %vm594_vm0, %v120_v26 }
  0xde   :  { %7899 = vmatprep.mubr.msk.f32.mxu1 %vm594_vm0, %v408_v27 }
  0xdf   :  { %v9087_v32 = vpop.f32.mrb[0].mxu0 }
  0xe0   :  { %v9089_v33 = vpop.f32.mrb[0].mxu1  ;;  %v9091_v34 = vpop.f32.mrb[1].mxu0  ;;  %7468 = vmatmul.mubr.msk.f32.gmra.mrb[106].mxu0 %vm594_vm0, %v121_v28  ;;  %v137_v28 = vld [vmem:[%s12795_s0 + $0x3d8] sm:$0xff] }
  0xe1   :  { %v9094_v35 = vpop.f32.mrb[1].mxu1  ;;  %7900 = vmatmul.mubr.msk.f32.gmra.mrb[106].mxu1 %vm594_vm0, %v409_v29  ;;  %7470 = vmatprep.mubr.msk.f32.mxu0 %vm594_vm0, %v122_v30  ;;  %v425_v29 = vld [vmem:[%s12795_s0 + $0xcd8] sm:$0xff]  ;;  %v138_v30 = vld [vmem:[%s12795_s0 + $0x3e0] sm:$0xff] }
  0xe2   :  { %7902 = vmatprep.mubr.msk.f32.mxu1 %vm594_vm0, %v410_v31  ;;  %v426_v31 = vld [vmem:[%s12795_s0 + $0xce0] sm:$0xff] }
  0xe3   :  { %v9111_v40 = vpop.f32.mrb[2].mxu0 }
  0xe4   :  { %v9113_v41 = vpop.f32.mrb[2].mxu1  ;;  %v9115_v42 = vpop.f32.mrb[3].mxu0  ;;  %7471 = vmatmul.mubr.msk.f32.gmra.mrb[108].mxu0 %vm594_vm0, %v123_v36 }
  0xe5   :  { %v9118_v43 = vpop.f32.mrb[3].mxu1  ;;  %7903 = vmatmul.mubr.msk.f32.gmra.mrb[108].mxu1 %vm594_vm0, %v411_v37  ;;  %7473 = vmatprep.mubr.msk.f32.mxu0 %vm594_vm0, %v124_v38 }
  0xe6   :  { %7905 = vmatprep.mubr.msk.f32.mxu1 %vm594_vm0, %v412_v39 }
  0xe7   :  { %v9135_v48 = vpop.f32.mrb[4].mxu0 }
  0xe8   :  { %v9137_v49 = vpop.f32.mrb[4].mxu1  ;;  %v9139_v50 = vpop.f32.mrb[5].mxu0  ;;  %7474 = vmatmul.mubr.msk.f32.gmra.mrb[110].mxu0 %vm594_vm0, %v125_v44  ;;  %v139_v44 = vld [vmem:[%s12795_s0 + $0x3e8] sm:$0xff] }
  0xe9   :  { %v9142_v51 = vpop.f32.mrb[5].mxu1  ;;  %7906 = vmatmul.mubr.msk.f32.gmra.mrb[110].mxu1 %vm594_vm0, %v413_v45  ;;  %7476 = vmatprep.mubr.msk.f32.mxu0 %vm594_vm0, %v126_v46  ;;  %v427_v45 = vld [vmem:[%s12795_s0 + $0xce8] sm:$0xff]  ;;  %v140_v46 = vld [vmem:[%s12795_s0 + $0x3f0] sm:$0xff] }
  0xea   :  { %7908 = vmatprep.mubr.msk.f32.mxu1 %vm594_vm0, %v414_v47  ;;  %v428_v47 = vld [vmem:[%s12795_s0 + $0xcf0] sm:$0xff] }
  0xeb   :  { %v9159_v56 = vpop.f32.mrb[6].mxu0 }
  0xec   :  { %v9161_v57 = vpop.f32.mrb[6].mxu1  ;;  %v9163_v58 = vpop.f32.mrb[7].mxu0  ;;  %7477 = vmatmul.mubr.msk.f32.gmra.mrb[112].mxu0 %vm594_vm0, %v127_v52 }
  0xed   :  { %v9166_v59 = vpop.f32.mrb[7].mxu1  ;;  %7909 = vmatmul.mubr.msk.f32.gmra.mrb[112].mxu1 %vm594_vm0, %v415_v53  ;;  %7479 = vmatprep.mubr.msk.f32.mxu0 %vm594_vm0, %v128_v54  ;;  %v438_v54 = vld [vmem:[%s12795_s0 + $0xd40] sm:$0xff] }
  0xee   :  { %7911 = vmatprep.mubr.msk.f32.mxu1 %vm594_vm0, %v416_v55 }
  0xef   :  { %v9183_v0 = vpop.f32.mrb[8].mxu0 }
  0xf0   :  { %12958 = vst [vmem:[#allocation2_spill] sm:$0xff] %v9183_v0  ;;  %v9185_v1 = vpop.f32.mrb[8].mxu1  ;;  %v9187_v2 = vpop.f32.mrb[9].mxu0  ;;  %7480 = vmatmul.mubr.msk.f32.gmra.mrb[114].mxu0 %vm594_vm0, %v129_v60 }
  0xf1   :  { %12959 = vst [vmem:[#allocation3_spill] sm:$0xff] %v9185_v1  ;;  %12960 = vst [vmem:[#allocation4_spill] sm:$0xff] %v9187_v2  ;;  %v9190_v3 = vpop.f32.mrb[9].mxu1  ;;  %7912 = vmatmul.mubr.msk.f32.gmra.mrb[114].mxu1 %vm594_vm0, %v417_v61  ;;  %7482 = vmatprep.mubr.msk.f32.mxu0 %vm594_vm0, %v130_v62  ;;  %v440_v2 = vld [vmem:[%s12795_s0 + $0xd50] sm:$0xff] }
  0xf2   :  { %12961 = vst [vmem:[#allocation5_spill] sm:$0xff] %v9190_v3  ;;  %7914 = vmatprep.mubr.msk.f32.mxu1 %vm594_vm0, %v418_v63 }
  0xf3   :  { %v9207_v8 = vpop.f32.mrb[10].mxu0 }
  0xf4   :  { %12962 = vst [vmem:[#allocation6_spill] sm:$0xff] %v9207_v8  ;;  %v9209_v9 = vpop.f32.mrb[10].mxu1  ;;  %v9211_v10 = vpop.f32.mrb[11].mxu0  ;;  %7483 = vmatmul.mubr.msk.f32.gmra.mrb[116].mxu0 %vm594_vm0, %v131_v4  ;;  %v141_v4 = vld [vmem:[%s12795_s0 + $0x3f8] sm:$0xff] }
  0xf5   :  { %12963 = vst [vmem:[#allocation7_spill] sm:$0xff] %v9209_v9  ;;  %12964 = vst [vmem:[#allocation8_spill] sm:$0xff] %v9211_v10  ;;  %v9214_v11 = vpop.f32.mrb[11].mxu1  ;;  %7915 = vmatmul.mubr.msk.f32.gmra.mrb[116].mxu1 %vm594_vm0, %v419_v5  ;;  %7485 = vmatprep.mubr.msk.f32.mxu0 %vm594_vm0, %v132_v6  ;;  %v429_v5 = vld [vmem:[%s12795_s0 + $0xcf8] sm:$0xff]  ;;  %v142_v6 = vld [vmem:[%s12795_s0 + $0x400] sm:$0xff] }
  0xf6   :  { %12965 = vst [vmem:[#allocation9_spill] sm:$0xff] %v9214_v11  ;;  %7917 = vmatprep.mubr.msk.f32.mxu1 %vm594_vm0, %v420_v7  ;;  %v430_v7 = vld [vmem:[%s12795_s0 + $0xd00] sm:$0xff]  ;;  %v455_v9 = vld [vmem:[%s12795_s0 + $0xdc8] sm:$0xff] }
  0xf7   :  { %v9231_v16 = vpop.f32.mrb[12].mxu0  ;;  %v442_v10 = vld [vmem:[%s12795_s0 + $0xd60] sm:$0xff] }
  0xf8   :  { %12966 = vst [vmem:[#allocation10_spill] sm:$0xff] %v9231_v16  ;;  %v9233_v17 = vpop.f32.mrb[12].mxu1  ;;  %v9235_v18 = vpop.f32.mrb[13].mxu0  ;;  %7486 = vmatmul.mubr.msk.f32.gmra.mrb[118].mxu0 %vm594_vm0, %v133_v12 }
  0xf9   :  { %12967 = vst [vmem:[#allocation11_spill] sm:$0xff] %v9233_v17  ;;  %12968 = vst [vmem:[#allocation12_spill] sm:$0xff] %v9235_v18  ;;  %v9238_v19 = vpop.f32.mrb[13].mxu1  ;;  %7918 = vmatmul.mubr.msk.f32.gmra.mrb[118].mxu1 %vm594_vm0, %v421_v13  ;;  %7488 = vmatprep.mubr.msk.f32.mxu0 %vm594_vm0, %v134_v14  ;;  %v436_v14 = vld [vmem:[%s12795_s0 + $0xd30] sm:$0xff]  ;;  %v453_v17 = vld [vmem:[%s12795_s0 + $0xdb8] sm:$0xff] }
  0xfa   :  { %12969 = vst [vmem:[#allocation13_spill] sm:$0xff] %v9238_v19  ;;  %7920 = vmatprep.mubr.msk.f32.mxu1 %vm594_vm0, %v422_v15  ;;  %v444_v18 = vld [vmem:[%s12795_s0 + $0xd70] sm:$0xff] }
  0xfb   :  { %v9255_v24 = vpop.f32.mrb[14].mxu0 }
  0xfc   :  { %12970 = vst [vmem:[#allocation14_spill] sm:$0xff] %v9255_v24  ;;  %v9257_v25 = vpop.f32.mrb[14].mxu1  ;;  %v9259_v26 = vpop.f32.mrb[15].mxu0  ;;  %7489 = vmatmul.mubr.msk.f32.gmra.mrb[120].mxu0 %vm594_vm0, %v135_v20 }
  0xfd   :  { %12971 = vst [vmem:[#allocation15_spill] sm:$0xff] %v9257_v25  ;;  %12972 = vst [vmem:[#allocation16_spill] sm:$0xff] %v9259_v26  ;;  %v9262_v27 = vpop.f32.mrb[15].mxu1  ;;  %7921 = vmatmul.mubr.msk.f32.gmra.mrb[120].mxu1 %vm594_vm0, %v423_v21  ;;  %7491 = vmatprep.mubr.msk.f32.mxu0 %vm594_vm0, %v136_v22  ;;  %v446_v26 = vld [vmem:[%s12795_s0 + $0xd80] sm:$0xff]  ;;  %v451_v25 = vld [vmem:[%s12795_s0 + $0xda8] sm:$0xff] }
  0xfe   :  { %12973 = vst [vmem:[#allocation17_spill] sm:$0xff] %v9262_v27  ;;  %7923 = vmatprep.mubr.msk.f32.mxu1 %vm594_vm0, %v424_v23 }
  0xff   :  { %v9279_v36 = vpop.f32.mrb[16].mxu0 }
 0x100   :  { %12974 = vst [vmem:[#allocation18_spill] sm:$0xff] %v9279_v36  ;;  %v9281_v37 = vpop.f32.mrb[16].mxu1  ;;  %v9283_v38 = vpop.f32.mrb[17].mxu0  ;;  %7492 = vmatmul.mubr.msk.f32.gmra.mrb[122].mxu0 %vm594_vm0, %v137_v28  ;;  %v143_v28 = vld [vmem:[%s12795_s0 + $0x408] sm:$0xff] }
 0x101   :  { %12975 = vst [vmem:[#allocation19_spill] sm:$0xff] %v9281_v37  ;;  %12976 = vst [vmem:[#allocation20_spill] sm:$0xff] %v9283_v38  ;;  %v9286_v39 = vpop.f32.mrb[17].mxu1  ;;  %7924 = vmatmul.mubr.msk.f32.gmra.mrb[122].mxu1 %vm594_vm0, %v425_v29  ;;  %7494 = vmatprep.mubr.msk.f32.mxu0 %vm594_vm0, %v138_v30  ;;  %v431_v29 = vld [vmem:[%s12795_s0 + $0xd08] sm:$0xff]  ;;  %v144_v30 = vld [vmem:[%s12795_s0 + $0x410] sm:$0xff] }
 0x102   :  { %12977 = vst [vmem:[#allocation21_spill] sm:$0xff] %v9286_v39  ;;  %7926 = vmatprep.mubr.msk.f32.mxu1 %vm594_vm0, %v426_v31  ;;  %v432_v31 = vld [vmem:[%s12795_s0 + $0xd10] sm:$0xff]  ;;  %v447_v39 = vld [vmem:[%s12795_s0 + $0xd88] sm:$0xff]  ;;  %v449_v37 = vld [vmem:[%s12795_s0 + $0xd98] sm:$0xff] }
 0x103   :  { %v9303_v52 = vpop.f32.mrb[18].mxu0 }
 0x104   :  { %v9305_v53 = vpop.f32.mrb[18].mxu1  ;;  %v9311_v60 = vpop.f32.mrb[19].mxu0  ;;  %7495 = vmatmul.mubr.msk.f32.gmra.mrb[124].mxu0 %vm594_vm0, %v139_v44 }
 0x105   :  { %v9314_v61 = vpop.f32.mrb[19].mxu1  ;;  %7927 = vmatmul.mubr.msk.f32.gmra.mrb[124].mxu1 %vm594_vm0, %v427_v45  ;;  %7497 = vmatprep.mubr.msk.f32.mxu0 %vm594_vm0, %v140_v46  ;;  %v147_v46 = vld [vmem:[%s12795_s0 + $0x428] sm:$0xff] }
 0x106   :  { %7929 = vmatprep.mubr.msk.f32.mxu1 %vm594_vm0, %v428_v47  ;;  %v145_v47 = vld [vmem:[%s12795_s0 + $0x418] sm:$0xff] }
 0x107   :  { %v9335_v12 = vpop.f32.mrb[20].mxu0 }
 0x108   :  { %v9337_v13 = vpop.f32.mrb[20].mxu1  ;;  %v9343_v20 = vpop.f32.mrb[21].mxu0  ;;  %7498 = vmatmul.mubr.msk.f32.gmra.mrb[126].mxu0 %vm594_vm0, %v141_v4 }
 0x109   :  { %v9346_v21 = vpop.f32.mrb[21].mxu1  ;;  %7930 = vmatmul.mubr.msk.f32.gmra.mrb[126].mxu1 %vm594_vm0, %v429_v5  ;;  %7500 = vmatprep.mubr.msk.f32.mxu0 %vm594_vm0, %v142_v6 }
 0x10a   :  { %7932 = vmatprep.mubr.msk.f32.mxu1 %vm594_vm0, %v430_v7  ;;  %v434_v7 = vld [vmem:[%s12795_s0 + $0xd20] sm:$0xff] }
 0x10b   :  { %v9367_v44 = vpop.f32.mrb[22].mxu0 }
 0x10c   :  { %v9369_v45 = vpop.f32.mrb[22].mxu1  ;;  %v9375_v4 = vpop.f32.mrb[23].mxu0  ;;  %7501 = vmatmul.mubr.msk.f32.gmra.mrb[128].mxu0 %vm594_vm0, %v143_v28  ;;  %v433_v28 = vld [vmem:[%s12795_s0 + $0xd18] sm:$0xff] }
 0x10d   :  { %v9378_v5 = vpop.f32.mrb[23].mxu1  ;;  %7933 = vmatmul.mubr.msk.f32.gmra.mrb[128].mxu1 %vm594_vm0, %v431_v29  ;;  %7503 = vmatprep.mubr.msk.f32.mxu0 %vm594_vm0, %v144_v30  ;;  %v146_v29 = vld [vmem:[%s12795_s0 + $0x420] sm:$0xff] }
 0x10e   :  { %7935 = vmatprep.mubr.msk.f32.mxu1 %vm594_vm0, %v432_v31  ;;  %v149_v31 = vld [vmem:[%s12795_s0 + $0x438] sm:$0xff] }
 0x10f   :  { %v9399_v6 = vpop.f32.mrb[24].mxu0 }
 0x110   :  { %v9401_v30 = vpop.f32.mrb[24].mxu1  ;;  %v9407_v23 = vpop.f32.mrb[25].mxu0  ;;  %7504 = vmatmul.mubr.msk.f32.gmra.mrb[130].mxu0 %vm594_vm0, %v145_v47  ;;  %v435_v47 = vld [vmem:[%s12795_s0 + $0xd28] sm:$0xff] }
 0x111   :  { %v9410_v22 = vpop.f32.mrb[25].mxu1  ;;  %7936 = vmatmul.mubr.msk.f32.gmra.mrb[130].mxu1 %vm594_vm0, %v433_v28  ;;  %7506 = vmatprep.mubr.msk.f32.mxu0 %vm594_vm0, %v146_v29  ;;  %v148_v28 = vld [vmem:[%s12795_s0 + $0x430] sm:$0xff] }
 0x112   :  { %7938 = vmatprep.mubr.msk.f32.mxu1 %vm594_vm0, %v434_v7  ;;  %v151_v7 = vld [vmem:[%s12795_s0 + $0x448] sm:$0xff] }
 0x113   :  { %v9431_v15 = vpop.f32.mrb[26].mxu0 }
 0x114   :  { %12978 = vst [vmem:[#allocation22_spill] sm:$0xff] %v9431_v15  ;;  %v9433_v29 = vpop.f32.mrb[26].mxu1  ;;  %v9439_v63 = vpop.f32.mrb[27].mxu0  ;;  %7507 = vmatmul.mubr.msk.f32.gmra.mrb[132].mxu0 %vm594_vm0, %v147_v46  ;;  %v437_v46 = vld [vmem:[%s12795_s0 + $0xd38] sm:$0xff]  ;;  %v9814_v15 = vld [vmem:[%s12796_s2] ss:$0 sm:$0xff] }
 0x115   :  { %12979 = vst [vmem:[#allocation23_spill] sm:$0xff] %v9433_v29  ;;  %12980 = vst [vmem:[#allocation24_spill] sm:$0xff] %v9439_v63  ;;  %v9442_v62 = vpop.f32.mrb[27].mxu1  ;;  %7939 = vmatmul.mubr.msk.f32.gmra.mrb[132].mxu1 %vm594_vm0, %v435_v47  ;;  %7509 = vmatprep.mubr.msk.f32.mxu0 %vm594_vm0, %v148_v28  ;;  %v150_v47 = vld [vmem:[%s12795_s0 + $0x440] sm:$0xff]  ;;  %v169_v29 = vld [vmem:[%s12795_s0 + $0x4d8] sm:$0xff] }
 0x116   :  { %12981 = vst [vmem:[#allocation25_spill] sm:$0xff] %v9442_v62  ;;  %7941 = vmatprep.mubr.msk.f32.mxu1 %vm594_vm0, %v436_v14  ;;  %v153_v14 = vld [vmem:[%s12795_s0 + $0x458] sm:$0xff] }
 0x117   :  { %v9463_v55 = vpop.f32.mrb[28].mxu0 }
 0x118   :  { %12982 = vst [vmem:[#allocation26_spill] sm:$0xff] %v9463_v55  ;;  %v9465_v28 = vpop.f32.mrb[28].mxu1  ;;  %v9471_v62 = vpop.f32.mrb[29].mxu0  ;;  %7510 = vmatmul.mubr.msk.f32.gmra.mrb[134].mxu0 %vm594_vm0, %v149_v31  ;;  %v439_v31 = vld [vmem:[%s12795_s0 + $0xd48] sm:$0xff] }
 0x119   :  { %12983 = vst [vmem:[#allocation27_spill] sm:$0xff] %v9465_v28  ;;  %12984 = vst [vmem:[#allocation28_spill] sm:$0xff] %v9471_v62  ;;  %v9474_v3 = vpop.f32.mrb[29].mxu1  ;;  %7942 = vmatmul.mubr.msk.f32.gmra.mrb[134].mxu1 %vm594_vm0, %v437_v46  ;;  %7512 = vmatprep.mubr.msk.f32.mxu0 %vm594_vm0, %v150_v47  ;;  %v152_v46 = vld [vmem:[%s12795_s0 + $0x450] sm:$0xff]  ;;  %v167_v28 = vld [vmem:[%s12795_s0 + $0x4c8] sm:$0xff] }
 0x11a   :  { %12985 = vst [vmem:[#allocation29_spill] sm:$0xff] %v9474_v3  ;;  %7944 = vmatprep.mubr.msk.f32.mxu1 %vm594_vm0, %v438_v54  ;;  %v155_v54 = vld [vmem:[%s12795_s0 + $0x468] sm:$0xff] }
 0x11b   :  { %v9495_v63 = vpop.f32.mrb[30].mxu0 }
 0x11c   :  { %12986 = vst [vmem:[#allocation30_spill] sm:$0xff] %v9495_v63  ;;  %v9497_v47 = vpop.f32.mrb[30].mxu1  ;;  %v9503_v3 = vpop.f32.mrb[31].mxu0  ;;  %7513 = vmatmul.mubr.msk.f32.gmra.mrb[136].mxu0 %vm594_vm0, %v151_v7  ;;  %v441_v7 = vld [vmem:[%s12795_s0 + $0xd58] sm:$0xff] }
 0x11d   :  { %12987 = vst [vmem:[#allocation31_spill] sm:$0xff] %v9497_v47  ;;  %12988 = vst [vmem:[#allocation32_spill] sm:$0xff] %v9503_v3  ;;  %v9506_v11 = vpop.f32.mrb[31].mxu1  ;;  %7945 = vmatmul.mubr.msk.f32.gmra.mrb[136].mxu1 %vm594_vm0, %v439_v31  ;;  %7515 = vmatprep.mubr.msk.f32.mxu0 %vm594_vm0, %v152_v46  ;;  %v154_v31 = vld [vmem:[%s12795_s0 + $0x460] sm:$0xff]  ;;  %v165_v47 = vld [vmem:[%s12795_s0 + $0x4b8] sm:$0xff] }
 0x11e   :  { %12989 = vst [vmem:[#allocation33_spill] sm:$0xff] %v9506_v11  ;;  %7947 = vmatprep.mubr.msk.f32.mxu1 %vm594_vm0, %v440_v2  ;;  %v157_v2 = vld [vmem:[%s12795_s0 + $0x478] sm:$0xff] }
 0x11f   :  { %v9527_v62 = vpop.f32.mrb[32].mxu0 }
 0x120   :  { %12990 = vst [vmem:[#allocation34_spill] sm:$0xff] %v9527_v62  ;;  %v9529_v46 = vpop.f32.mrb[32].mxu1  ;;  %v9535_v11 = vpop.f32.mrb[33].mxu0  ;;  %7516 = vmatmul.mubr.msk.f32.gmra.mrb[138].mxu0 %vm594_vm0, %v153_v14  ;;  %v443_v14 = vld [vmem:[%s12795_s0 + $0xd68] sm:$0xff] }
 0x121   :  { %12991 = vst [vmem:[#allocation35_spill] sm:$0xff] %v9529_v46  ;;  %12992 = vst [vmem:[#allocation36_spill] sm:$0xff] %v9535_v11  ;;  %v9538_v19 = vpop.f32.mrb[33].mxu1  ;;  %7948 = vmatmul.mubr.msk.f32.gmra.mrb[138].mxu1 %vm594_vm0, %v441_v7  ;;  %7518 = vmatprep.mubr.msk.f32.mxu0 %vm594_vm0, %v154_v31  ;;  %v156_v7 = vld [vmem:[%s12795_s0 + $0x470] sm:$0xff]  ;;  %v163_v46 = vld [vmem:[%s12795_s0 + $0x4a8] sm:$0xff] }
 0x122   :  { %12993 = vst [vmem:[#allocation37_spill] sm:$0xff] %v9538_v19  ;;  %7950 = vmatprep.mubr.msk.f32.mxu1 %vm594_vm0, %v442_v10 }
 0x123   :  { %v9559_v3 = vpop.f32.mrb[34].mxu0 }
 0x124   :  { %12994 = vst [vmem:[#allocation38_spill] sm:$0xff] %v9559_v3  ;;  %v9561_v31 = vpop.f32.mrb[34].mxu1  ;;  %v9567_v19 = vpop.f32.mrb[35].mxu0  ;;  %7519 = vmatmul.mubr.msk.f32.gmra.mrb[140].mxu0 %vm594_vm0, %v155_v54  ;;  %v445_v54 = vld [vmem:[%s12795_s0 + $0xd78] sm:$0xff] }
 0x125   :  { %12995 = vst [vmem:[#allocation39_spill] sm:$0xff] %v9561_v31  ;;  %12996 = vst [vmem:[#allocation40_spill] sm:$0xff] %v9567_v19  ;;  %v9570_v27 = vpop.f32.mrb[35].mxu1  ;;  %7951 = vmatmul.mubr.msk.f32.gmra.mrb[140].mxu1 %vm594_vm0, %v443_v14  ;;  %7521 = vmatprep.mubr.msk.f32.mxu0 %vm594_vm0, %v156_v7  ;;  %v158_v14 = vld [vmem:[%s12795_s0 + $0x480] sm:$0xff]  ;;  %v161_v31 = vld [vmem:[%s12795_s0 + $0x498] sm:$0xff] }
 0x126   :  { %12997 = vst [vmem:[#allocation41_spill] sm:$0xff] %v9570_v27  ;;  %7953 = vmatprep.mubr.msk.f32.mxu1 %vm594_vm0, %v444_v18  ;;  %v159_v27 = vld [vmem:[%s12795_s0 + $0x488] sm:$0xff] }
 0x127   :  { %v9591_v11 = vpop.f32.mrb[36].mxu0 }
 0x128   :  { %v9593_v7 = vpop.f32.mrb[36].mxu1  ;;  %v9595_v18 = vpop.f32.mrb[37].mxu0  ;;  %7522 = vmatmul.mubr.msk.f32.gmra.mrb[142].mxu0 %vm594_vm0, %v157_v2  ;;  %v160_v2 = vld [vmem:[%s12795_s0 + $0x490] sm:$0xff] }
 0x129   :  { %v9598_v10 = vpop.f32.mrb[37].mxu1  ;;  %7954 = vmatmul.mubr.msk.f32.gmra.mrb[142].mxu1 %vm594_vm0, %v445_v54  ;;  %7524 = vmatprep.mubr.msk.f32.mxu0 %vm594_vm0, %v158_v14  ;;  %v448_v54 = vld [vmem:[%s12795_s0 + $0xd90] sm:$0xff] }
 0x12a   :  { %7956 = vmatprep.mubr.msk.f32.mxu1 %vm594_vm0, %v446_v26 }
 0x12b   :  { %v9615_v19 = vpop.f32.mrb[38].mxu0 }
 0x12c   :  { %v9617_v14 = vpop.f32.mrb[38].mxu1  ;;  %v9619_v26 = vpop.f32.mrb[39].mxu0  ;;  %7525 = vmatmul.mubr.msk.f32.gmra.mrb[144].mxu0 %vm594_vm0, %v159_v27  ;;  %v162_v27 = vld [vmem:[%s12795_s0 + $0x4a0] sm:$0xff] }
 0x12d   :  { %v9622_v38 = vpop.f32.mrb[39].mxu1  ;;  %7957 = vmatmul.mubr.msk.f32.gmra.mrb[144].mxu1 %vm594_vm0, %v447_v39  ;;  %7527 = vmatprep.mubr.msk.f32.mxu0 %vm594_vm0, %v160_v2  ;;  %v450_v39 = vld [vmem:[%s12795_s0 + $0xda0] sm:$0xff] }
 0x12e   :  { %7959 = vmatprep.mubr.msk.f32.mxu1 %vm594_vm0, %v448_v54 }
 0x12f   :  { %v9639_v3 = vpop.f32.mrb[40].mxu0 }
 0x130   :  { %v9641_v2 = vpop.f32.mrb[40].mxu1  ;;  %v9643_v54 = vpop.f32.mrb[41].mxu0  ;;  %7528 = vmatmul.mubr.msk.f32.gmra.mrb[146].mxu0 %vm594_vm0, %v161_v31  ;;  %v164_v31 = vld [vmem:[%s12795_s0 + $0x4b0] sm:$0xff] }
 0x131   :  { %v9646_v36 = vpop.f32.mrb[41].mxu1  ;;  %7960 = vmatmul.mubr.msk.f32.gmra.mrb[146].mxu1 %vm594_vm0, %v449_v37  ;;  %7530 = vmatprep.mubr.msk.f32.mxu0 %vm594_vm0, %v162_v27  ;;  %v452_v37 = vld [vmem:[%s12795_s0 + $0xdb0] sm:$0xff] }
 0x132   :  { %7962 = vmatprep.mubr.msk.f32.mxu1 %vm594_vm0, %v450_v39 }
 0x133   :  { %v9663_v62 = vpop.f32.mrb[42].mxu0 }
 0x134   :  { %v9665_v27 = vpop.f32.mrb[42].mxu1  ;;  %v9667_v39 = vpop.f32.mrb[43].mxu0  ;;  %7531 = vmatmul.mubr.msk.f32.gmra.mrb[148].mxu0 %vm594_vm0, %v163_v46  ;;  %v166_v46 = vld [vmem:[%s12795_s0 + $0x4c0] sm:$0xff] }
 0x135   :  { %v9670_v24 = vpop.f32.mrb[43].mxu1  ;;  %7963 = vmatmul.mubr.msk.f32.gmra.mrb[148].mxu1 %vm594_vm0, %v451_v25  ;;  %7533 = vmatprep.mubr.msk.f32.mxu0 %vm594_vm0, %v164_v31  ;;  %v454_v25 = vld [vmem:[%s12795_s0 + $0xdc0] sm:$0xff] }
 0x136   :  { %7965 = vmatprep.mubr.msk.f32.mxu1 %vm594_vm0, %v452_v37 }
 0x137   :  { %v9687_v63 = vpop.f32.mrb[44].mxu0 }
 0x138   :  { %v9689_v31 = vpop.f32.mrb[44].mxu1  ;;  %v9691_v37 = vpop.f32.mrb[45].mxu0  ;;  %7534 = vmatmul.mubr.msk.f32.gmra.mrb[150].mxu0 %vm594_vm0, %v165_v47  ;;  %v168_v47 = vld [vmem:[%s12795_s0 + $0x4d0] sm:$0xff] }
 0x139   :  { %v9694_v16 = vpop.f32.mrb[45].mxu1  ;;  %7966 = vmatmul.mubr.msk.f32.gmra.mrb[150].mxu1 %vm594_vm0, %v453_v17  ;;  %7536 = vmatprep.mubr.msk.f32.mxu0 %vm594_vm0, %v166_v46  ;;  %v456_v17 = vld [vmem:[%s12795_s0 + $0xdd0] sm:$0xff] }
 0x13a   :  { %12998 = vst [vmem:[#allocation42_spill] sm:$0xff] %v9694_v16  ;;  %7968 = vmatprep.mubr.msk.f32.mxu1 %vm594_vm0, %v454_v25 }
 0x13b   :  { %v9711_v55 = vpop.f32.mrb[46].mxu0 }
 0x13c   :  { %12999 = vst [vmem:[#allocation43_spill] sm:$0xff] %v9711_v55  ;;  %v9713_v46 = vpop.f32.mrb[46].mxu1  ;;  %v9715_v25 = vpop.f32.mrb[47].mxu0  ;;  %7537 = vmatmul.mubr.msk.f32.gmra.mrb[152].mxu0 %vm594_vm0, %v167_v28  ;;  %v170_v28 = vld [vmem:[%s12795_s0 + $0x4e0] sm:$0xff]  ;;  %v171_v55 = vld [vmem:[%s12795_s0 + $0x4e8] sm:$0xff] }
 0x13d   :  { %13000 = vst [vmem:[#allocation44_spill] sm:$0xff] %v9713_v46  ;;  %13001 = vst [vmem:[#allocation45_spill] sm:$0xff] %v9715_v25  ;;  %v9718_v8 = vpop.f32.mrb[47].mxu1  ;;  %7969 = vmatmul.mubr.msk.f32.gmra.mrb[152].mxu1 %vm594_vm0, %v455_v9  ;;  %7539 = vmatprep.mubr.msk.f32.mxu0 %vm594_vm0, %v168_v47  ;;  %v457_v46 = vld [vmem:[%s12795_s0 + $0xdd8] sm:$0xff]  ;;  %v458_v9 = vld [vmem:[%s12795_s0 + $0xde0] sm:$0xff] }
 0x13e   :  { %13002 = vst [vmem:[#allocation46_spill] sm:$0xff] %v9718_v8  ;;  %7971 = vmatprep.mubr.msk.f32.mxu1 %vm594_vm0, %v456_v17 }
 0x13f   :  { %v9735_v8 = vpop.f32.mrb[48].mxu0 }
 0x140   :  { %13003 = vst [vmem:[#allocation47_spill] sm:$0xff] %v9735_v8  ;;  %v9737_v47 = vpop.f32.mrb[48].mxu1  ;;  %v9739_v17 = vpop.f32.mrb[49].mxu0  ;;  %7540 = vmatmul.mubr.msk.f32.gmra.mrb[154].mxu0 %vm594_vm0, %v169_v29  ;;  %v172_v29 = vld [vmem:[%s12795_s0 + $0x4f0] sm:$0xff]  ;;  %v173_v8 = vld [vmem:[%s12795_s0 + $0x4f8] sm:$0xff] }
 0x141   :  { %13004 = vst [vmem:[#allocation48_spill] sm:$0xff] %v9737_v47  ;;  %13005 = vst [vmem:[#allocation49_spill] sm:$0xff] %v9739_v17  ;;  %v9742_v25 = vpop.f32.mrb[49].mxu1  ;;  %7972 = vmatmul.mubr.msk.f32.gmra.mrb[154].mxu1 %vm594_vm0, %v457_v46  ;;  %7542 = vmatprep.mubr.msk.f32.mxu0 %vm594_vm0, %v170_v28  ;;  %v459_v47 = vld [vmem:[%s12795_s0 + $0xde8] sm:$0xff]  ;;  %v460_v46 = vld [vmem:[%s12795_s0 + $0xdf0] sm:$0xff] }
 0x142   :  { %13006 = vst [vmem:[#allocation50_spill] sm:$0xff] %v9742_v25  ;;  %7974 = vmatprep.mubr.msk.f32.mxu1 %vm594_vm0, %v458_v9 }
 0x143   :  { %v9759_v25 = vpop.f32.mrb[50].mxu0 }
 0x144   :  { %13007 = vst [vmem:[#allocation51_spill] sm:$0xff] %v9759_v25  ;;  %v9761_v28 = vpop.f32.mrb[50].mxu1  ;;  %v9763_v9 = vpop.f32.mrb[51].mxu0  ;;  %7543 = vmatmul.mubr.msk.f32.gmra.mrb[156].mxu0 %vm594_vm0, %v171_v55  ;;  %v174_v55 = vld [vmem:[%s12795_s0 + $0x500] sm:$0xff]  ;;  %v175_v25 = vld [vmem:[%s12795_s0 + $0x508] sm:$0xff] }
 0x145   :  { %13008 = vst [vmem:[#allocation52_spill] sm:$0xff] %v9761_v28  ;;  %13009 = vst [vmem:[#allocation53_spill] sm:$0xff] %v9763_v9  ;;  %v9766_v17 = vpop.f32.mrb[51].mxu1  ;;  %7975 = vmatmul.mubr.msk.f32.gmra.mrb[156].mxu1 %vm594_vm0, %v459_v47  ;;  %7545 = vmatprep.mubr.msk.f32.mxu0 %vm594_vm0, %v172_v29  ;;  %v461_v28 = vld [vmem:[%s12795_s0 + $0xdf8] sm:$0xff]  ;;  %v462_v47 = vld [vmem:[%s12795_s0 + $0xe00] sm:$0xff] }
 0x146   :  { %13010 = vst [vmem:[#allocation54_spill] sm:$0xff] %v9766_v17  ;;  %7977 = vmatprep.mubr.msk.f32.mxu1 %vm594_vm0, %v460_v46 }
 0x147   :  { %v9783_v17 = vpop.f32.mrb[52].mxu0 }
 0x148   :  { %13011 = vst [vmem:[#allocation55_spill] sm:$0xff] %v9783_v17  ;;  %v9785_v29 = vpop.f32.mrb[52].mxu1  ;;  %v9787_v46 = vpop.f32.mrb[53].mxu0  ;;  %7546 = vmatmul.mubr.msk.f32.gmra.mrb[158].mxu0 %vm594_vm0, %v173_v8  ;;  %v176_v8 = vld [vmem:[%s12795_s0 + $0x510] sm:$0xff] }
 0x149   :  { %13012 = vst [vmem:[#allocation56_spill] sm:$0xff] %v9785_v29  ;;  %13013 = vst [vmem:[#allocation57_spill] sm:$0xff] %v9787_v46  ;;  %v9790_v9 = vpop.f32.mrb[53].mxu1  ;;  %7978 = vmatmul.mubr.msk.f32.gmra.mrb[158].mxu1 %vm594_vm0, %v461_v28  ;;  %7548 = vmatprep.mubr.msk.f32.mxu0 %vm594_vm0, %v174_v55  ;;  %v463_v29 = vld [vmem:[%s12795_s0 + $0xe08] sm:$0xff]  ;;  %v464_v28 = vld [vmem:[%s12795_s0 + $0xe10] sm:$0xff] }
 0x14a   :  { %13014 = vst [vmem:[#allocation58_spill] sm:$0xff] %v9790_v9  ;;  %7980 = vmatprep.mubr.msk.f32.mxu1 %vm594_vm0, %v462_v47 }
 0x14b   :  { %v7391_v9 = vpop.f32.mrb[54].mxu0 }
 0x14c   :  { %v7823_v55 = vpop.f32.mrb[54].mxu1  ;;  %v5413_v47 = vmax.f32 %v9591_v11, %v7391_v9  ;;  %v2659_v17 = vpop.f32.mrb[55].mxu0  ;;  %7549 = vmatmul.mubr.msk.f32.gmra.mrb[160].mxu0 %vm594_vm0, %v175_v25  ;;  %v177_v11 = vld [vmem:[%s12795_s0 + $0x518] sm:$0xff]  ;;  %v13016_v9 = vmax.f32 %v9089_v33, %v9305_v53  ;;  %v466_v33 = vld [vmem:[%s12795_s0 + $0xe20] sm:$0xff] }
 0x14d   :  { %v5485_v46 = vmax.f32 %v9593_v7, %v7823_v55  ;;  %v4099_v1 = vpop.f32.mrb[55].mxu1  ;;  %7981 = vmatmul.mubr.msk.f32.gmra.mrb[160].mxu1 %vm594_vm0, %v463_v29  ;;  %v5412_v0 = vmax.f32 %v9595_v18, %v2659_v17  ;;  %7551 = vmatprep.mubr.msk.f32.mxu0 %vm594_vm0, %v176_v8  ;;  %v13015_v7 = vmax.f32 %v9087_v32, %v9303_v52  ;;  %v178_v32 = vld [vmem:[%s12795_s0 + $0x520] sm:$0xff] }
 0x14e   :  { %v5484_v16 = vmax.f32 %v9598_v10, %v4099_v1  ;;  %7983 = vmatprep.mubr.msk.f32.mxu1 %vm594_vm0, %v464_v28  ;;  %v465_v1 = vld [vmem:[%s12795_s0 + $0xe18] sm:$0xff]  ;;  %v13017_v10 = vmax.f32 %v9091_v34, %v9311_v60  ;;  %v13018_v17 = vmax.f32 %v9094_v35, %v9314_v61 }
 0x14f   :  { %v5557_v25 = vmax.f32 %v13015_v7, %v5413_v47  ;;  %v5629_v29 = vmax.f32 %v13016_v9, %v5485_v46  ;;  %v7394_v28 = vpop.f32.mrb[56].mxu0  ;;  %v13020_v9 = vmax.f32 %v9113_v41, %v9337_v13 }
 0x150   :  { %v5556_v18 = vmax.f32 %v13017_v10, %v5412_v0  ;;  %v5628_v8 = vmax.f32 %v13018_v17, %v5484_v16  ;;  %v7826_v55 = vpop.f32.mrb[56].mxu1  ;;  %v5415_v34 = vmax.f32 %v9615_v19, %v7394_v28  ;;  %v2669_v35 = vpop.f32.mrb[57].mxu0  ;;  %7552 = vmatmul.mubr.msk.f32.gmra.mrb[162].mxu0 %vm594_vm0, %v177_v11  ;;  %v179_v19 = vld [vmem:[%s12795_s0 + $0x528] sm:$0xff]  ;;  %v13019_v11 = vmax.f32 %v9111_v40, %v9335_v12  ;;  %v180_v17 = vld [vmem:[%s12795_s0 + $0x530] sm:$0xff] }
 0x151   :  { %v5708_v52 = vadd.f32 %v9814_v15, %v5557_v25  ;;  %v5780_v53 = vadd.f32 %v9814_v15, %v5629_v29  ;;  %v5487_v0 = vmax.f32 %v9617_v14, %v7826_v55  ;;  %v4109_v16 = vpop.f32.mrb[57].mxu1  ;;  %v5414_v46 = vmax.f32 %v9619_v26, %v2669_v35  ;;  %7984 = vmatmul.mubr.msk.f32.gmra.mrb[162].mxu1 %vm594_vm0, %v465_v1 }
 0x152   :  { %v5707_v60 = vadd.f32 %v9814_v15, %v5556_v18  ;;  %v5779_v61 = vadd.f32 %v9814_v15, %v5628_v8  ;;  %v5486_v47 = vmax.f32 %v9622_v38, %v4109_v16  ;;  %v5559_v25 = vmax.f32 %v13019_v11, %v5415_v34  ;;  %7554 = vmatprep.mubr.msk.f32.mxu0 %vm594_vm0, %v178_v32  ;;  %v467_v38 = vld [vmem:[%s12795_s0 + $0xe28] sm:$0xff]  ;;  %v468_v8 = vld [vmem:[%s12795_s0 + $0xe30] sm:$0xff] }
 0x153   :  { %v5852_v7 = vmax.f32 %v5708_v52, 0.0  ;;  %v5924_v14 = vmax.f32 %v5780_v53, 0.0  ;;  %v5631_v29 = vmax.f32 %v13020_v9, %v5487_v0  ;;  %7986 = vmatprep.mubr.msk.f32.mxu1 %vm594_vm0, %v466_v33  ;;  %v13021_v10 = vmax.f32 %v9115_v42, %v9343_v20  ;;  %v7397_v41 = vpop.f32.mrb[58].mxu0  ;;  %v181_v52 = vld [vmem:[%s12795_s0 + $0x538] sm:$0xff] }
 0x154   :  { %v5851_v26 = vmax.f32 %v5707_v60, 0.0  ;;  %v5923_v1 = vmax.f32 %v5779_v61, 0.0  ;;  %v13022_v40 = vmax.f32 %v9118_v43, %v9346_v21  ;;  %v7829_v13 = vpop.f32.mrb[58].mxu1  ;;  %v5710_v42 = vadd.f32 %v9814_v15, %v5559_v25  ;;  %v2679_v28 = vpop.f32.mrb[59].mxu0  ;;  %7555 = vmatmul.mubr.msk.f32.gmra.mrb[164].mxu0 %vm594_vm0, %v179_v19  ;;  %v182_v19 = vld [vmem:[%s12795_s0 + $0x540] sm:$0xff] }
 0x155   :  { %v5558_v18 = vmax.f32 %v13021_v10, %v5414_v46  ;;  %5996 = vst [vmem:[%s12797_s3 + $0x8] sm:$0xff] %v5852_v7  ;;  %6068 = vst [vmem:[%s12797_s3 + $0x248] sm:$0xff] %v5924_v14  ;;  %v5782_v43 = vadd.f32 %v9814_v15, %v5631_v29  ;;  %v5417_v20 = vmax.f32 %v9639_v3, %v7397_v41  ;;  %v4119_v55 = vpop.f32.mrb[59].mxu1  ;;  %7987 = vmatmul.mubr.msk.f32.gmra.mrb[164].mxu1 %vm594_vm0, %v467_v38  ;;  %v470_v7 = vld [vmem:[%s12795_s0 + $0xe40] sm:$0xff]  ;;  %v183_v29 = vld [vmem:[%s12795_s0 + $0x548] sm:$0xff] }
 0x156   :  { %v5630_v12 = vmax.f32 %v13022_v40, %v5486_v47  ;;  %v5489_v21 = vmax.f32 %v9641_v2, %v7829_v13  ;;  %5995 = vst [vmem:[%s12797_s3] sm:$0xff] %v5851_v26  ;;  %6067 = vst [vmem:[%s12797_s3 + $0x240] sm:$0xff] %v5923_v1  ;;  %v5416_v3 = vmax.f32 %v9643_v54, %v2679_v28  ;;  %v5854_v53 = vmax.f32 %v5710_v42, 0.0  ;;  %v13031_v28 = vld [vmem:[#allocation42_spill] sm:$0xff] }
 0x157   :  { %v5709_v32 = vadd.f32 %v9814_v15, %v5558_v18  ;;  %v5488_v2 = vmax.f32 %v9646_v36, %v4119_v55  ;;  %v5926_v34 = vmax.f32 %v5782_v43, 0.0  ;;  %v13023_v0 = vmax.f32 %v9135_v48, %v9367_v44  ;;  %7557 = vmatprep.mubr.msk.f32.mxu0 %vm594_vm0, %v180_v17  ;;  %7989 = vmatprep.mubr.msk.f32.mxu1 %vm594_vm0, %v468_v8  ;;  %v469_v36 = vld [vmem:[%s12795_s0 + $0xe38] sm:$0xff]  ;;  %v184_v17 = vld [vmem:[%s12795_s0 + $0x550] sm:$0xff] }
 0x158   :  { %v5781_v33 = vadd.f32 %v9814_v15, %v5630_v12  ;;  %v13024_v16 = vmax.f32 %v9137_v49, %v9369_v45  ;;  %v13025_v46 = vmax.f32 %v9139_v50, %v9375_v4  ;;  %v13026_v48 = vmax.f32 %v9142_v51, %v9378_v5  ;;  %v7400_v49 = vpop.f32.mrb[60].mxu0  ;;  %v7832_v45 = vpop.f32.mrb[60].mxu1  ;;  %5998 = vst [vmem:[%s12797_s3 + $0x18] sm:$0xff] %v5854_v53  ;;  %v472_v8 = vld [vmem:[%s12795_s0 + $0xe50] sm:$0xff]  ;;  %v185_v55 = vld [vmem:[%s12795_s0 + $0x558] sm:$0xff] }
 0x159   :  { %v5561_v35 = vmax.f32 %v13023_v0, %v5417_v20  ;;  %v5853_v54 = vmax.f32 %v5709_v32, 0.0  ;;  %6070 = vst [vmem:[%s12797_s3 + $0x258] sm:$0xff] %v5926_v34  ;;  %v5419_v4 = vmax.f32 %v9663_v62, %v7400_v49  ;;  %v5491_v5 = vmax.f32 %v9665_v27, %v7832_v45  ;;  %v2689_v14 = vpop.f32.mrb[61].mxu0  ;;  %7558 = vmatmul.mubr.msk.f32.gmra.mrb[166].mxu0 %vm594_vm0, %v181_v52  ;;  %v4129_v11 = vpop.f32.mrb[61].mxu1  ;;  %v13035_v34 = vld [vmem:[#allocation3_spill] sm:$0xff] }
 0x15a   :  { %v5633_v60 = vmax.f32 %v13024_v16, %v5489_v21  ;;  %v5925_v61 = vmax.f32 %v5781_v33, 0.0  ;;  %v5560_v47 = vmax.f32 %v13025_v46, %v5416_v3  ;;  %v5632_v44 = vmax.f32 %v13026_v48, %v5488_v2  ;;  %7990 = vmatmul.mubr.msk.f32.gmra.mrb[166].mxu1 %vm594_vm0, %v469_v36  ;;  %7560 = vmatprep.mubr.msk.f32.mxu0 %vm594_vm0, %v182_v19  ;;  %v13032_v3 = vld [vmem:[#allocation2_spill] sm:$0xff]  ;;  %v13036_v0 = vld [vmem:[#allocation23_spill] sm:$0xff]  ;;  %v13041_v48 = vld [vmem:[#allocation5_spill] sm:$0xff] }
 0x15b   :  { %v5712_v50 = vadd.f32 %v9814_v15, %v5561_v35  ;;  %5997 = vst [vmem:[%s12797_s3 + $0x10] sm:$0xff] %v5853_v54  ;;  %v5418_v62 = vmax.f32 %v9667_v39, %v2689_v14  ;;  %v5490_v27 = vmax.f32 %v9670_v24, %v4129_v11  ;;  %v13027_v1 = vmax.f32 %v9159_v56, %v9399_v6  ;;  %v471_v24 = vld [vmem:[%s12795_s0 + $0xe48] sm:$0xff]  ;;  %v13033_v2 = vld [vmem:[#allocation22_spill] sm:$0xff]  ;;  %v13038_v54 = vld [vmem:[#allocation4_spill] sm:$0xff] }
 0x15c   :  { %v5784_v51 = vadd.f32 %v9814_v15, %v5633_v60  ;;  %6069 = vst [vmem:[%s12797_s3 + $0x250] sm:$0xff] %v5925_v61  ;;  %v5711_v25 = vadd.f32 %v9814_v15, %v5560_v47  ;;  %v5783_v9 = vadd.f32 %v9814_v15, %v5632_v44  ;;  %v13028_v18 = vmax.f32 %v9161_v57, %v9401_v30  ;;  %v7403_v57 = vpop.f32.mrb[62].mxu0  ;;  %v7835_v30 = vpop.f32.mrb[62].mxu1  ;;  %v13039_v61 = vld [vmem:[#allocation24_spill] sm:$0xff]  ;;  %v13042_v44 = vld [vmem:[#allocation25_spill] sm:$0xff]  ;;  %v13044_v14 = vld [vmem:[#allocation43_spill] sm:$0xff] }
 0x15d   :  { %v5856_v38 = vmax.f32 %v5712_v50, 0.0  ;;  %v5563_v10 = vmax.f32 %v13027_v1, %v5419_v4  ;;  %7992 = vmatprep.mubr.msk.f32.mxu1 %vm594_vm0, %v470_v7  ;;  %v13029_v41 = vmax.f32 %v9163_v58, %v9407_v23  ;;  %v13030_v56 = vmax.f32 %v9166_v59, %v9410_v22  ;;  %v2699_v42 = vpop.f32.mrb[63].mxu0  ;;  %7561 = vmatmul.mubr.msk.f32.gmra.mrb[168].mxu0 %vm594_vm0, %v183_v29  ;;  %v4139_v43 = vpop.f32.mrb[63].mxu1  ;;  %v186_v50 = vld [vmem:[%s12795_s0 + $0x560] sm:$0xff] }
 0x15e   :  { %v5928_v26 = vmax.f32 %v5784_v51, 0.0  ;;  %v5635_v40 = vmax.f32 %v13028_v18, %v5491_v5  ;;  %v5855_v39 = vmax.f32 %v5711_v25, 0.0  ;;  %v5927_v12 = vmax.f32 %v5783_v9, 0.0  ;;  %7993 = vmatmul.mubr.msk.f32.gmra.mrb[168].mxu1 %vm594_vm0, %v471_v24  ;;  %7563 = vmatprep.mubr.msk.f32.mxu0 %vm594_vm0, %v184_v17  ;;  %v474_v51 = vld [vmem:[%s12795_s0 + $0xe60] sm:$0xff]  ;;  %v13045_v25 = vld [vmem:[#allocation44_spill] sm:$0xff] }
 0x15f   :  { %v5562_v13 = vmax.f32 %v13029_v41, %v5418_v62  ;;  %v5634_v6 = vmax.f32 %v13030_v56, %v5490_v27  ;;  %6000 = vst [vmem:[%s12797_s3 + $0x28] sm:$0xff] %v5856_v38  ;;  %v5714_v58 = vadd.f32 %v9814_v15, %v5563_v10  ;;  %v5421_v22 = vmax.f32 %v9687_v63, %v7403_v57  ;;  %v7406_v19 = vpop.f32.mrb[64].mxu0  ;;  %v13047_v10 = vld [vmem:[#allocation46_spill] sm:$0xff]  ;;  %v13052_v57 = vld [vmem:[#allocation27_spill] sm:$0xff] }
 0x160   :  { %6072 = vst [vmem:[%s12797_s3 + $0x268] sm:$0xff] %v5928_v26  ;;  %v5786_v59 = vadd.f32 %v9814_v15, %v5635_v40  ;;  %v5493_v23 = vmax.f32 %v9689_v31, %v7835_v30  ;;  %5999 = vst [vmem:[%s12797_s3 + $0x20] sm:$0xff] %v5855_v39  ;;  %v5420_v63 = vmax.f32 %v9691_v37, %v2699_v42  ;;  %7995 = vmatprep.mubr.msk.f32.mxu1 %vm594_vm0, %v472_v8  ;;  %v473_v37 = vld [vmem:[%s12795_s0 + $0xe58] sm:$0xff]  ;;  %v7838_v7 = vpop.f32.mrb[64].mxu1  ;;  %v2709_v62 = vpop.f32.mrb[65].mxu0  ;;  %v187_v40 = vld [vmem:[%s12795_s0 + $0x568] sm:$0xff] }
 0x161   :  { %6071 = vst [vmem:[%s12797_s3 + $0x260] sm:$0xff] %v5927_v12  ;;  %v5713_v20 = vadd.f32 %v9814_v15, %v5562_v13  ;;  %v5785_v21 = vadd.f32 %v9814_v15, %v5634_v6  ;;  %v5492_v31 = vmax.f32 %v13031_v28, %v4139_v43  ;;  %v5858_v32 = vmax.f32 %v5714_v58, 0.0  ;;  %7564 = vmatmul.mubr.msk.f32.gmra.mrb[170].mxu0 %vm594_vm0, %v185_v55  ;;  %v4149_v27 = vpop.f32.mrb[65].mxu1  ;;  %v13046_v26 = vld [vmem:[#allocation45_spill] sm:$0xff]  ;;  %v13048_v12 = vld [vmem:[#allocation6_spill] sm:$0xff]  ;;  %v13051_v6 = vld [vmem:[#allocation7_spill] sm:$0xff] }
 0x162   :  { %v5930_v33 = vmax.f32 %v5786_v59, 0.0  ;;  %v13034_v52 = vmax.f32 %v13032_v3, %v13033_v2  ;;  %v13037_v35 = vmax.f32 %v13035_v34, %v13036_v0  ;;  %v13040_v46 = vmax.f32 %v13038_v54, %v13039_v61  ;;  %7996 = vmatmul.mubr.msk.f32.gmra.mrb[170].mxu1 %vm594_vm0, %v473_v37  ;;  %v13049_v41 = vld [vmem:[#allocation26_spill] sm:$0xff]  ;;  %7566 = vmatprep.mubr.msk.f32.mxu0 %vm594_vm0, %v186_v50  ;;  %v475_v8 = vld [vmem:[%s12795_s0 + $0xe68] sm:$0xff]  ;;  %v13061_v34 = vld [vmem:[#allocation48_spill] sm:$0xff] }
 0x163   :  { %v5857_v60 = vmax.f32 %v5713_v20, 0.0  ;;  %v5929_v36 = vmax.f32 %v5785_v21, 0.0  ;;  %v13043_v49 = vmax.f32 %v13041_v48, %v13042_v44  ;;  %6002 = vst [vmem:[%s12797_s3 + $0x38] sm:$0xff] %v5858_v32  ;;  %v5423_v11 = vmax.f32 %v13044_v14, %v7406_v19  ;;  %7998 = vmatprep.mubr.msk.f32.mxu1 %vm594_vm0, %v474_v51  ;;  %v13057_v20 = vld [vmem:[#allocation9_spill] sm:$0xff]  ;;  %v188_v32 = vld [vmem:[%s12795_s0 + $0x570] sm:$0xff]  ;;  %v13063_v61 = vld [vmem:[#allocation50_spill] sm:$0xff] }
 0x164   :  { %v5565_v53 = vmax.f32 %v13034_v52, %v5421_v22  ;;  %v5637_v16 = vmax.f32 %v13037_v35, %v5493_v23  ;;  %v5564_v47 = vmax.f32 %v13040_v46, %v5420_v63  ;;  %6074 = vst [vmem:[%s12797_s3 + $0x278] sm:$0xff] %v5930_v33  ;;  %v5495_v9 = vmax.f32 %v13045_v25, %v7838_v7  ;;  %v13054_v22 = vld [vmem:[#allocation8_spill] sm:$0xff]  ;;  %v13058_v21 = vld [vmem:[#allocation29_spill] sm:$0xff]  ;;  %v7841_v55 = vpop.f32.mrb[66].mxu1  ;;  %v13060_v52 = vld [vmem:[#allocation47_spill] sm:$0xff] }
 0x165   :  { %v5636_v45 = vmax.f32 %v13043_v49, %v5492_v31  ;;  %6001 = vst [vmem:[%s12797_s3 + $0x30] sm:$0xff] %v5857_v60  ;;  %6073 = vst [vmem:[%s12797_s3 + $0x270] sm:$0xff] %v5929_v36  ;;  %v5422_v1 = vmax.f32 %v13046_v26, %v2709_v62  ;;  %v5494_v18 = vmax.f32 %v13047_v10, %v4149_v27  ;;  %v13055_v23 = vld [vmem:[#allocation28_spill] sm:$0xff]  ;;  %v7409_v31 = vpop.f32.mrb[66].mxu0  ;;  %7567 = vmatmul.mubr.msk.f32.gmra.mrb[172].mxu0 %vm594_vm0, %v187_v40  ;;  %v13062_v36 = vld [vmem:[#allocation49_spill] sm:$0xff] }
 0x166   :  { %v5716_v4 = vadd.f32 %v9814_v15, %v5565_v53  ;;  %v5788_v5 = vadd.f32 %v9814_v15, %v5637_v16  ;;  %v5715_v29 = vadd.f32 %v9814_v15, %v5564_v47  ;;  %v13050_v13 = vmax.f32 %v13048_v12, %v13049_v41  ;;  %v476_v33 = vld [vmem:[%s12795_s0 + $0xe70] sm:$0xff]  ;;  %v2719_v35 = vpop.f32.mrb[67].mxu0  ;;  %v4159_v16 = vpop.f32.mrb[67].mxu1  ;;  %7999 = vmatmul.mubr.msk.f32.gmra.mrb[172].mxu1 %vm594_vm0, %v475_v8  ;;  %v189_v47 = vld [vmem:[%s12795_s0 + $0x578] sm:$0xff]  ;;  %v13064_v49 = vld [vmem:[#allocation10_spill] sm:$0xff] }
 0x167   :  { %v5787_v38 = vadd.f32 %v9814_v15, %v5636_v45  ;;  %v13053_v30 = vmax.f32 %v13051_v6, %v13052_v57  ;;  %v13056_v42 = vmax.f32 %v13054_v22, %v13055_v23  ;;  %v13059_v63 = vmax.f32 %v13057_v20, %v13058_v21  ;;  %v13065_v45 = vld [vmem:[#allocation30_spill] sm:$0xff]  ;;  %v13067_v50 = vld [vmem:[#allocation11_spill] sm:$0xff]  ;;  %7569 = vmatprep.mubr.msk.f32.mxu0 %vm594_vm0, %v188_v32  ;;  %v477_v14 = vld [vmem:[%s12795_s0 + $0xe78] sm:$0xff] }
 0x168   :  { %v5860_v24 = vmax.f32 %v5716_v4, 0.0  ;;  %v5932_v39 = vmax.f32 %v5788_v5, 0.0  ;;  %v5567_v56 = vmax.f32 %v13050_v13, %v5423_v11  ;;  %v5859_v58 = vmax.f32 %v5715_v29, 0.0  ;;  %v13068_v51 = vld [vmem:[#allocation31_spill] sm:$0xff]  ;;  %8001 = vmatprep.mubr.msk.f32.mxu1 %vm594_vm0, %v476_v33  ;;  %v13071_v62 = vld [vmem:[#allocation32_spill] sm:$0xff]  ;;  %v13074_v26 = vld [vmem:[#allocation33_spill] sm:$0xff] }
 0x169   :  { %v5639_v17 = vmax.f32 %v13053_v30, %v5495_v9  ;;  %v5931_v59 = vmax.f32 %v5787_v38, 0.0  ;;  %v5566_v43 = vmax.f32 %v13056_v42, %v5422_v1  ;;  %v5638_v28 = vmax.f32 %v13059_v63, %v5494_v18  ;;  %v13070_v9 = vld [vmem:[#allocation12_spill] sm:$0xff]  ;;  %v13073_v38 = vld [vmem:[#allocation13_spill] sm:$0xff]  ;;  %v7412_v18 = vpop.f32.mrb[68].mxu0  ;;  %v7844_v40 = vpop.f32.mrb[68].mxu1  ;;  %v13076_v13 = vld [vmem:[#allocation51_spill] sm:$0xff]  ;;  %7570 = vmatmul.mubr.msk.f32.gmra.mrb[174].mxu0 %vm594_vm0, %v189_v47 }
 0x16a   :  { %6004 = vst [vmem:[%s12797_s3 + $0x48] sm:$0xff] %v5860_v24  ;;  %6076 = vst [vmem:[%s12797_s3 + $0x288] sm:$0xff] %v5932_v39  ;;  %v5718_v3 = vadd.f32 %v9814_v15, %v5567_v56  ;;  %v5425_v53 = vmax.f32 %v13060_v52, %v7409_v31  ;;  %v5497_v0 = vmax.f32 %v13061_v34, %v7841_v55  ;;  %v190_v24 = vld [vmem:[%s12795_s0 + $0x580] sm:$0xff]  ;;  %v13077_v6 = vld [vmem:[#allocation52_spill] sm:$0xff]  ;;  %v2729_v30 = vpop.f32.mrb[69].mxu0  ;;  %8002 = vmatmul.mubr.msk.f32.gmra.mrb[174].mxu1 %vm594_vm0, %v477_v14 }
 0x16b   :  { %v5790_v2 = vadd.f32 %v9814_v15, %v5639_v17  ;;  %6003 = vst [vmem:[%s12797_s3 + $0x40] sm:$0xff] %v5859_v58  ;;  %6075 = vst [vmem:[%s12797_s3 + $0x280] sm:$0xff] %v5931_v59  ;;  %v5717_v37 = vadd.f32 %v9814_v15, %v5566_v43  ;;  %v5789_v60 = vadd.f32 %v9814_v15, %v5638_v28  ;;  %v478_v39 = vld [vmem:[%s12795_s0 + $0xe80] sm:$0xff]  ;;  %v4169_v17 = vpop.f32.mrb[69].mxu1  ;;  %v13078_v59 = vld [vmem:[#allocation53_spill] sm:$0xff]  ;;  %7572 = vmatprep.mubr.msk.f32.mxu0 %vm594_vm0, %v190_v24 }
 0x16c   :  { %v5424_v54 = vmax.f32 %v13062_v36, %v2719_v35  ;;  %v5496_v46 = vmax.f32 %v13063_v61, %v4159_v16  ;;  %v5862_v48 = vmax.f32 %v5718_v3, 0.0  ;;  %v13066_v19 = vmax.f32 %v13064_v49, %v13065_v45  ;;  %v13079_v23 = vld [vmem:[#allocation54_spill] sm:$0xff]  ;;  %v191_v43 = vld [vmem:[%s12795_s0 + $0x588] sm:$0xff]  ;;  %8004 = vmatprep.mubr.msk.f32.mxu1 %vm594_vm0, %v478_v39  ;;  %v13087_v35 = vld [vmem:[#allocation36_spill] sm:$0xff]  ;;  %v7847_v47 = vpop.f32.mrb[70].mxu1 }
 0x16d   :  { %v5934_v44 = vmax.f32 %v5790_v2, 0.0  ;;  %v13069_v4 = vmax.f32 %v13067_v50, %v13068_v51  ;;  %v5861_v11 = vmax.f32 %v5717_v37, 0.0  ;;  %v5933_v25 = vmax.f32 %v5789_v60, 0.0  ;;  %v13080_v63 = vld [vmem:[#allocation14_spill] sm:$0xff]  ;;  %v13083_v32 = vld [vmem:[#allocation15_spill] sm:$0xff]  ;;  %v13089_v60 = vld [vmem:[#allocation17_spill] sm:$0xff]  ;;  %7573 = vmatmul.mubr.msk.f32.gmra.mrb[176].mxu0 %vm594_vm0, %v191_v43 }
 0x16e   :  { %v5569_v7 = vmax.f32 %v13066_v19, %v5425_v53  ;;  %v13072_v27 = vmax.f32 %v13070_v9, %v13071_v62  ;;  %v13075_v1 = vmax.f32 %v13073_v38, %v13074_v26  ;;  %6006 = vst [vmem:[%s12797_s3 + $0x58] sm:$0xff] %v5862_v48  ;;  %v5427_v56 = vmax.f32 %v13076_v13, %v7412_v18  ;;  %v13081_v28 = vld [vmem:[#allocation34_spill] sm:$0xff]  ;;  %v13084_v33 = vld [vmem:[#allocation35_spill] sm:$0xff]  ;;  %v13090_v36 = vld [vmem:[#allocation37_spill] sm:$0xff] }
 0x16f   :  { %v5641_v5 = vmax.f32 %v13069_v4, %v5497_v0  ;;  %6078 = vst [vmem:[%s12797_s3 + $0x298] sm:$0xff] %v5934_v44  ;;  %v5499_v57 = vmax.f32 %v13077_v6, %v7844_v40  ;;  %6005 = vst [vmem:[%s12797_s3 + $0x50] sm:$0xff] %v5861_v11  ;;  %v5426_v22 = vmax.f32 %v13078_v59, %v2729_v30  ;;  %v479_v52 = vld [vmem:[%s12795_s0 + $0xe88] sm:$0xff]  ;;  %v13086_v0 = vld [vmem:[#allocation16_spill] sm:$0xff] }
 0x170   :  { %v5568_v29 = vmax.f32 %v13072_v27, %v5424_v54  ;;  %v5640_v10 = vmax.f32 %v13075_v1, %v5496_v46  ;;  %v5720_v12 = vadd.f32 %v9814_v15, %v5569_v7  ;;  %6077 = vst [vmem:[%s12797_s3 + $0x290] sm:$0xff] %v5933_v25  ;;  %v5498_v42 = vmax.f32 %v13079_v23, %v4169_v17  ;;  %v7415_v46 = vpop.f32.mrb[70].mxu0  ;;  %v192_v48 = vld [vmem:[%s12795_s0 + $0x590] sm:$0xff]  ;;  %v13092_v19 = vld [vmem:[#allocation55_spill] sm:$0xff]  ;;  %v13094_v25 = vld [vmem:[#allocation57_spill] sm:$0xff] }
 0x171   :  { %v5792_v41 = vadd.f32 %v9814_v15, %v5641_v5  ;;  %v13082_v31 = vmax.f32 %v13080_v63, %v13081_v28  ;;  %v13085_v3 = vmax.f32 %v13083_v32, %v13084_v33  ;;  %v13088_v16 = vmax.f32 %v13086_v0, %v13087_v35  ;;  %v480_v44 = vld [vmem:[%s12795_s0 + $0xe90] sm:$0xff]  ;;  %v2739_v4 = vpop.f32.mrb[71].mxu0  ;;  %v4179_v5 = vpop.f32.mrb[71].mxu1  ;;  %v13095_v62 = vld [vmem:[#allocation58_spill] sm:$0xff]  ;;  %8005 = vmatmul.mubr.msk.f32.gmra.mrb[176].mxu1 %vm594_vm0, %v479_v52  ;;  %v13099_v24 = vld [vmem:[#allocation19_spill] sm:$0xff] }
 0x172   :  { %v5719_v8 = vadd.f32 %v9814_v15, %v5568_v29  ;;  %v5791_v58 = vadd.f32 %v9814_v15, %v5640_v10  ;;  %v5864_v20 = vmax.f32 %v5720_v12, 0.0  ;;  %v13091_v54 = vmax.f32 %v13089_v60, %v13090_v36  ;;  %v13093_v50 = vld [vmem:[#allocation56_spill] sm:$0xff]  ;;  %v193_v29 = vld [vmem:[%s12795_s0 + $0x598] sm:$0xff]  ;;  %v13096_v1 = vld [vmem:[#allocation18_spill] sm:$0xff]  ;;  %7575 = vmatprep.mubr.msk.f32.mxu0 %vm594_vm0, %v192_v48  ;;  %8007 = vmatprep.mubr.msk.f32.mxu1 %vm594_vm0, %v480_v44  ;;  %v10213_v43 = vpop.f32.mrb[72].mxu0 }
 0x173   :  { %v5936_v21 = vmax.f32 %v5792_v41, 0.0  ;;  %v5571_v55 = vmax.f32 %v13082_v31, %v5427_v56  ;;  %v5643_v2 = vmax.f32 %v13085_v3, %v5499_v57  ;;  %v5570_v37 = vmax.f32 %v13088_v16, %v5426_v22  ;;  %v13097_v10 = vld [vmem:[#allocation38_spill] sm:$0xff]  ;;  %v13100_v39 = vld [vmem:[#allocation39_spill] sm:$0xff]  ;;  %v481_v13 = vld [vmem:[%s12795_s0 + $0xe98] sm:$0xff]  ;;  %v10228_v31 = vpop.f32.mrb[73].mxu0  ;;  %7576 = vmatmul.mubr.msk.f32.gmra.mrb[178].mxu0 %vm594_vm0, %v193_v29 }
 0x174   :  { %v5863_v53 = vmax.f32 %v5719_v8, 0.0  ;;  %v5935_v34 = vmax.f32 %v5791_v58, 0.0  ;;  %v5642_v61 = vmax.f32 %v13091_v54, %v5498_v42  ;;  %6008 = vst [vmem:[%s12797_s3 + $0x68] sm:$0xff] %v5864_v20  ;;  %v5429_v7 = vmax.f32 %v13092_v19, %v7415_v46  ;;  %v194_v56 = vld [vmem:[%s12795_s0 + $0x5a0] sm:$0xff]  ;;  %v13102_v30 = vld [vmem:[#allocation20_spill] sm:$0xff]  ;;  %v13105_v59 = vld [vmem:[#allocation21_spill] sm:$0xff] }
 0x175   :  { %6080 = vst [vmem:[%s12797_s3 + $0x2a8] sm:$0xff] %v5936_v21  ;;  %v5722_v49 = vadd.f32 %v9814_v15, %v5571_v55  ;;  %v5794_v45 = vadd.f32 %v9814_v15, %v5643_v2  ;;  %v5501_v51 = vmax.f32 %v13093_v50, %v7847_v47  ;;  %v5721_v14 = vadd.f32 %v9814_v15, %v5570_v37  ;;  %v13103_v17 = vld [vmem:[#allocation40_spill] sm:$0xff]  ;;  %v13106_v22 = vld [vmem:[#allocation41_spill] sm:$0xff]  ;;  %v10215_v20 = vpop.f32.mrb[72].mxu1  ;;  %v482_v21 = vld [vmem:[%s12795_s0 + $0xea0] sm:$0xff]  ;;  %v10253_v35 = vpop.f32.mrb[74].mxu0 }
 0x176   :  { %6007 = vst [vmem:[%s12797_s3 + $0x60] sm:$0xff] %v5863_v53  ;;  %6079 = vst [vmem:[%s12797_s3 + $0x2a0] sm:$0xff] %v5935_v34  ;;  %v5793_v11 = vadd.f32 %v9814_v15, %v5642_v61  ;;  %v5428_v9 = vmax.f32 %v13094_v25, %v2739_v4  ;;  %v5500_v27 = vmax.f32 %v13095_v62, %v4179_v5  ;;  %v10231_v55 = vpop.f32.mrb[73].mxu1  ;;  %8008 = vmatmul.mubr.msk.f32.gmra.mrb[178].mxu1 %vm594_vm0, %v481_v13  ;;  %v195_v3 = vld [vmem:[%s12795_s0 + $0x5a8] sm:$0xff]  ;;  %v484_v37 = vld [vmem:[%s12795_s0 + $0xeb0] sm:$0xff]  ;;  %v10266_v60 = vpop.f32.mrb[75].mxu0 }
 0x177   :  { %v5866_v38 = vmax.f32 %v5722_v49, 0.0  ;;  %v5938_v26 = vmax.f32 %v5794_v45, 0.0  ;;  %v13098_v18 = vmax.f32 %v13096_v1, %v13097_v10  ;;  %v13101_v12 = vmax.f32 %v13099_v24, %v13100_v39  ;;  %7578 = vmatprep.mubr.msk.f32.mxu0 %vm594_vm0, %v194_v56  ;;  %8010 = vmatprep.mubr.msk.f32.mxu1 %vm594_vm0, %v482_v21  ;;  %v483_v53 = vld [vmem:[%s12795_s0 + $0xea8] sm:$0xff]  ;;  %v10255_v16 = vpop.f32.mrb[74].mxu1  ;;  %v197_v54 = vld [vmem:[%s12795_s0 + $0x5b8] sm:$0xff]  ;;  %v198_v46 = vld [vmem:[%s12795_s0 + $0x5c0] sm:$0xff] }
 0x178   :  { %v5865_v6 = vmax.f32 %v5721_v14, 0.0  ;;  %v5937_v57 = vmax.f32 %v5793_v11, 0.0  ;;  %v13104_v8 = vmax.f32 %v13102_v30, %v13103_v17  ;;  %v13107_v23 = vmax.f32 %v13105_v59, %v13106_v22  ;;  %7579 = vmatmul.mubr.msk.f32.gmra.mrb[180].mxu0 %vm594_vm0, %v195_v3  ;;  %v10269_v36 = vpop.f32.mrb[75].mxu1  ;;  %v485_v61 = vld [vmem:[%s12795_s0 + $0xeb8] sm:$0xff]  ;;  %v10289_v47 = vpop.f32.mrb[76].mxu0  ;;  %v486_v44 = vld [vmem:[%s12795_s0 + $0xec0] sm:$0xff] }
 0x179   :  { %v5573_v40 = vmax.f32 %v13098_v18, %v5429_v7  ;;  %v5645_v41 = vmax.f32 %v13101_v12, %v5501_v51  ;;  %6010 = vst [vmem:[%s12797_s3 + $0x78] sm:$0xff] %v5866_v38  ;;  %6082 = vst [vmem:[%s12797_s3 + $0x2b8] sm:$0xff] %v5938_v26  ;;  %v10291_v48 = vpop.f32.mrb[76].mxu1  ;;  %v10296_v49 = vpop.f32.mrb[77].mxu0  ;;  %v199_v19 = vld [vmem:[%s12795_s0 + $0x5c8] sm:$0xff]  ;;  %v200_v50 = vld [vmem:[%s12795_s0 + $0x5d0] sm:$0xff] }
 0x17a   :  { %v5572_v58 = vmax.f32 %v13104_v8, %v5428_v9  ;;  %v5644_v42 = vmax.f32 %v13107_v23, %v5500_v27  ;;  %6009 = vst [vmem:[%s12797_s3 + $0x70] sm:$0xff] %v5865_v6  ;;  %6081 = vst [vmem:[%s12797_s3 + $0x2b0] sm:$0xff] %v5937_v57  ;;  %8011 = vmatmul.mubr.msk.f32.gmra.mrb[180].mxu1 %vm594_vm0, %v483_v53  ;;  %v10299_v45 = vpop.f32.mrb[77].mxu1  ;;  %v487_v7 = vld [vmem:[%s12795_s0 + $0xec8] sm:$0xff]  ;;  %v488_v5 = vld [vmem:[%s12795_s0 + $0xed0] sm:$0xff] }
 0x17b   :  { %v5724_v63 = vadd.f32 %v9814_v15, %v5573_v40  ;;  %v5796_v28 = vadd.f32 %v9814_v15, %v5645_v41  ;;  %8013 = vmatprep.mubr.msk.f32.mxu1 %vm594_vm0, %v484_v37  ;;  %v10313_v51 = vpop.f32.mrb[78].mxu0  ;;  %v201_v25 = vld [vmem:[%s12795_s0 + $0x5d8] sm:$0xff]  ;;  %v202_v62 = vld [vmem:[%s12795_s0 + $0x5e0] sm:$0xff]  ;;  %v203_v10 = vld [vmem:[%s12795_s0 + $0x5e8] sm:$0xff] }
 0x17c   :  { %v5723_v32 = vadd.f32 %v9814_v15, %v5572_v58  ;;  %v5795_v33 = vadd.f32 %v9814_v15, %v5644_v42  ;;  %v196_v15 = vld [vmem:[%s12795_s0 + $0x5b0] sm:$0xff]  ;;  %v10315_v4 = vpop.f32.mrb[78].mxu1  ;;  %v10320_v14 = vpop.f32.mrb[79].mxu0  ;;  %v489_v9 = vld [vmem:[%s12795_s0 + $0xed8] sm:$0xff]  ;;  %v490_v38 = vld [vmem:[%s12795_s0 + $0xee0] sm:$0xff] }
 0x17d   :  { %v5868_v2 = vmax.f32 %v5724_v63, 0.0  ;;  %v5940_v52 = vmax.f32 %v5796_v28, 0.0  ;;  %7581 = vmatprep.mubr.msk.f32.mxu0 %vm594_vm0, %v196_v15  ;;  %v10323_v11 = vpop.f32.mrb[79].mxu1  ;;  %v491_v18 = vld [vmem:[%s12795_s0 + $0xee8] sm:$0xff]  ;;  %v204_v40 = vld [vmem:[%s12795_s0 + $0x5f0] sm:$0xff]  ;;  %v205_v56 = vld [vmem:[%s12795_s0 + $0x5f8] sm:$0xff] }
 0x17e   :  { %v5867_v34 = vmax.f32 %v5723_v32, 0.0  ;;  %v5939_v0 = vmax.f32 %v5795_v33, 0.0  ;;  %7582 = vmatmul.mubr.msk.f32.gmra.mrb[182].mxu0 %vm594_vm0, %v197_v54  ;;  %8014 = vmatmul.mubr.msk.f32.gmra.mrb[182].mxu1 %vm594_vm0, %v485_v61  ;;  %v492_v12 = vld [vmem:[%s12795_s0 + $0xef0] sm:$0xff]  ;;  %v493_v6 = vld [vmem:[%s12795_s0 + $0xef8] sm:$0xff]  ;;  %v206_v57 = vld [vmem:[%s12795_s0 + $0x600] sm:$0xff] }
 0x17f   :  { %6012 = vst [vmem:[%s12797_s3 + $0x88] sm:$0xff] %v5868_v2  ;;  %6084 = vst [vmem:[%s12797_s3 + $0x2c8] sm:$0xff] %v5940_v52  ;;  %7584 = vmatprep.mubr.msk.f32.mxu0 %vm594_vm0, %v198_v46  ;;  %8016 = vmatprep.mubr.msk.f32.mxu1 %vm594_vm0, %v486_v44  ;;  %v10337_v27 = vpop.f32.mrb[80].mxu0  ;;  %v494_v8 = vld [vmem:[%s12795_s0 + $0xf00] sm:$0xff]  ;;  %v207_v22 = vld [vmem:[%s12795_s0 + $0x608] sm:$0xff] }
 0x180   :  { %6011 = vst [vmem:[%s12797_s3 + $0x80] sm:$0xff] %v5867_v34  ;;  %6083 = vst [vmem:[%s12797_s3 + $0x2c0] sm:$0xff] %v5939_v0  ;;  %v10339_v29 = vpop.f32.mrb[80].mxu1  ;;  %v10344_v26 = vpop.f32.mrb[81].mxu0  ;;  %v495_v23 = vld [vmem:[%s12795_s0 + $0xf08] sm:$0xff]  ;;  %v208_v42 = vld [vmem:[%s12795_s0 + $0x610] sm:$0xff] }
 0x181   :  { %13108 = vst [vmem:[#allocation42_spill] sm:$0xff] %v10337_v27  ;;  %13109 = vst [vmem:[#allocation2_spill] sm:$0xff] %v10339_v29  ;;  %v10347_v1 = vpop.f32.mrb[81].mxu1  ;;  %v496_v28 = vld [vmem:[%s12795_s0 + $0xf10] sm:$0xff]  ;;  %v209_v3 = vld [vmem:[%s12795_s0 + $0x618] sm:$0xff] }
 0x182   :  { %7585 = vmatmul.mubr.msk.f32.gmra.mrb[184].mxu0 %vm594_vm0, %v199_v19  ;;  %8017 = vmatmul.mubr.msk.f32.gmra.mrb[184].mxu1 %vm594_vm0, %v487_v7  ;;  %13110 = vst [vmem:[#allocation22_spill] sm:$0xff] %v10344_v26  ;;  %13111 = vst [vmem:[#allocation3_spill] sm:$0xff] %v10347_v1  ;;  %v497_v2 = vld [vmem:[%s12795_s0 + $0xf18] sm:$0xff]  ;;  %v210_v52 = vld [vmem:[%s12795_s0 + $0x620] sm:$0xff] }
 0x183   :  { %7587 = vmatprep.mubr.msk.f32.mxu0 %vm594_vm0, %v200_v50  ;;  %8019 = vmatprep.mubr.msk.f32.mxu1 %vm594_vm0, %v488_v5  ;;  %v10361_v24 = vpop.f32.mrb[82].mxu0  ;;  %v498_v34 = vld [vmem:[%s12795_s0 + $0xf20] sm:$0xff]  ;;  %v211_v54 = vld [vmem:[%s12795_s0 + $0x628] sm:$0xff]  ;;  %v212_v46 = vld [vmem:[%s12795_s0 + $0x630] sm:$0xff] }
 0x184   :  { %13112 = vst [vmem:[#allocation23_spill] sm:$0xff] %v10361_v24  ;;  %v10363_v39 = vpop.f32.mrb[82].mxu1  ;;  %v10368_v41 = vpop.f32.mrb[83].mxu0  ;;  %v499_v61 = vld [vmem:[%s12795_s0 + $0xf28] sm:$0xff]  ;;  %v500_v7 = vld [vmem:[%s12795_s0 + $0xf30] sm:$0xff]  ;;  %v222_v5 = vld [vmem:[%s12795_s0 + $0x680] sm:$0xff] }
 0x185   :  { %13113 = vst [vmem:[#allocation4_spill] sm:$0xff] %v10363_v39  ;;  %13114 = vst [vmem:[#allocation24_spill] sm:$0xff] %v10368_v41  ;;  %v10371_v13 = vpop.f32.mrb[83].mxu1  ;;  %v527_v39 = vld [vmem:[%s12795_s0 + $0x1008] sm:$0xff] }
 0x186   :  { %7588 = vmatmul.mubr.msk.f32.gmra.mrb[186].mxu0 %vm594_vm0, %v201_v25  ;;  %8020 = vmatmul.mubr.msk.f32.gmra.mrb[186].mxu1 %vm594_vm0, %v489_v9  ;;  %13115 = vst [vmem:[#allocation5_spill] sm:$0xff] %v10371_v13 }
 0x187   :  { %7590 = vmatprep.mubr.msk.f32.mxu0 %vm594_vm0, %v202_v62  ;;  %8022 = vmatprep.mubr.msk.f32.mxu1 %vm594_vm0, %v490_v38  ;;  %v10385_v30 = vpop.f32.mrb[84].mxu0 }
 0x188   :  { %13116 = vst [vmem:[#allocation25_spill] sm:$0xff] %v10385_v30  ;;  %v10387_v17 = vpop.f32.mrb[84].mxu1  ;;  %v10392_v58 = vpop.f32.mrb[85].mxu0 }
 0x189   :  { %13117 = vst [vmem:[#allocation43_spill] sm:$0xff] %v10387_v17  ;;  %13118 = vst [vmem:[#allocation44_spill] sm:$0xff] %v10392_v58  ;;  %v10395_v59 = vpop.f32.mrb[85].mxu1  ;;  %v525_v17 = vld [vmem:[%s12795_s0 + $0xff8] sm:$0xff] }
 0x18a   :  { %7591 = vmatmul.mubr.msk.f32.gmra.mrb[188].mxu0 %vm594_vm0, %v203_v10  ;;  %8023 = vmatmul.mubr.msk.f32.gmra.mrb[188].mxu1 %vm594_vm0, %v491_v18  ;;  %13119 = vst [vmem:[#allocation45_spill] sm:$0xff] %v10395_v59  ;;  %v213_v10 = vld [vmem:[%s12795_s0 + $0x638] sm:$0xff] }
 0x18b   :  { %7593 = vmatprep.mubr.msk.f32.mxu0 %vm594_vm0, %v204_v40  ;;  %8025 = vmatprep.mubr.msk.f32.mxu1 %vm594_vm0, %v492_v12  ;;  %v10409_v21 = vpop.f32.mrb[86].mxu0  ;;  %v501_v18 = vld [vmem:[%s12795_s0 + $0xf38] sm:$0xff]  ;;  %v214_v40 = vld [vmem:[%s12795_s0 + $0x640] sm:$0xff] }
 0x18c   :  { %13120 = vst [vmem:[#allocation46_spill] sm:$0xff] %v10409_v21  ;;  %v10411_v63 = vpop.f32.mrb[86].mxu1  ;;  %v10416_v32 = vpop.f32.mrb[87].mxu0 }
 0x18d   :  { %13121 = vst [vmem:[#allocation6_spill] sm:$0xff] %v10411_v63  ;;  %13122 = vst [vmem:[#allocation26_spill] sm:$0xff] %v10416_v32  ;;  %v10419_v33 = vpop.f32.mrb[87].mxu1  ;;  %v523_v63 = vld [vmem:[%s12795_s0 + $0xfe8] sm:$0xff] }
 0x18e   :  { %7594 = vmatmul.mubr.msk.f32.gmra.mrb[190].mxu0 %vm594_vm0, %v205_v56  ;;  %8026 = vmatmul.mubr.msk.f32.gmra.mrb[190].mxu1 %vm594_vm0, %v493_v6  ;;  %13123 = vst [vmem:[#allocation7_spill] sm:$0xff] %v10419_v33  ;;  %v502_v6 = vld [vmem:[%s12795_s0 + $0xf40] sm:$0xff] }
 0x18f   :  { %7596 = vmatprep.mubr.msk.f32.mxu0 %vm594_vm0, %v206_v57  ;;  %8028 = vmatprep.mubr.msk.f32.mxu1 %vm594_vm0, %v494_v8  ;;  %v10433_v53 = vpop.f32.mrb[88].mxu0  ;;  %v220_v8 = vld [vmem:[%s12795_s0 + $0x670] sm:$0xff] }
 0x190   :  { %13124 = vst [vmem:[#allocation27_spill] sm:$0xff] %v10433_v53  ;;  %v10435_v15 = vpop.f32.mrb[88].mxu1  ;;  %v10440_v0 = vpop.f32.mrb[89].mxu0 }
 0x191   :  { %13125 = vst [vmem:[#allocation8_spill] sm:$0xff] %v10435_v15  ;;  %13126 = vst [vmem:[#allocation28_spill] sm:$0xff] %v10440_v0  ;;  %v10443_v37 = vpop.f32.mrb[89].mxu1  ;;  %v521_v15 = vld [vmem:[%s12795_s0 + $0xfd8] sm:$0xff] }
 0x192   :  { %7597 = vmatmul.mubr.msk.f32.gmra.mrb[192].mxu0 %vm594_vm0, %v207_v22  ;;  %8029 = vmatmul.mubr.msk.f32.gmra.mrb[192].mxu1 %vm594_vm0, %v495_v23  ;;  %13127 = vst [vmem:[#allocation9_spill] sm:$0xff] %v10443_v37  ;;  %v519_v37 = vld [vmem:[%s12795_s0 + $0xfc8] sm:$0xff] }
 0x193   :  { %7599 = vmatprep.mubr.msk.f32.mxu0 %vm594_vm0, %v208_v42  ;;  %8031 = vmatprep.mubr.msk.f32.mxu1 %vm594_vm0, %v496_v28  ;;  %v10457_v44 = vpop.f32.mrb[90].mxu0 }
 0x194   :  { %v10459_v19 = vpop.f32.mrb[90].mxu1  ;;  %v10468_v25 = vpop.f32.mrb[91].mxu0 }
 0x195   :  { %v10471_v9 = vpop.f32.mrb[91].mxu1 }
 0x196   :  { %7600 = vmatmul.mubr.msk.f32.gmra.mrb[194].mxu0 %vm594_vm0, %v209_v3  ;;  %8032 = vmatmul.mubr.msk.f32.gmra.mrb[194].mxu1 %vm594_vm0, %v497_v2  ;;  %v215_v3 = vld [vmem:[%s12795_s0 + $0x648] sm:$0xff] }
 0x197   :  { %7602 = vmatprep.mubr.msk.f32.mxu0 %vm594_vm0, %v210_v52  ;;  %8034 = vmatprep.mubr.msk.f32.mxu1 %vm594_vm0, %v498_v34  ;;  %v10489_v12 = vpop.f32.mrb[92].mxu0  ;;  %v503_v2 = vld [vmem:[%s12795_s0 + $0xf48] sm:$0xff]  ;;  %v216_v52 = vld [vmem:[%s12795_s0 + $0x650] sm:$0xff] }
 0x198   :  { %v10491_v56 = vpop.f32.mrb[92].mxu1  ;;  %v10500_v22 = vpop.f32.mrb[93].mxu0 }
 0x199   :  { %v10503_v23 = vpop.f32.mrb[93].mxu1 }
 0x19a   :  { %7603 = vmatmul.mubr.msk.f32.gmra.mrb[196].mxu0 %vm594_vm0, %v211_v54  ;;  %8035 = vmatmul.mubr.msk.f32.gmra.mrb[196].mxu1 %vm594_vm0, %v499_v61  ;;  %v504_v61 = vld [vmem:[%s12795_s0 + $0xf50] sm:$0xff] }
 0x19b   :  { %7605 = vmatprep.mubr.msk.f32.mxu0 %vm594_vm0, %v212_v46  ;;  %8037 = vmatprep.mubr.msk.f32.mxu1 %vm594_vm0, %v500_v7  ;;  %v10521_v34 = vpop.f32.mrb[94].mxu0  ;;  %v217_v7 = vld [vmem:[%s12795_s0 + $0x658] sm:$0xff] }
 0x19c   :  { %v10523_v54 = vpop.f32.mrb[94].mxu1 }
 0x19e   :  { %7606 = vmatmul.mubr.msk.f32.gmra.mrb[198].mxu0 %vm594_vm0, %v213_v10  ;;  %8038 = vmatmul.mubr.msk.f32.gmra.mrb[198].mxu1 %vm594_vm0, %v501_v18  ;;  %v10532_v10 = vpop.f32.mrb[95].mxu0  ;;  %v10535_v18 = vpop.f32.mrb[95].mxu1 }
 0x19f   :  { %7608 = vmatprep.mubr.msk.f32.mxu0 %vm594_vm0, %v214_v40  ;;  %8040 = vmatprep.mubr.msk.f32.mxu1 %vm594_vm0, %v502_v6  ;;  %v218_v40 = vld [vmem:[%s12795_s0 + $0x660] sm:$0xff]  ;;  %v10553_v46 = vpop.f32.mrb[96].mxu0 }
 0x1a0   :  { %v10555_v6 = vpop.f32.mrb[96].mxu1  ;;  %v10564_v28 = vpop.f32.mrb[97].mxu0 }
 0x1a1   :  { %v10567_v42 = vpop.f32.mrb[97].mxu1 }
 0x1a2   :  { %7609 = vmatmul.mubr.msk.f32.gmra.mrb[200].mxu0 %vm594_vm0, %v215_v3  ;;  %8041 = vmatmul.mubr.msk.f32.gmra.mrb[200].mxu1 %vm594_vm0, %v503_v2  ;;  %v505_v3 = vld [vmem:[%s12795_s0 + $0xf58] sm:$0xff]  ;;  %v506_v2 = vld [vmem:[%s12795_s0 + $0xf60] sm:$0xff] }
 0x1a3   :  { %7611 = vmatprep.mubr.msk.f32.mxu0 %vm594_vm0, %v216_v52  ;;  %8043 = vmatprep.mubr.msk.f32.mxu1 %vm594_vm0, %v504_v61  ;;  %v219_v61 = vld [vmem:[%s12795_s0 + $0x668] sm:$0xff]  ;;  %v10585_v52 = vpop.f32.mrb[98].mxu0 }
 0x1a4   :  { %13128 = vst [vmem:[#allocation29_spill] sm:$0xff] %v10585_v52  ;;  %v10587_v57 = vpop.f32.mrb[98].mxu1  ;;  %v10596_v38 = vpop.f32.mrb[99].mxu0 }
 0x1a5   :  { %13129 = vst [vmem:[#allocation47_spill] sm:$0xff] %v10587_v57  ;;  %13130 = vst [vmem:[#allocation48_spill] sm:$0xff] %v10596_v38  ;;  %v10599_v62 = vpop.f32.mrb[99].mxu1  ;;  %v224_v38 = vld [vmem:[%s12795_s0 + $0x690] sm:$0xff] }
 0x1a6   :  { %7612 = vmatmul.mubr.msk.f32.gmra.mrb[202].mxu0 %vm594_vm0, %v217_v7  ;;  %8044 = vmatmul.mubr.msk.f32.gmra.mrb[202].mxu1 %vm594_vm0, %v505_v3  ;;  %v507_v7 = vld [vmem:[%s12795_s0 + $0xf68] sm:$0xff]  ;;  %13131 = vst [vmem:[#allocation49_spill] sm:$0xff] %v10599_v62 }
 0x1a7   :  { %7614 = vmatprep.mubr.msk.f32.mxu0 %vm594_vm0, %v218_v40  ;;  %8046 = vmatprep.mubr.msk.f32.mxu1 %vm594_vm0, %v506_v2  ;;  %v508_v40 = vld [vmem:[%s12795_s0 + $0xf70] sm:$0xff]  ;;  %v221_v2 = vld [vmem:[%s12795_s0 + $0x678] sm:$0xff]  ;;  %v10617_v3 = vpop.f32.mrb[100].mxu0 }
 0x1a8   :  { %13132 = vst [vmem:[#allocation50_spill] sm:$0xff] %v10617_v3  ;;  %v10619_v50 = vpop.f32.mrb[100].mxu1  ;;  %v10628_v62 = vpop.f32.mrb[101].mxu0 }
 0x1a9   :  { %13133 = vst [vmem:[#allocation10_spill] sm:$0xff] %v10619_v50  ;;  %13134 = vst [vmem:[#allocation30_spill] sm:$0xff] %v10628_v62  ;;  %v10631_v1 = vpop.f32.mrb[101].mxu1  ;;  %v226_v62 = vld [vmem:[%s12795_s0 + $0x6a0] sm:$0xff]  ;;  %v239_v50 = vld [vmem:[%s12795_s0 + $0x708] sm:$0xff] }
 0x1aa   :  { %7615 = vmatmul.mubr.msk.f32.gmra.mrb[204].mxu0 %vm594_vm0, %v219_v61  ;;  %8047 = vmatmul.mubr.msk.f32.gmra.mrb[204].mxu1 %vm594_vm0, %v507_v7  ;;  %v509_v61 = vld [vmem:[%s12795_s0 + $0xf78] sm:$0xff]  ;;  %13135 = vst [vmem:[#allocation11_spill] sm:$0xff] %v10631_v1 }
 0x1ab   :  { %7617 = vmatprep.mubr.msk.f32.mxu0 %vm594_vm0, %v220_v8  ;;  %8049 = vmatprep.mubr.msk.f32.mxu1 %vm594_vm0, %v508_v40  ;;  %v510_v8 = vld [vmem:[%s12795_s0 + $0xf80] sm:$0xff]  ;;  %v223_v40 = vld [vmem:[%s12795_s0 + $0x688] sm:$0xff]  ;;  %v10649_v7 = vpop.f32.mrb[102].mxu0 }
 0x1ac   :  { %13136 = vst [vmem:[#allocation31_spill] sm:$0xff] %v10649_v7  ;;  %v10651_v26 = vpop.f32.mrb[102].mxu1  ;;  %v10660_v1 = vpop.f32.mrb[103].mxu0 }
 0x1ad   :  { %13137 = vst [vmem:[#allocation12_spill] sm:$0xff] %v10651_v26  ;;  %13138 = vst [vmem:[#allocation32_spill] sm:$0xff] %v10660_v1  ;;  %v10663_v13 = vpop.f32.mrb[103].mxu1  ;;  %v228_v1 = vld [vmem:[%s12795_s0 + $0x6b0] sm:$0xff]  ;;  %v237_v26 = vld [vmem:[%s12795_s0 + $0x6f8] sm:$0xff] }
 0x1ae   :  { %7618 = vmatmul.mubr.msk.f32.gmra.mrb[206].mxu0 %vm594_vm0, %v221_v2  ;;  %8050 = vmatmul.mubr.msk.f32.gmra.mrb[206].mxu1 %vm594_vm0, %v509_v61  ;;  %v511_v2 = vld [vmem:[%s12795_s0 + $0xf88] sm:$0xff]  ;;  %13139 = vst [vmem:[#allocation13_spill] sm:$0xff] %v10663_v13 }
 0x1af   :  { %7620 = vmatprep.mubr.msk.f32.mxu0 %vm594_vm0, %v222_v5  ;;  %8052 = vmatprep.mubr.msk.f32.mxu1 %vm594_vm0, %v510_v8  ;;  %v512_v5 = vld [vmem:[%s12795_s0 + $0xf90] sm:$0xff]  ;;  %v225_v8 = vld [vmem:[%s12795_s0 + $0x698] sm:$0xff]  ;;  %v10681_v61 = vpop.f32.mrb[104].mxu0 }
 0x1b0   :  { %13140 = vst [vmem:[#allocation33_spill] sm:$0xff] %v10681_v61  ;;  %v10683_v41 = vpop.f32.mrb[104].mxu1  ;;  %v10692_v13 = vpop.f32.mrb[105].mxu0 }
 0x1b1   :  { %13141 = vst [vmem:[#allocation51_spill] sm:$0xff] %v10683_v41  ;;  %13142 = vst [vmem:[#allocation52_spill] sm:$0xff] %v10692_v13  ;;  %v10695_v59 = vpop.f32.mrb[105].mxu1  ;;  %v230_v13 = vld [vmem:[%s12795_s0 + $0x6c0] sm:$0xff]  ;;  %v235_v41 = vld [vmem:[%s12795_s0 + $0x6e8] sm:$0xff] }
 0x1b2   :  { %7621 = vmatmul.mubr.msk.f32.gmra.mrb[208].mxu0 %vm594_vm0, %v223_v40  ;;  %8053 = vmatmul.mubr.msk.f32.gmra.mrb[208].mxu1 %vm594_vm0, %v511_v2  ;;  %v513_v40 = vld [vmem:[%s12795_s0 + $0xf98] sm:$0xff]  ;;  %13143 = vst [vmem:[#allocation53_spill] sm:$0xff] %v10695_v59 }
 0x1b3   :  { %7623 = vmatprep.mubr.msk.f32.mxu0 %vm594_vm0, %v224_v38  ;;  %8055 = vmatprep.mubr.msk.f32.mxu1 %vm594_vm0, %v512_v5  ;;  %v514_v38 = vld [vmem:[%s12795_s0 + $0xfa0] sm:$0xff]  ;;  %v227_v5 = vld [vmem:[%s12795_s0 + $0x6a8] sm:$0xff]  ;;  %v10713_v2 = vpop.f32.mrb[106].mxu0 }
 0x1b4   :  { %13144 = vst [vmem:[#allocation54_spill] sm:$0xff] %v10713_v2  ;;  %v10715_v58 = vpop.f32.mrb[106].mxu1  ;;  %v10724_v59 = vpop.f32.mrb[107].mxu0 }
 0x1b5   :  { %13145 = vst [vmem:[#allocation14_spill] sm:$0xff] %v10715_v58  ;;  %13146 = vst [vmem:[#allocation34_spill] sm:$0xff] %v10724_v59  ;;  %v10727_v33 = vpop.f32.mrb[107].mxu1  ;;  %v233_v58 = vld [vmem:[%s12795_s0 + $0x6d8] sm:$0xff] }
 0x1b6   :  { %7624 = vmatmul.mubr.msk.f32.gmra.mrb[210].mxu0 %vm594_vm0, %v225_v8  ;;  %8056 = vmatmul.mubr.msk.f32.gmra.mrb[210].mxu1 %vm594_vm0, %v513_v40  ;;  %v515_v8 = vld [vmem:[%s12795_s0 + $0xfa8] sm:$0xff]  ;;  %13147 = vst [vmem:[#allocation15_spill] sm:$0xff] %v10727_v33 }
 0x1b7   :  { %7626 = vmatprep.mubr.msk.f32.mxu0 %vm594_vm0, %v226_v62  ;;  %8058 = vmatprep.mubr.msk.f32.mxu1 %vm594_vm0, %v514_v38  ;;  %v516_v62 = vld [vmem:[%s12795_s0 + $0xfb0] sm:$0xff]  ;;  %v229_v38 = vld [vmem:[%s12795_s0 + $0x6b8] sm:$0xff]  ;;  %v10745_v40 = vpop.f32.mrb[108].mxu0  ;;  %v231_v33 = vld [vmem:[%s12795_s0 + $0x6c8] sm:$0xff] }
 0x1b8   :  { %v10747_v32 = vpop.f32.mrb[108].mxu1 }
 0x1ba   :  { %7627 = vmatmul.mubr.msk.f32.gmra.mrb[212].mxu0 %vm594_vm0, %v227_v5  ;;  %8059 = vmatmul.mubr.msk.f32.gmra.mrb[212].mxu1 %vm594_vm0, %v515_v8  ;;  %v517_v5 = vld [vmem:[%s12795_s0 + $0xfb8] sm:$0xff]  ;;  %v10752_v8 = vpop.f32.mrb[109].mxu0 }
 0x1bb   :  { %7629 = vmatprep.mubr.msk.f32.mxu0 %vm594_vm0, %v228_v1  ;;  %8061 = vmatprep.mubr.msk.f32.mxu1 %vm594_vm0, %v516_v62  ;;  %v518_v1 = vld [vmem:[%s12795_s0 + $0xfc0] sm:$0xff]  ;;  %v10755_v62 = vpop.f32.mrb[109].mxu1  ;;  %v10769_v59 = vpop.f32.mrb[110].mxu0 }
 0x1bc   :  { %v10771_v0 = vpop.f32.mrb[110].mxu1 }
 0x1be   :  { %7630 = vmatmul.mubr.msk.f32.gmra.mrb[214].mxu0 %vm594_vm0, %v229_v38  ;;  %8062 = vmatmul.mubr.msk.f32.gmra.mrb[214].mxu1 %vm594_vm0, %v517_v5  ;;  %v232_v38 = vld [vmem:[%s12795_s0 + $0x6d0] sm:$0xff]  ;;  %v10776_v5 = vpop.f32.mrb[111].mxu0 }
 0x1bf   :  { %7632 = vmatprep.mubr.msk.f32.mxu0 %vm594_vm0, %v230_v13  ;;  %8064 = vmatprep.mubr.msk.f32.mxu1 %vm594_vm0, %v518_v1  ;;  %v520_v13 = vld [vmem:[%s12795_s0 + $0xfd0] sm:$0xff]  ;;  %v10779_v1 = vpop.f32.mrb[111].mxu1  ;;  %v10793_v2 = vpop.f32.mrb[112].mxu0 }
 0x1c0   :  { %v10795_v53 = vpop.f32.mrb[112].mxu1 }
 0x1c2   :  { %7633 = vmatmul.mubr.msk.f32.gmra.mrb[216].mxu0 %vm594_vm0, %v231_v33  ;;  %8065 = vmatmul.mubr.msk.f32.gmra.mrb[216].mxu1 %vm594_vm0, %v519_v37  ;;  %v234_v33 = vld [vmem:[%s12795_s0 + $0x6e0] sm:$0xff] }
 0x1c3   :  { %7635 = vmatprep.mubr.msk.f32.mxu0 %vm594_vm0, %v232_v38  ;;  %8067 = vmatprep.mubr.msk.f32.mxu1 %vm594_vm0, %v520_v13  ;;  %v522_v37 = vld [vmem:[%s12795_s0 + $0xfe0] sm:$0xff]  ;;  %v10800_v38 = vpop.f32.mrb[113].mxu0  ;;  %v10803_v13 = vpop.f32.mrb[113].mxu1 }
 0x1c4   :  { %v10817_v61 = vpop.f32.mrb[114].mxu0  ;;  %v10819_v21 = vpop.f32.mrb[114].mxu1 }
 0x1c6   :  { %7636 = vmatmul.mubr.msk.f32.gmra.mrb[218].mxu0 %vm594_vm0, %v233_v58  ;;  %8068 = vmatmul.mubr.msk.f32.gmra.mrb[218].mxu1 %vm594_vm0, %v521_v15  ;;  %v236_v58 = vld [vmem:[%s12795_s0 + $0x6f0] sm:$0xff] }
 0x1c7   :  { %7638 = vmatprep.mubr.msk.f32.mxu0 %vm594_vm0, %v234_v33  ;;  %8070 = vmatprep.mubr.msk.f32.mxu1 %vm594_vm0, %v522_v37  ;;  %v524_v15 = vld [vmem:[%s12795_s0 + $0xff0] sm:$0xff]  ;;  %v10824_v33 = vpop.f32.mrb[115].mxu0  ;;  %v10827_v37 = vpop.f32.mrb[115].mxu1 }
 0x1c8   :  { %v10841_v7 = vpop.f32.mrb[116].mxu0  ;;  %v10843_v30 = vpop.f32.mrb[116].mxu1 }
 0x1ca   :  { %7639 = vmatmul.mubr.msk.f32.gmra.mrb[220].mxu0 %vm594_vm0, %v235_v41  ;;  %8071 = vmatmul.mubr.msk.f32.gmra.mrb[220].mxu1 %vm594_vm0, %v523_v63  ;;  %v238_v41 = vld [vmem:[%s12795_s0 + $0x700] sm:$0xff] }
 0x1cb   :  { %7641 = vmatprep.mubr.msk.f32.mxu0 %vm594_vm0, %v236_v58  ;;  %8073 = vmatprep.mubr.msk.f32.mxu1 %vm594_vm0, %v524_v15  ;;  %v526_v63 = vld [vmem:[%s12795_s0 + $0x1000] sm:$0xff]  ;;  %v10848_v58 = vpop.f32.mrb[117].mxu0  ;;  %v10851_v15 = vpop.f32.mrb[117].mxu1 }
 0x1cc   :  { %13148 = vst [vmem:[#allocation35_spill] sm:$0xff] %v10851_v15  ;;  %v10865_v3 = vpop.f32.mrb[118].mxu0  ;;  %v10867_v24 = vpop.f32.mrb[118].mxu1  ;;  %v249_v15 = vld [vmem:[%s12795_s0 + $0x758] sm:$0xff] }
 0x1cd   :  { %13149 = vst [vmem:[#allocation16_spill] sm:$0xff] %v10865_v3  ;;  %13150 = vst [vmem:[#allocation36_spill] sm:$0xff] %v10867_v24  ;;  %v241_v3 = vld [vmem:[%s12795_s0 + $0x718] sm:$0xff] }
 0x1ce   :  { %7642 = vmatmul.mubr.msk.f32.gmra.mrb[222].mxu0 %vm594_vm0, %v237_v26  ;;  %8074 = vmatmul.mubr.msk.f32.gmra.mrb[222].mxu1 %vm594_vm0, %v525_v17  ;;  %v240_v26 = vld [vmem:[%s12795_s0 + $0x710] sm:$0xff]  ;;  %v529_v24 = vld [vmem:[%s12795_s0 + $0x1018] sm:$0xff] }
 0x1cf   :  { %7644 = vmatprep.mubr.msk.f32.mxu0 %vm594_vm0, %v238_v41  ;;  %8076 = vmatprep.mubr.msk.f32.mxu1 %vm594_vm0, %v526_v63  ;;  %v528_v17 = vld [vmem:[%s12795_s0 + $0x1010] sm:$0xff]  ;;  %v10872_v41 = vpop.f32.mrb[119].mxu0  ;;  %v10875_v63 = vpop.f32.mrb[119].mxu1 }
 0x1d0   :  { %13151 = vst [vmem:[#allocation17_spill] sm:$0xff] %v10872_v41  ;;  %13152 = vst [vmem:[#allocation37_spill] sm:$0xff] %v10875_v63  ;;  %v10889_v41 = vpop.f32.mrb[120].mxu0  ;;  %v10891_v63 = vpop.f32.mrb[120].mxu1 }
 0x1d1   :  { %13153 = vst [vmem:[#allocation55_spill] sm:$0xff] %v10889_v41  ;;  %13154 = vst [vmem:[#allocation56_spill] sm:$0xff] %v10891_v63  ;;  %v243_v41 = vld [vmem:[%s12795_s0 + $0x728] sm:$0xff] }
 0x1d2   :  { %7645 = vmatmul.mubr.msk.f32.gmra.mrb[224].mxu0 %vm594_vm0, %v239_v50  ;;  %8077 = vmatmul.mubr.msk.f32.gmra.mrb[224].mxu1 %vm594_vm0, %v527_v39  ;;  %v242_v50 = vld [vmem:[%s12795_s0 + $0x720] sm:$0xff]  ;;  %v531_v63 = vld [vmem:[%s12795_s0 + $0x1028] sm:$0xff] }
 0x1d3   :  { %7647 = vmatprep.mubr.msk.f32.mxu0 %vm594_vm0, %v240_v26  ;;  %8079 = vmatprep.mubr.msk.f32.mxu1 %vm594_vm0, %v528_v17  ;;  %v530_v39 = vld [vmem:[%s12795_s0 + $0x1020] sm:$0xff]  ;;  %v10896_v26 = vpop.f32.mrb[121].mxu0  ;;  %v10899_v17 = vpop.f32.mrb[121].mxu1 }
 0x1d4   :  { %13155 = vst [vmem:[#allocation57_spill] sm:$0xff] %v10896_v26  ;;  %13156 = vst [vmem:[#allocation58_spill] sm:$0xff] %v10899_v17  ;;  %v10913_v26 = vpop.f32.mrb[122].mxu0  ;;  %v10915_v17 = vpop.f32.mrb[122].mxu1 }
 0x1d5   :  { %13157 = vst [vmem:[#allocation18_spill] sm:$0xff] %v10913_v26  ;;  %13158 = vst [vmem:[#allocation38_spill] sm:$0xff] %v10915_v17  ;;  %v245_v26 = vld [vmem:[%s12795_s0 + $0x738] sm:$0xff] }
 0x1d6   :  { %7648 = vmatmul.mubr.msk.f32.gmra.mrb[226].mxu0 %vm594_vm0, %v241_v3  ;;  %8080 = vmatmul.mubr.msk.f32.gmra.mrb[226].mxu1 %vm594_vm0, %v529_v24  ;;  %v244_v3 = vld [vmem:[%s12795_s0 + $0x730] sm:$0xff]  ;;  %v533_v17 = vld [vmem:[%s12795_s0 + $0x1038] sm:$0xff] }
 0x1d7   :  { %7650 = vmatprep.mubr.msk.f32.mxu0 %vm594_vm0, %v242_v50  ;;  %8082 = vmatprep.mubr.msk.f32.mxu1 %vm594_vm0, %v530_v39  ;;  %v532_v24 = vld [vmem:[%s12795_s0 + $0x1030] sm:$0xff]  ;;  %v10920_v50 = vpop.f32.mrb[123].mxu0  ;;  %v10923_v39 = vpop.f32.mrb[123].mxu1 }
 0x1d8   :  { %13159 = vst [vmem:[#allocation19_spill] sm:$0xff] %v10920_v50  ;;  %13160 = vst [vmem:[#allocation39_spill] sm:$0xff] %v10923_v39  ;;  %v10937_v50 = vpop.f32.mrb[124].mxu0  ;;  %v10939_v39 = vpop.f32.mrb[124].mxu1 }
 0x1d9   :  { %13161 = vst [vmem:[#allocation20_spill] sm:$0xff] %v10937_v50  ;;  %13162 = vst [vmem:[#allocation40_spill] sm:$0xff] %v10939_v39  ;;  %v247_v50 = vld [vmem:[%s12795_s0 + $0x748] sm:$0xff] }
 0x1da   :  { %7651 = vmatmul.mubr.msk.f32.gmra.mrb[228].mxu0 %vm594_vm0, %v243_v41  ;;  %8083 = vmatmul.mubr.msk.f32.gmra.mrb[228].mxu1 %vm594_vm0, %v531_v63  ;;  %v246_v41 = vld [vmem:[%s12795_s0 + $0x740] sm:$0xff]  ;;  %v535_v39 = vld [vmem:[%s12795_s0 + $0x1048] sm:$0xff] }
 0x1db   :  { %7653 = vmatprep.mubr.msk.f32.mxu0 %vm594_vm0, %v244_v3  ;;  %8085 = vmatprep.mubr.msk.f32.mxu1 %vm594_vm0, %v532_v24  ;;  %v534_v63 = vld [vmem:[%s12795_s0 + $0x1040] sm:$0xff]  ;;  %v10944_v3 = vpop.f32.mrb[125].mxu0  ;;  %v10947_v24 = vpop.f32.mrb[125].mxu1 }
 0x1dc   :  { %13163 = vst [vmem:[#allocation21_spill] sm:$0xff] %v10944_v3  ;;  %13164 = vst [vmem:[#allocation41_spill] sm:$0xff] %v10947_v24  ;;  %v7499_v3 = vpop.f32.mrb[126].mxu0  ;;  %v7931_v24 = vpop.f32.mrb[126].mxu1 }
 0x1dd   :  { %v5503_v57 = vmax.f32 %v10747_v32, %v7931_v24  ;;  %v3019_v29 = vpop.f32.mrb[127].mxu0 }
 0x1de   :  { %7654 = vmatmul.mubr.msk.f32.gmra.mrb[230].mxu0 %vm594_vm0, %v245_v26  ;;  %8086 = vmatmul.mubr.msk.f32.gmra.mrb[230].mxu1 %vm594_vm0, %v533_v17  ;;  %v248_v26 = vld [vmem:[%s12795_s0 + $0x750] sm:$0xff]  ;;  %v5430_v52 = vmax.f32 %v10752_v8, %v3019_v29  ;;  %v537_v29 = vld [vmem:[%s12795_s0 + $0x1058] sm:$0xff]  ;;  %v13167_v8 = vmax.f32 %v10228_v31, %v10468_v25 }
 0x1df   :  { %7656 = vmatprep.mubr.msk.f32.mxu0 %vm594_vm0, %v246_v41  ;;  %8088 = vmatprep.mubr.msk.f32.mxu1 %vm594_vm0, %v534_v63  ;;  %v536_v17 = vld [vmem:[%s12795_s0 + $0x1050] sm:$0xff]  ;;  %v5431_v41 = vmax.f32 %v10745_v40, %v7499_v3  ;;  %v4459_v63 = vpop.f32.mrb[127].mxu1  ;;  %v13165_v40 = vmax.f32 %v10213_v43, %v10457_v44  ;;  %v7502_v43 = vpop.f32.mrb[128].mxu0 }
 0x1e0   :  { %v5502_v27 = vmax.f32 %v10755_v62, %v4459_v63  ;;  %v5574_v62 = vmax.f32 %v13167_v8, %v5430_v52  ;;  %v7934_v44 = vpop.f32.mrb[128].mxu1  ;;  %v13171_v8 = vmax.f32 %v10266_v60, %v10500_v22 }
 0x1e1   :  { %v5575_v32 = vmax.f32 %v13165_v40, %v5431_v41  ;;  %v5505_v25 = vmax.f32 %v10771_v0, %v7934_v44  ;;  %v4469_v52 = vpop.f32.mrb[129].mxu1 }
 0x1e2   :  { %7657 = vmatmul.mubr.msk.f32.gmra.mrb[232].mxu0 %vm594_vm0, %v247_v50  ;;  %8089 = vmatmul.mubr.msk.f32.gmra.mrb[232].mxu1 %vm594_vm0, %v535_v39  ;;  %v13166_v50 = vmax.f32 %v10215_v20, %v10459_v19  ;;  %v13168_v39 = vmax.f32 %v10231_v55, %v10471_v9  ;;  %v250_v20 = vld [vmem:[%s12795_s0 + $0x760] sm:$0xff]  ;;  %v3029_v9 = vpop.f32.mrb[129].mxu0  ;;  %v5504_v63 = vmax.f32 %v10779_v1, %v4469_v52 }
 0x1e3   :  { %7659 = vmatprep.mubr.msk.f32.mxu0 %vm594_vm0, %v248_v26  ;;  %8091 = vmatprep.mubr.msk.f32.mxu1 %vm594_vm0, %v536_v17  ;;  %v538_v19 = vld [vmem:[%s12795_s0 + $0x1060] sm:$0xff]  ;;  %v5432_v41 = vmax.f32 %v10776_v5, %v3029_v9  ;;  %v539_v5 = vld [vmem:[%s12795_s0 + $0x1068] sm:$0xff]  ;;  %v13174_v52 = vmax.f32 %v10291_v48, %v10523_v54 }
 0x1e4   :  { %v5647_v3 = vmax.f32 %v13166_v50, %v5503_v57  ;;  %v5646_v24 = vmax.f32 %v13168_v39, %v5502_v27  ;;  %v10999_v57 = vld [vmem:[%s12796_s2] ss:$0 sm:$0xff]  ;;  %v5433_v27 = vmax.f32 %v10769_v59, %v7502_v43  ;;  %v251_v59 = vld [vmem:[%s12795_s0 + $0x768] sm:$0xff]  ;;  %v13170_v50 = vmax.f32 %v10255_v16, %v10491_v56  ;;  %v7505_v16 = vpop.f32.mrb[130].mxu0  ;;  %v7937_v56 = vpop.f32.mrb[130].mxu1  ;;  %v252_v39 = vld [vmem:[%s12795_s0 + $0x770] sm:$0xff] }
 0x1e5   :  { %v5726_v31 = vadd.f32 %v10999_v57, %v5575_v32  ;;  %v5725_v26 = vadd.f32 %v10999_v57, %v5574_v62  ;;  %v5576_v62 = vmax.f32 %v13171_v8, %v5432_v41  ;;  %v5435_v22 = vmax.f32 %v10793_v2, %v7505_v16  ;;  %v3039_v43 = vpop.f32.mrb[131].mxu0  ;;  %v4479_v44 = vpop.f32.mrb[131].mxu1 }
 0x1e6   :  { %v5798_v55 = vadd.f32 %v10999_v57, %v5647_v3  ;;  %7660 = vmatmul.mubr.msk.f32.gmra.mrb[234].mxu0 %vm594_vm0, %v249_v15  ;;  %v5797_v17 = vadd.f32 %v10999_v57, %v5646_v24  ;;  %8092 = vmatmul.mubr.msk.f32.gmra.mrb[234].mxu1 %vm594_vm0, %v537_v29  ;;  %v13169_v15 = vmax.f32 %v10253_v35, %v10489_v12  ;;  %v540_v24 = vld [vmem:[%s12795_s0 + $0x1070] sm:$0xff] }
 0x1e7   :  { %v5870_v40 = vmax.f32 %v5726_v31, 0.0  ;;  %v5649_v3 = vmax.f32 %v13170_v50, %v5505_v25  ;;  %7662 = vmatprep.mubr.msk.f32.mxu0 %vm594_vm0, %v250_v20  ;;  %8094 = vmatprep.mubr.msk.f32.mxu1 %vm594_vm0, %v538_v19  ;;  %v5869_v1 = vmax.f32 %v5725_v26, 0.0  ;;  %v13172_v35 = vmax.f32 %v10269_v36, %v10503_v23  ;;  %v253_v31 = vld [vmem:[%s12795_s0 + $0x778] sm:$0xff]  ;;  %v7508_v48 = vpop.f32.mrb[132].mxu0 }
 0x1e8   :  { %v5942_v0 = vmax.f32 %v5798_v55, 0.0  ;;  %v5577_v32 = vmax.f32 %v13169_v15, %v5433_v27  ;;  %v5941_v29 = vmax.f32 %v5797_v17, 0.0  ;;  %v5507_v23 = vmax.f32 %v10795_v53, %v7937_v56  ;;  %v7940_v54 = vpop.f32.mrb[132].mxu1 }
 0x1e9   :  { %v5648_v12 = vmax.f32 %v13172_v35, %v5504_v63  ;;  %6014 = vst [vmem:[%s12797_s3 + $0x98] sm:$0xff] %v5870_v40  ;;  %v5800_v36 = vadd.f32 %v10999_v57, %v5649_v3  ;;  %6013 = vst [vmem:[%s12797_s3 + $0x90] sm:$0xff] %v5869_v1  ;;  %v5727_v20 = vadd.f32 %v10999_v57, %v5576_v62  ;;  %v542_v40 = vld [vmem:[%s12795_s0 + $0x1080] sm:$0xff]  ;;  %v4489_v15 = vpop.f32.mrb[133].mxu1  ;;  %v255_v3 = vld [vmem:[%s12795_s0 + $0x788] sm:$0xff] }
 0x1ea   :  { %6086 = vst [vmem:[%s12797_s3 + $0x2d8] sm:$0xff] %v5942_v0  ;;  %v5728_v60 = vadd.f32 %v10999_v57, %v5577_v32  ;;  %7663 = vmatmul.mubr.msk.f32.gmra.mrb[236].mxu0 %vm594_vm0, %v251_v59  ;;  %6085 = vst [vmem:[%s12797_s3 + $0x2d0] sm:$0xff] %v5941_v29  ;;  %v5434_v2 = vmax.f32 %v10800_v38, %v3039_v43  ;;  %v5506_v53 = vmax.f32 %v10803_v13, %v4479_v44  ;;  %v541_v38 = vld [vmem:[%s12795_s0 + $0x1078] sm:$0xff]  ;;  %v254_v59 = vld [vmem:[%s12795_s0 + $0x780] sm:$0xff]  ;;  %v3049_v0 = vpop.f32.mrb[133].mxu0 }
 0x1eb   :  { %v5799_v19 = vadd.f32 %v10999_v57, %v5648_v12  ;;  %8095 = vmatmul.mubr.msk.f32.gmra.mrb[236].mxu1 %vm594_vm0, %v539_v5  ;;  %v5944_v27 = vmax.f32 %v5800_v36, 0.0  ;;  %v13173_v25 = vmax.f32 %v10289_v47, %v10521_v34  ;;  %v5651_v26 = vmax.f32 %v13174_v52, %v5507_v23  ;;  %7665 = vmatprep.mubr.msk.f32.mxu0 %vm594_vm0, %v252_v39  ;;  %v256_v39 = vld [vmem:[%s12795_s0 + $0x790] sm:$0xff]  ;;  %v13181_v43 = vld [vmem:[#allocation35_spill] sm:$0xff]  ;;  %v257_v44 = vld [vmem:[%s12795_s0 + $0x798] sm:$0xff] }
 0x1ec   :  { %v5872_v55 = vmax.f32 %v5728_v60, 0.0  ;;  %8097 = vmatprep.mubr.msk.f32.mxu1 %vm594_vm0, %v540_v24  ;;  %v5871_v13 = vmax.f32 %v5727_v20, 0.0  ;;  %v13175_v41 = vmax.f32 %v10296_v49, %v10532_v10  ;;  %v13176_v47 = vmax.f32 %v10299_v45, %v10535_v18  ;;  %v544_v24 = vld [vmem:[%s12795_s0 + $0x1090] sm:$0xff] }
 0x1ed   :  { %v5579_v9 = vmax.f32 %v13173_v25, %v5435_v22  ;;  %v5943_v17 = vmax.f32 %v5799_v19, 0.0  ;;  %6088 = vst [vmem:[%s12797_s3 + $0x2e8] sm:$0xff] %v5944_v27  ;;  %v5802_v45 = vadd.f32 %v10999_v57, %v5651_v26  ;;  %v5437_v10 = vmax.f32 %v10817_v61, %v7508_v48  ;;  %v13185_v27 = vld [vmem:[#allocation2_spill] sm:$0xff]  ;;  %v13186_v25 = vld [vmem:[#allocation47_spill] sm:$0xff] }
 0x1ee   :  { %v5578_v63 = vmax.f32 %v13175_v41, %v5434_v2  ;;  %v5650_v34 = vmax.f32 %v13176_v47, %v5506_v53  ;;  %6016 = vst [vmem:[%s12797_s3 + $0xa8] sm:$0xff] %v5872_v55  ;;  %v5509_v18 = vmax.f32 %v10819_v21, %v7940_v54  ;;  %7666 = vmatmul.mubr.msk.f32.gmra.mrb[238].mxu0 %vm594_vm0, %v253_v31  ;;  %6015 = vst [vmem:[%s12797_s3 + $0xa0] sm:$0xff] %v5871_v13  ;;  %v13182_v2 = vld [vmem:[#allocation42_spill] sm:$0xff]  ;;  %v13183_v53 = vld [vmem:[#allocation29_spill] sm:$0xff] }
 0x1ef   :  { %v5730_v49 = vadd.f32 %v10999_v57, %v5579_v9  ;;  %6087 = vst [vmem:[%s12797_s3 + $0x2e0] sm:$0xff] %v5943_v17  ;;  %v5436_v61 = vmax.f32 %v10824_v33, %v3049_v0  ;;  %v5508_v21 = vmax.f32 %v10827_v37, %v4489_v15  ;;  %8098 = vmatmul.mubr.msk.f32.gmra.mrb[238].mxu1 %vm594_vm0, %v541_v38  ;;  %v5946_v1 = vmax.f32 %v5802_v45, 0.0  ;;  %v543_v33 = vld [vmem:[%s12795_s0 + $0x1088] sm:$0xff]  ;;  %v13188_v13 = vld [vmem:[#allocation22_spill] sm:$0xff]  ;;  %v13189_v17 = vld [vmem:[#allocation48_spill] sm:$0xff] }
 0x1f0   :  { %v5729_v32 = vadd.f32 %v10999_v57, %v5578_v63  ;;  %v5801_v50 = vadd.f32 %v10999_v57, %v5650_v34  ;;  %v13177_v29 = vmax.f32 %v10313_v51, %v10553_v46  ;;  %v13178_v62 = vmax.f32 %v10315_v4, %v10555_v6  ;;  %7668 = vmatprep.mubr.msk.f32.mxu0 %vm594_vm0, %v254_v59  ;;  %v7511_v4 = vpop.f32.mrb[134].mxu0  ;;  %v7943_v6 = vpop.f32.mrb[134].mxu1  ;;  %v13191_v47 = vld [vmem:[#allocation3_spill] sm:$0xff]  ;;  %v13192_v34 = vld [vmem:[#allocation49_spill] sm:$0xff]  ;;  %v546_v45 = vld [vmem:[%s12795_s0 + $0x10a0] sm:$0xff] }
 0x1f1   :  { %v5874_v5 = vmax.f32 %v5730_v49, 0.0  ;;  %8100 = vmatprep.mubr.msk.f32.mxu1 %vm594_vm0, %v542_v40  ;;  %v13179_v16 = vmax.f32 %v10320_v14, %v10564_v28  ;;  %v13180_v51 = vmax.f32 %v10323_v11, %v10567_v42  ;;  %6090 = vst [vmem:[%s12797_s3 + $0x2f8] sm:$0xff] %v5946_v1  ;;  %v5439_v42 = vmax.f32 %v10841_v7, %v7511_v4  ;;  %v3059_v60 = vpop.f32.mrb[135].mxu0  ;;  %v4499_v36 = vpop.f32.mrb[135].mxu1  ;;  %v258_v49 = vld [vmem:[%s12795_s0 + $0x7a0] sm:$0xff]  ;;  %v13194_v0 = vld [vmem:[#allocation16_spill] sm:$0xff] }
 0x1f2   :  { %v5581_v8 = vmax.f32 %v13177_v29, %v5437_v10  ;;  %v5653_v35 = vmax.f32 %v13178_v62, %v5509_v18  ;;  %v5873_v37 = vmax.f32 %v5729_v32, 0.0  ;;  %v5945_v12 = vmax.f32 %v5801_v50, 0.0  ;;  %7669 = vmatmul.mubr.msk.f32.gmra.mrb[240].mxu0 %vm594_vm0, %v255_v3  ;;  %v7514_v59 = vpop.f32.mrb[136].mxu0  ;;  %v7946_v40 = vpop.f32.mrb[136].mxu1  ;;  %v13195_v32 = vld [vmem:[#allocation36_spill] sm:$0xff]  ;;  %v13196_v1 = vld [vmem:[#allocation17_spill] sm:$0xff] }
 0x1f3   :  { %v5580_v56 = vmax.f32 %v13179_v16, %v5436_v61  ;;  %v5652_v46 = vmax.f32 %v13180_v51, %v5508_v21  ;;  %6018 = vst [vmem:[%s12797_s3 + $0xb8] sm:$0xff] %v5874_v5  ;;  %v5511_v28 = vmax.f32 %v10843_v30, %v7943_v6  ;;  %v5438_v7 = vmax.f32 %v10848_v58, %v3059_v60  ;;  %v545_v58 = vld [vmem:[%s12795_s0 + $0x1098] sm:$0xff]  ;;  %v3069_v61 = vpop.f32.mrb[137].mxu0  ;;  %v4509_v21 = vpop.f32.mrb[137].mxu1  ;;  %v13199_v16 = vld [vmem:[#allocation50_spill] sm:$0xff] }
 0x1f4   :  { %v5732_v14 = vadd.f32 %v10999_v57, %v5581_v8  ;;  %v5804_v11 = vadd.f32 %v10999_v57, %v5653_v35  ;;  %6017 = vst [vmem:[%s12797_s3 + $0xb0] sm:$0xff] %v5873_v37  ;;  %6089 = vst [vmem:[%s12797_s3 + $0x2f0] sm:$0xff] %v5945_v12  ;;  %v5510_v30 = vmax.f32 %v13181_v43, %v4499_v36  ;;  %8101 = vmatmul.mubr.msk.f32.gmra.mrb[240].mxu1 %vm594_vm0, %v543_v33  ;;  %v13197_v8 = vld [vmem:[#allocation37_spill] sm:$0xff]  ;;  %v259_v35 = vld [vmem:[%s12795_s0 + $0x7a8] sm:$0xff] }
 0x1f5   :  { %v5731_v22 = vadd.f32 %v10999_v57, %v5580_v56  ;;  %v5803_v23 = vadd.f32 %v10999_v57, %v5652_v46  ;;  %v13184_v31 = vmax.f32 %v13182_v2, %v13183_v53  ;;  %v13187_v9 = vmax.f32 %v13185_v27, %v13186_v25  ;;  %7671 = vmatprep.mubr.msk.f32.mxu0 %vm594_vm0, %v256_v39  ;;  %v13198_v12 = vld [vmem:[#allocation23_spill] sm:$0xff]  ;;  %v13201_v46 = vld [vmem:[#allocation4_spill] sm:$0xff]  ;;  %v13202_v4 = vld [vmem:[#allocation10_spill] sm:$0xff] }
 0x1f6   :  { %v5876_v20 = vmax.f32 %v5732_v14, 0.0  ;;  %v5948_v19 = vmax.f32 %v5804_v11, 0.0  ;;  %8103 = vmatprep.mubr.msk.f32.mxu1 %vm594_vm0, %v544_v24  ;;  %v13190_v41 = vmax.f32 %v13188_v13, %v13189_v17  ;;  %v13193_v48 = vmax.f32 %v13191_v47, %v13192_v34  ;;  %7672 = vmatmul.mubr.msk.f32.gmra.mrb[242].mxu0 %vm594_vm0, %v257_v44  ;;  %v547_v24 = vld [vmem:[%s12795_s0 + $0x10a8] sm:$0xff]  ;;  %v7949_v44 = vpop.f32.mrb[138].mxu1  ;;  %v13211_v27 = vld [vmem:[#allocation56_spill] sm:$0xff]  ;;  %v13213_v17 = vld [vmem:[#allocation58_spill] sm:$0xff] }
 0x1f7   :  { %v5583_v55 = vmax.f32 %v13184_v31, %v5439_v42  ;;  %v5655_v52 = vmax.f32 %v13187_v9, %v5511_v28  ;;  %v5875_v26 = vmax.f32 %v5731_v22, 0.0  ;;  %v5947_v38 = vmax.f32 %v5803_v23, 0.0  ;;  %7674 = vmatprep.mubr.msk.f32.mxu0 %vm594_vm0, %v258_v49  ;;  %v13204_v42 = vld [vmem:[#allocation24_spill] sm:$0xff]  ;;  %v13205_v28 = vld [vmem:[#allocation30_spill] sm:$0xff]  ;;  %v13207_v22 = vld [vmem:[#allocation5_spill] sm:$0xff] }
 0x1f8   :  { %v5582_v63 = vmax.f32 %v13190_v41, %v5438_v7  ;;  %v5654_v54 = vmax.f32 %v13193_v48, %v5510_v30  ;;  %6020 = vst [vmem:[%s12797_s3 + $0xc8] sm:$0xff] %v5876_v20  ;;  %6092 = vst [vmem:[%s12797_s3 + $0x308] sm:$0xff] %v5948_v19  ;;  %v5441_v15 = vmax.f32 %v13194_v0, %v7514_v59  ;;  %8104 = vmatmul.mubr.msk.f32.gmra.mrb[242].mxu1 %vm594_vm0, %v545_v58  ;;  %v13208_v23 = vld [vmem:[#allocation11_spill] sm:$0xff]  ;;  %v7517_v30 = vpop.f32.mrb[138].mxu0  ;;  %v260_v20 = vld [vmem:[%s12795_s0 + $0x7b0] sm:$0xff] }
 0x1f9   :  { %v5734_v10 = vadd.f32 %v10999_v57, %v5583_v55  ;;  %v5806_v18 = vadd.f32 %v10999_v57, %v5655_v52  ;;  %v5513_v50 = vmax.f32 %v13195_v32, %v7946_v40  ;;  %6019 = vst [vmem:[%s12797_s3 + $0xc0] sm:$0xff] %v5875_v26  ;;  %6091 = vst [vmem:[%s12797_s3 + $0x300] sm:$0xff] %v5947_v38  ;;  %8106 = vmatprep.mubr.msk.f32.mxu1 %vm594_vm0, %v546_v45  ;;  %v548_v19 = vld [vmem:[%s12795_s0 + $0x10b0] sm:$0xff]  ;;  %v13210_v31 = vld [vmem:[#allocation55_spill] sm:$0xff]  ;;  %v3079_v9 = vpop.f32.mrb[139].mxu0  ;;  %v4519_v52 = vpop.f32.mrb[139].mxu1 }
 0x1fa   :  { %v5733_v3 = vadd.f32 %v10999_v57, %v5582_v63  ;;  %v5805_v5 = vadd.f32 %v10999_v57, %v5654_v54  ;;  %v5440_v29 = vmax.f32 %v13196_v1, %v3069_v61  ;;  %v5512_v62 = vmax.f32 %v13197_v8, %v4509_v21  ;;  %7675 = vmatmul.mubr.msk.f32.gmra.mrb[244].mxu0 %vm594_vm0, %v259_v35  ;;  %v13212_v38 = vld [vmem:[#allocation57_spill] sm:$0xff]  ;;  %v13215_v54 = vld [vmem:[#allocation31_spill] sm:$0xff]  ;;  %v13218_v45 = vld [vmem:[#allocation12_spill] sm:$0xff]  ;;  %v7952_v35 = vpop.f32.mrb[140].mxu1 }
 0x1fb   :  { %v5878_v33 = vmax.f32 %v5734_v10, 0.0  ;;  %v5950_v37 = vmax.f32 %v5806_v18, 0.0  ;;  %v13200_v56 = vmax.f32 %v13198_v12, %v13199_v16  ;;  %v13203_v6 = vmax.f32 %v13201_v46, %v13202_v4  ;;  %v261_v63 = vld [vmem:[%s12795_s0 + $0x7b8] sm:$0xff]  ;;  %v13217_v49 = vld [vmem:[#allocation43_spill] sm:$0xff]  ;;  %7677 = vmatprep.mubr.msk.f32.mxu0 %vm594_vm0, %v260_v20  ;;  %v13221_v61 = vld [vmem:[#allocation32_spill] sm:$0xff] }
 0x1fc   :  { %v5877_v14 = vmax.f32 %v5733_v3, 0.0  ;;  %v5949_v11 = vmax.f32 %v5805_v5, 0.0  ;;  %v13206_v60 = vmax.f32 %v13204_v42, %v13205_v28  ;;  %v13209_v7 = vmax.f32 %v13207_v22, %v13208_v23  ;;  %8107 = vmatmul.mubr.msk.f32.gmra.mrb[244].mxu1 %vm594_vm0, %v547_v24  ;;  %v13214_v48 = vld [vmem:[#allocation25_spill] sm:$0xff]  ;;  %v13227_v46 = vld [vmem:[#allocation38_spill] sm:$0xff]  ;;  %v13229_v28 = vld [vmem:[#allocation39_spill] sm:$0xff] }
 0x1fd   :  { %v5585_v51 = vmax.f32 %v13200_v56, %v5441_v15  ;;  %v5657_v39 = vmax.f32 %v13203_v6, %v5513_v50  ;;  %6022 = vst [vmem:[%s12797_s3 + $0xd8] sm:$0xff] %v5878_v33  ;;  %6094 = vst [vmem:[%s12797_s3 + $0x318] sm:$0xff] %v5950_v37  ;;  %v5443_v55 = vmax.f32 %v13210_v31, %v7517_v30  ;;  %8109 = vmatprep.mubr.msk.f32.mxu1 %vm594_vm0, %v548_v19  ;;  %v549_v0 = vld [vmem:[%s12795_s0 + $0x10b8] sm:$0xff]  ;;  %v13220_v50 = vld [vmem:[#allocation44_spill] sm:$0xff] }
 0x1fe   :  { %v5584_v36 = vmax.f32 %v13206_v60, %v5440_v29  ;;  %v5656_v43 = vmax.f32 %v13209_v7, %v5512_v62  ;;  %v5515_v25 = vmax.f32 %v13211_v27, %v7949_v44  ;;  %6021 = vst [vmem:[%s12797_s3 + $0xd0] sm:$0xff] %v5877_v14  ;;  %6093 = vst [vmem:[%s12797_s3 + $0x310] sm:$0xff] %v5949_v11  ;;  %v13223_v5 = vld [vmem:[#allocation45_spill] sm:$0xff]  ;;  %v7520_v62 = vpop.f32.mrb[140].mxu0  ;;  %v262_v33 = vld [vmem:[%s12795_s0 + $0x7c0] sm:$0xff]  ;;  %7678 = vmatmul.mubr.msk.f32.gmra.mrb[246].mxu0 %vm594_vm0, %v261_v63 }
 0x1ff   :  { %v5736_v2 = vadd.f32 %v10999_v57, %v5585_v51  ;;  %v5808_v53 = vadd.f32 %v10999_v57, %v5657_v39  ;;  %v5442_v13 = vmax.f32 %v13212_v38, %v3079_v9  ;;  %v5514_v41 = vmax.f32 %v13213_v17, %v4519_v52  ;;  %v13224_v1 = vld [vmem:[#allocation13_spill] sm:$0xff]  ;;  %v550_v37 = vld [vmem:[%s12795_s0 + $0x10c0] sm:$0xff]  ;;  %v3089_v6 = vpop.f32.mrb[141].mxu0  ;;  %v4529_v39 = vpop.f32.mrb[141].mxu1  ;;  %v13228_v11 = vld [vmem:[#allocation19_spill] sm:$0xff]  ;;  %7680 = vmatprep.mubr.msk.f32.mxu0 %vm594_vm0, %v262_v33 }
 0x200   :  { %v5735_v58 = vadd.f32 %v10999_v57, %v5584_v36  ;;  %v5807_v26 = vadd.f32 %v10999_v57, %v5656_v43  ;;  %v13216_v59 = vmax.f32 %v13214_v48, %v13215_v54  ;;  %v13219_v10 = vmax.f32 %v13217_v49, %v13218_v45  ;;  %v13226_v56 = vld [vmem:[#allocation18_spill] sm:$0xff]  ;;  %8110 = vmatmul.mubr.msk.f32.gmra.mrb[246].mxu1 %vm594_vm0, %v549_v0  ;;  %v263_v36 = vld [vmem:[%s12795_s0 + $0x7c8] sm:$0xff]  ;;  %v13231_v43 = vld [vmem:[#allocation33_spill] sm:$0xff]  ;;  %v7955_v63 = vpop.f32.mrb[142].mxu1 }
 0x201   :  { %v5880_v47 = vmax.f32 %v5736_v2, 0.0  ;;  %v5952_v34 = vmax.f32 %v5808_v53, 0.0  ;;  %v13222_v21 = vmax.f32 %v13220_v50, %v13221_v61  ;;  %v13225_v29 = vmax.f32 %v13223_v5, %v13224_v1  ;;  %v13230_v7 = vld [vmem:[#allocation46_spill] sm:$0xff]  ;;  %v13234_v19 = vld [vmem:[#allocation51_spill] sm:$0xff]  ;;  %8112 = vmatprep.mubr.msk.f32.mxu1 %vm594_vm0, %v550_v37  ;;  %v13237_v9 = vld [vmem:[#allocation52_spill] sm:$0xff] }
 0x202   :  { %v5587_v40 = vmax.f32 %v13216_v59, %v5443_v55  ;;  %v5659_v18 = vmax.f32 %v13219_v10, %v5515_v25  ;;  %v5879_v15 = vmax.f32 %v5735_v58, 0.0  ;;  %v5951_v32 = vmax.f32 %v5807_v26, 0.0  ;;  %v13233_v20 = vld [vmem:[#allocation6_spill] sm:$0xff]  ;;  %v551_v31 = vld [vmem:[%s12795_s0 + $0x10c8] sm:$0xff]  ;;  %v13240_v38 = vld [vmem:[#allocation53_spill] sm:$0xff]  ;;  %7681 = vmatmul.mubr.msk.f32.gmra.mrb[248].mxu0 %vm594_vm0, %v263_v36 }
 0x203   :  { %v5586_v3 = vmax.f32 %v13222_v21, %v5442_v13  ;;  %v5658_v8 = vmax.f32 %v13225_v29, %v5514_v41  ;;  %6024 = vst [vmem:[%s12797_s3 + $0xe8] sm:$0xff] %v5880_v47  ;;  %6096 = vst [vmem:[%s12797_s3 + $0x328] sm:$0xff] %v5952_v34  ;;  %v5445_v51 = vmax.f32 %v13226_v56, %v7520_v62  ;;  %v13236_v25 = vld [vmem:[#allocation26_spill] sm:$0xff]  ;;  %v13239_v26 = vld [vmem:[#allocation7_spill] sm:$0xff]  ;;  %v7523_v41 = vpop.f32.mrb[142].mxu0 }
 0x204   :  { %v5738_v12 = vadd.f32 %v10999_v57, %v5587_v40  ;;  %v5810_v16 = vadd.f32 %v10999_v57, %v5659_v18  ;;  %v5517_v4 = vmax.f32 %v13227_v46, %v7952_v35  ;;  %6023 = vst [vmem:[%s12797_s3 + $0xe0] sm:$0xff] %v5879_v15  ;;  %6095 = vst [vmem:[%s12797_s3 + $0x320] sm:$0xff] %v5951_v32  ;;  %v264_v47 = vld [vmem:[%s12795_s0 + $0x7d0] sm:$0xff]  ;;  %v3099_v10 = vpop.f32.mrb[143].mxu0  ;;  %v4539_v18 = vpop.f32.mrb[143].mxu1  ;;  %v13244_v32 = vld [vmem:[#allocation21_spill] sm:$0xff]  ;;  %8113 = vmatmul.mubr.msk.f32.gmra.mrb[248].mxu1 %vm594_vm0, %v551_v31 }
 0x205   :  { %v5737_v24 = vadd.f32 %v10999_v57, %v5586_v3  ;;  %v5809_v14 = vadd.f32 %v10999_v57, %v5658_v8  ;;  %v5444_v42 = vmax.f32 %v13228_v11, %v3089_v6  ;;  %v5516_v60 = vmax.f32 %v13229_v28, %v4529_v39  ;;  %v552_v34 = vld [vmem:[%s12795_s0 + $0x10d0] sm:$0xff]  ;;  %v13245_v61 = vld [vmem:[#allocation41_spill] sm:$0xff]  ;;  %v13246_v29 = vld [vmem:[#allocation27_spill] sm:$0xff]  ;;  %7683 = vmatprep.mubr.msk.f32.mxu0 %vm594_vm0, %v264_v47  ;;  %v11370_v36 = vpop.f32.mrb[144].mxu0 }
 0x206   :  { %v5882_v22 = vmax.f32 %v5738_v12, 0.0  ;;  %v5954_v23 = vmax.f32 %v5810_v16, 0.0  ;;  %v13232_v30 = vmax.f32 %v13230_v7, %v13231_v43  ;;  %v13235_v2 = vmax.f32 %v13233_v20, %v13234_v19  ;;  %v13242_v59 = vld [vmem:[#allocation20_spill] sm:$0xff]  ;;  %v265_v3 = vld [vmem:[%s12795_s0 + $0x7d8] sm:$0xff]  ;;  %v13247_v8 = vld [vmem:[#allocation54_spill] sm:$0xff]  ;;  %8115 = vmatprep.mubr.msk.f32.mxu1 %vm594_vm0, %v552_v34 }
 0x207   :  { %v5881_v55 = vmax.f32 %v5737_v24, 0.0  ;;  %v5953_v27 = vmax.f32 %v5809_v14, 0.0  ;;  %v13238_v52 = vmax.f32 %v13236_v25, %v13237_v9  ;;  %v13241_v13 = vmax.f32 %v13239_v26, %v13240_v38  ;;  %v13243_v49 = vld [vmem:[#allocation40_spill] sm:$0xff]  ;;  %v13250_v37 = vld [vmem:[#allocation14_spill] sm:$0xff]  ;;  %v553_v56 = vld [vmem:[%s12795_s0 + $0x10d8] sm:$0xff]  ;;  %7684 = vmatmul.mubr.msk.f32.gmra.mrb[250].mxu0 %vm594_vm0, %v265_v3 }
 0x208   :  { %v5589_v44 = vmax.f32 %v13232_v30, %v5445_v51  ;;  %v5661_v53 = vmax.f32 %v13235_v2, %v5517_v4  ;;  %6026 = vst [vmem:[%s12797_s3 + $0xf8] sm:$0xff] %v5882_v22  ;;  %6098 = vst [vmem:[%s12797_s3 + $0x338] sm:$0xff] %v5954_v23  ;;  %v5447_v40 = vmax.f32 %v13242_v59, %v7523_v41  ;;  %v13249_v33 = vld [vmem:[#allocation8_spill] sm:$0xff]  ;;  %v266_v51 = vld [vmem:[%s12795_s0 + $0x7e0] sm:$0xff]  ;;  %v11372_v22 = vpop.f32.mrb[144].mxu1  ;;  %v11385_v30 = vpop.f32.mrb[145].mxu0  ;;  %8116 = vmatmul.mubr.msk.f32.gmra.mrb[250].mxu1 %vm594_vm0, %v553_v56 }
 0x209   :  { %v5588_v58 = vmax.f32 %v13238_v52, %v5444_v42  ;;  %v5660_v17 = vmax.f32 %v13241_v13, %v5516_v60  ;;  %v5519_v45 = vmax.f32 %v13243_v49, %v7955_v63  ;;  %6025 = vst [vmem:[%s12797_s3 + $0xf0] sm:$0xff] %v5881_v55  ;;  %6097 = vst [vmem:[%s12797_s3 + $0x330] sm:$0xff] %v5953_v27  ;;  %v13252_v6 = vld [vmem:[#allocation28_spill] sm:$0xff]  ;;  %v13253_v39 = vld [vmem:[#allocation34_spill] sm:$0xff]  ;;  %7686 = vmatprep.mubr.msk.f32.mxu0 %vm594_vm0, %v266_v51  ;;  %v11410_v9 = vpop.f32.mrb[146].mxu0 }
 0x20a   :  { %v5740_v48 = vadd.f32 %v10999_v57, %v5589_v44  ;;  %v5812_v54 = vadd.f32 %v10999_v57, %v5661_v53  ;;  %v5446_v50 = vmax.f32 %v13244_v32, %v3099_v10  ;;  %v5518_v21 = vmax.f32 %v13245_v61, %v4539_v18  ;;  %v13255_v11 = vld [vmem:[#allocation9_spill] sm:$0xff]  ;;  %v13256_v42 = vld [vmem:[#allocation15_spill] sm:$0xff]  ;;  %v554_v23 = vld [vmem:[%s12795_s0 + $0x10e0] sm:$0xff]  ;;  %v11388_v44 = vpop.f32.mrb[145].mxu1  ;;  %v11423_v26 = vpop.f32.mrb[147].mxu0 }
 0x20b   :  { %v5739_v0 = vadd.f32 %v10999_v57, %v5588_v58  ;;  %v5811_v15 = vadd.f32 %v10999_v57, %v5660_v17  ;;  %v13248_v62 = vmax.f32 %v13246_v29, %v13247_v8  ;;  %v13251_v12 = vmax.f32 %v13249_v33, %v13250_v37  ;;  %v267_v2 = vld [vmem:[%s12795_s0 + $0x7e8] sm:$0xff]  ;;  %8118 = vmatprep.mubr.msk.f32.mxu1 %vm594_vm0, %v554_v23  ;;  %v11412_v52 = vpop.f32.mrb[146].mxu1  ;;  %v556_v58 = vld [vmem:[%s12795_s0 + $0x10f0] sm:$0xff]  ;;  %v269_v13 = vld [vmem:[%s12795_s0 + $0x7f8] sm:$0xff]  ;;  %v11446_v63 = vpop.f32.mrb[148].mxu0 }
 0x20c   :  { %v5884_v5 = vmax.f32 %v5740_v48, 0.0  ;;  %v5956_v1 = vmax.f32 %v5812_v54, 0.0  ;;  %v13254_v24 = vmax.f32 %v13252_v6, %v13253_v39  ;;  %v13257_v28 = vmax.f32 %v13255_v11, %v13256_v42  ;;  %v555_v55 = vld [vmem:[%s12795_s0 + $0x10e8] sm:$0xff]  ;;  %7687 = vmatmul.mubr.msk.f32.gmra.mrb[252].mxu0 %vm594_vm0, %v267_v2  ;;  %v11426_v38 = vpop.f32.mrb[147].mxu1  ;;  %v557_v17 = vld [vmem:[%s12795_s0 + $0x10f8] sm:$0xff]  ;;  %v270_v41 = vld [vmem:[%s12795_s0 + $0x800] sm:$0xff] }
 0x20d   :  { %v5591_v35 = vmax.f32 %v13248_v62, %v5447_v40  ;;  %v5663_v16 = vmax.f32 %v13251_v12, %v5519_v45  ;;  %v5883_v46 = vmax.f32 %v5739_v0, 0.0  ;;  %v5955_v4 = vmax.f32 %v5811_v15, 0.0  ;;  %8119 = vmatmul.mubr.msk.f32.gmra.mrb[252].mxu1 %vm594_vm0, %v555_v55  ;;  %v11448_v47 = vpop.f32.mrb[148].mxu1  ;;  %v558_v34 = vld [vmem:[%s12795_s0 + $0x1100] sm:$0xff]  ;;  %v11453_v48 = vpop.f32.mrb[149].mxu0  ;;  %v271_v59 = vld [vmem:[%s12795_s0 + $0x808] sm:$0xff] }
 0x20e   :  { %v5590_v14 = vmax.f32 %v13254_v24, %v5446_v50  ;;  %v5662_v60 = vmax.f32 %v13257_v28, %v5518_v21  ;;  %6028 = vst [vmem:[%s12797_s3 + $0x108] sm:$0xff] %v5884_v5  ;;  %6100 = vst [vmem:[%s12797_s3 + $0x348] sm:$0xff] %v5956_v1  ;;  %8121 = vmatprep.mubr.msk.f32.mxu1 %vm594_vm0, %v556_v58  ;;  %v11456_v54 = vpop.f32.mrb[149].mxu1  ;;  %v559_v40 = vld [vmem:[%s12795_s0 + $0x1108] sm:$0xff]  ;;  %v272_v49 = vld [vmem:[%s12795_s0 + $0x810] sm:$0xff]  ;;  %v11470_v45 = vpop.f32.mrb[150].mxu0 }
 0x20f   :  { %v5742_v7 = vadd.f32 %v10999_v57, %v5591_v35  ;;  %v5814_v43 = vadd.f32 %v10999_v57, %v5663_v16  ;;  %6027 = vst [vmem:[%s12797_s3 + $0x100] sm:$0xff] %v5883_v46  ;;  %6099 = vst [vmem:[%s12797_s3 + $0x340] sm:$0xff] %v5955_v4  ;;  %v11472_v10 = vpop.f32.mrb[150].mxu1  ;;  %v560_v18 = vld [vmem:[%s12795_s0 + $0x1110] sm:$0xff]  ;;  %v11477_v0 = vpop.f32.mrb[151].mxu0  ;;  %v273_v32 = vld [vmem:[%s12795_s0 + $0x818] sm:$0xff] }
 0x210   :  { %v5741_v20 = vadd.f32 %v10999_v57, %v5590_v14  ;;  %v5813_v19 = vadd.f32 %v10999_v57, %v5662_v60  ;;  %v268_v57 = vld [vmem:[%s12795_s0 + $0x7f0] sm:$0xff]  ;;  %v11480_v15 = vpop.f32.mrb[151].mxu1  ;;  %v561_v50 = vld [vmem:[%s12795_s0 + $0x1118] sm:$0xff]  ;;  %v274_v61 = vld [vmem:[%s12795_s0 + $0x820] sm:$0xff]  ;;  %v11494_v21 = vpop.f32.mrb[152].mxu0 }
 0x211   :  { %v5886_v53 = vmax.f32 %v5742_v7, 0.0  ;;  %v5958_v31 = vmax.f32 %v5814_v43, 0.0  ;;  %7689 = vmatprep.mubr.msk.f32.mxu0 %vm594_vm0, %v268_v57  ;;  %8122 = vmatmul.mubr.msk.f32.gmra.mrb[254].mxu1 %vm594_vm0, %v557_v17  ;;  %13258 = vst [vmem:[#allocation35_spill] sm:$0xff] %v11494_v21  ;;  %v11496_v3 = vpop.f32.mrb[152].mxu1  ;;  %v562_v5 = vld [vmem:[%s12795_s0 + $0x1120] sm:$0xff]  ;;  %v11501_v1 = vpop.f32.mrb[153].mxu0 }
 0x212   :  { %v5885_v27 = vmax.f32 %v5741_v20, 0.0  ;;  %v5957_v25 = vmax.f32 %v5813_v19, 0.0  ;;  %7690 = vmatmul.mubr.msk.f32.gmra.mrb[254].mxu0 %vm594_vm0, %v269_v13  ;;  %8124 = vmatprep.mubr.msk.f32.mxu1 %vm594_vm0, %v558_v34  ;;  %13259 = vst [vmem:[#allocation42_spill] sm:$0xff] %v11496_v3  ;;  %13260 = vst [vmem:[#allocation29_spill] sm:$0xff] %v11501_v1  ;;  %v11504_v29 = vpop.f32.mrb[153].mxu1  ;;  %v275_v8 = vld [vmem:[%s12795_s0 + $0x828] sm:$0xff] }
 0x213   :  { %6030 = vst [vmem:[%s12797_s3 + $0x118] sm:$0xff] %v5886_v53  ;;  %6102 = vst [vmem:[%s12797_s3 + $0x358] sm:$0xff] %v5958_v31  ;;  %7692 = vmatprep.mubr.msk.f32.mxu0 %vm594_vm0, %v270_v41  ;;  %v563_v62 = vld [vmem:[%s12795_s0 + $0x1128] sm:$0xff]  ;;  %v276_v35 = vld [vmem:[%s12795_s0 + $0x830] sm:$0xff]  ;;  %v11518_v33 = vpop.f32.mrb[154].mxu0 }
 0x214   :  { %6029 = vst [vmem:[%s12797_s3 + $0x110] sm:$0xff] %v5885_v27  ;;  %6101 = vst [vmem:[%s12797_s3 + $0x350] sm:$0xff] %v5957_v25  ;;  %v11520_v37 = vpop.f32.mrb[154].mxu1  ;;  %v564_v12 = vld [vmem:[%s12795_s0 + $0x1130] sm:$0xff]  ;;  %v11525_v16 = vpop.f32.mrb[155].mxu0  ;;  %v277_v51 = vld [vmem:[%s12795_s0 + $0x838] sm:$0xff] }
 0x215   :  { %8125 = vmatmul.mubr.msk.f32.gmra.mrb[0].mxu1 %vm594_vm0, %v559_v40  ;;  %13261 = vst [vmem:[#allocation2_spill] sm:$0xff] %v11504_v29  ;;  %13262 = vst [vmem:[#allocation47_spill] sm:$0xff] %v11518_v33  ;;  %v11528_v56 = vpop.f32.mrb[155].mxu1  ;;  %v565_v46 = vld [vmem:[%s12795_s0 + $0x1138] sm:$0xff]  ;;  %v278_v4 = vld [vmem:[%s12795_s0 + $0x840] sm:$0xff] }
 0x216   :  { %7693 = vmatmul.mubr.msk.f32.gmra.mrb[0].mxu0 %vm594_vm0, %v271_v59  ;;  %8127 = vmatprep.mubr.msk.f32.mxu1 %vm594_vm0, %v560_v18  ;;  %13263 = vst [vmem:[#allocation22_spill] sm:$0xff] %v11520_v37  ;;  %13264 = vst [vmem:[#allocation48_spill] sm:$0xff] %v11525_v16  ;;  %v566_v24 = vld [vmem:[%s12795_s0 + $0x1140] sm:$0xff]  ;;  %v279_v42 = vld [vmem:[%s12795_s0 + $0x848] sm:$0xff] }
 0x217   :  { %7695 = vmatprep.mubr.msk.f32.mxu0 %vm594_vm0, %v272_v49  ;;  %13265 = vst [vmem:[#allocation3_spill] sm:$0xff] %v11528_v56  ;;  %v11542_v6 = vpop.f32.mrb[156].mxu0  ;;  %v567_v28 = vld [vmem:[%s12795_s0 + $0x1148] sm:$0xff]  ;;  %v280_v60 = vld [vmem:[%s12795_s0 + $0x850] sm:$0xff]  ;;  %v281_v2 = vld [vmem:[%s12795_s0 + $0x858] sm:$0xff] }
 0x218   :  { %13266 = vst [vmem:[#allocation49_spill] sm:$0xff] %v11542_v6  ;;  %v11544_v39 = vpop.f32.mrb[156].mxu1  ;;  %v11549_v14 = vpop.f32.mrb[157].mxu0  ;;  %v568_v43 = vld [vmem:[%s12795_s0 + $0x1150] sm:$0xff]  ;;  %v569_v53 = vld [vmem:[%s12795_s0 + $0x1158] sm:$0xff]  ;;  %v282_v31 = vld [vmem:[%s12795_s0 + $0x860] sm:$0xff] }
 0x219   :  { %8128 = vmatmul.mubr.msk.f32.gmra.mrb[2].mxu1 %vm594_vm0, %v561_v50  ;;  %13267 = vst [vmem:[#allocation16_spill] sm:$0xff] %v11544_v39  ;;  %13268 = vst [vmem:[#allocation36_spill] sm:$0xff] %v11549_v14  ;;  %v11552_v11 = vpop.f32.mrb[157].mxu1  ;;  %v570_v27 = vld [vmem:[%s12795_s0 + $0x1160] sm:$0xff]  ;;  %v283_v13 = vld [vmem:[%s12795_s0 + $0x868] sm:$0xff] }
 0x21a   :  { %7696 = vmatmul.mubr.msk.f32.gmra.mrb[2].mxu0 %vm594_vm0, %v273_v32  ;;  %8130 = vmatprep.mubr.msk.f32.mxu1 %vm594_vm0, %v562_v5  ;;  %13269 = vst [vmem:[#allocation17_spill] sm:$0xff] %v11552_v11  ;;  %v571_v17 = vld [vmem:[%s12795_s0 + $0x1168] sm:$0xff]  ;;  %v284_v41 = vld [vmem:[%s12795_s0 + $0x870] sm:$0xff]  ;;  %v285_v5 = vld [vmem:[%s12795_s0 + $0x878] sm:$0xff] }
 0x21b   :  { %7698 = vmatprep.mubr.msk.f32.mxu0 %vm594_vm0, %v274_v61  ;;  %v11566_v23 = vpop.f32.mrb[158].mxu0  ;;  %v572_v59 = vld [vmem:[%s12795_s0 + $0x1170] sm:$0xff]  ;;  %v294_v50 = vld [vmem:[%s12795_s0 + $0x8c0] sm:$0xff] }
 0x21c   :  { %13270 = vst [vmem:[#allocation37_spill] sm:$0xff] %v11566_v23  ;;  %v11568_v7 = vpop.f32.mrb[158].mxu1  ;;  %v11573_v20 = vpop.f32.mrb[159].mxu0  ;;  %v296_v29 = vld [vmem:[%s12795_s0 + $0x8d0] sm:$0xff]  ;;  %v298_v56 = vld [vmem:[%s12795_s0 + $0x8e0] sm:$0xff] }
 0x21d   :  { %8131 = vmatmul.mubr.msk.f32.gmra.mrb[4].mxu1 %vm594_vm0, %v563_v62  ;;  %13271 = vst [vmem:[#allocation23_spill] sm:$0xff] %v11568_v7  ;;  %13272 = vst [vmem:[#allocation50_spill] sm:$0xff] %v11573_v20  ;;  %v11576_v19 = vpop.f32.mrb[159].mxu1  ;;  %v573_v62 = vld [vmem:[%s12795_s0 + $0x1178] sm:$0xff]  ;;  %v300_v11 = vld [vmem:[%s12795_s0 + $0x8f0] sm:$0xff] }
 0x21e   :  { %7699 = vmatmul.mubr.msk.f32.gmra.mrb[4].mxu0 %vm594_vm0, %v275_v8  ;;  %8133 = vmatprep.mubr.msk.f32.mxu1 %vm594_vm0, %v564_v12  ;;  %13273 = vst [vmem:[#allocation4_spill] sm:$0xff] %v11576_v19  ;;  %v295_v8 = vld [vmem:[%s12795_s0 + $0x8c8] sm:$0xff] }
 0x21f   :  { %7701 = vmatprep.mubr.msk.f32.mxu0 %vm594_vm0, %v276_v35  ;;  %v11590_v55 = vpop.f32.mrb[160].mxu0  ;;  %v286_v35 = vld [vmem:[%s12795_s0 + $0x880] sm:$0xff] }
 0x220   :  { %13274 = vst [vmem:[#allocation10_spill] sm:$0xff] %v11590_v55  ;;  %v11592_v57 = vpop.f32.mrb[160].mxu1  ;;  %v11597_v25 = vpop.f32.mrb[161].mxu0 }
 0x221   :  { %8134 = vmatmul.mubr.msk.f32.gmra.mrb[6].mxu1 %vm594_vm0, %v565_v46  ;;  %13275 = vst [vmem:[#allocation24_spill] sm:$0xff] %v11592_v57  ;;  %13276 = vst [vmem:[#allocation30_spill] sm:$0xff] %v11597_v25  ;;  %v11600_v58 = vpop.f32.mrb[161].mxu1 }
 0x222   :  { %7702 = vmatmul.mubr.msk.f32.gmra.mrb[6].mxu0 %vm594_vm0, %v277_v51  ;;  %8136 = vmatprep.mubr.msk.f32.mxu1 %vm594_vm0, %v566_v24  ;;  %13277 = vst [vmem:[#allocation5_spill] sm:$0xff] %v11600_v58  ;;  %v574_v51 = vld [vmem:[%s12795_s0 + $0x1180] sm:$0xff] }
 0x223   :  { %7704 = vmatprep.mubr.msk.f32.mxu0 %vm594_vm0, %v278_v4  ;;  %v11614_v34 = vpop.f32.mrb[162].mxu0 }
 0x224   :  { %v11621_v49 = vpop.f32.mrb[162].mxu1  ;;  %v11623_v18 = vpop.f32.mrb[163].mxu0 }
 0x225   :  { %8137 = vmatmul.mubr.msk.f32.gmra.mrb[8].mxu1 %vm594_vm0, %v567_v28  ;;  %v11630_v61 = vpop.f32.mrb[163].mxu1  ;;  %v292_v28 = vld [vmem:[%s12795_s0 + $0x8b0] sm:$0xff] }
 0x226   :  { %7705 = vmatmul.mubr.msk.f32.gmra.mrb[8].mxu0 %vm594_vm0, %v279_v42  ;;  %8139 = vmatprep.mubr.msk.f32.mxu1 %vm594_vm0, %v568_v43  ;;  %v287_v43 = vld [vmem:[%s12795_s0 + $0x888] sm:$0xff] }
 0x227   :  { %7707 = vmatprep.mubr.msk.f32.mxu0 %vm594_vm0, %v280_v60  ;;  %v11646_v12 = vpop.f32.mrb[164].mxu0 }
 0x228   :  { %v11653_v4 = vpop.f32.mrb[164].mxu1  ;;  %v11655_v24 = vpop.f32.mrb[165].mxu0 }
 0x229   :  { %8140 = vmatmul.mubr.msk.f32.gmra.mrb[10].mxu1 %vm594_vm0, %v569_v53  ;;  %v11662_v60 = vpop.f32.mrb[165].mxu1  ;;  %v575_v53 = vld [vmem:[%s12795_s0 + $0x1188] sm:$0xff] }
 0x22a   :  { %7708 = vmatmul.mubr.msk.f32.gmra.mrb[10].mxu0 %vm594_vm0, %v281_v2  ;;  %8142 = vmatprep.mubr.msk.f32.mxu1 %vm594_vm0, %v570_v27  ;;  %v293_v2 = vld [vmem:[%s12795_s0 + $0x8b8] sm:$0xff] }
 0x22b   :  { %7710 = vmatprep.mubr.msk.f32.mxu0 %vm594_vm0, %v282_v31  ;;  %v288_v31 = vld [vmem:[%s12795_s0 + $0x890] sm:$0xff] }
 0x22c   :  { %v11678_v27 = vpop.f32.mrb[166].mxu0 }
 0x22d   :  { %8143 = vmatmul.mubr.msk.f32.gmra.mrb[12].mxu1 %vm594_vm0, %v571_v17 }
 0x22e   :  { %7711 = vmatmul.mubr.msk.f32.gmra.mrb[12].mxu0 %vm594_vm0, %v283_v13  ;;  %8145 = vmatprep.mubr.msk.f32.mxu1 %vm594_vm0, %v572_v59  ;;  %v576_v13 = vld [vmem:[%s12795_s0 + $0x1190] sm:$0xff]  ;;  %v11687_v59 = vpop.f32.mrb[167].mxu0 }
 0x22f   :  { %7713 = vmatprep.mubr.msk.f32.mxu0 %vm594_vm0, %v284_v41  ;;  %v11685_v41 = vpop.f32.mrb[166].mxu1 }
 0x231   :  { %8146 = vmatmul.mubr.msk.f32.gmra.mrb[14].mxu1 %vm594_vm0, %v573_v62  ;;  %v290_v62 = vld [vmem:[%s12795_s0 + $0x8a0] sm:$0xff] }
 0x232   :  { %7714 = vmatmul.mubr.msk.f32.gmra.mrb[14].mxu0 %vm594_vm0, %v285_v5  ;;  %8148 = vmatprep.mubr.msk.f32.mxu1 %vm594_vm0, %v574_v51  ;;  %v289_v51 = vld [vmem:[%s12795_s0 + $0x898] sm:$0xff]  ;;  %v291_v5 = vld [vmem:[%s12795_s0 + $0x8a8] sm:$0xff] }
 0x233   :  { %7716 = vmatprep.mubr.msk.f32.mxu0 %vm594_vm0, %v286_v35  ;;  %v11694_v35 = vpop.f32.mrb[167].mxu1 }
 0x234   :  { %v11717_v17 = vpop.f32.mrb[168].mxu1 }
 0x235   :  { %8149 = vmatmul.mubr.msk.f32.gmra.mrb[16].mxu1 %vm594_vm0, %v575_v53  ;;  %v11710_v53 = vpop.f32.mrb[168].mxu0  ;;  %v11726_v42 = vpop.f32.mrb[169].mxu1 }
 0x236   :  { %7717 = vmatmul.mubr.msk.f32.gmra.mrb[16].mxu0 %vm594_vm0, %v287_v43  ;;  %8151 = vmatprep.mubr.msk.f32.mxu1 %vm594_vm0, %v576_v13  ;;  %v577_v43 = vld [vmem:[%s12795_s0 + $0x1198] sm:$0xff]  ;;  %v11719_v13 = vpop.f32.mrb[169].mxu0  ;;  %v11749_v46 = vpop.f32.mrb[170].mxu1 }
 0x237   :  { %7719 = vmatprep.mubr.msk.f32.mxu0 %vm594_vm0, %v288_v31  ;;  %v578_v31 = vld [vmem:[%s12795_s0 + $0x11a0] sm:$0xff]  ;;  %13279 = vst [vmem:[#allocation55_spill] sm:$0xff] %v11749_v46  ;;  %v11758_v32 = vpop.f32.mrb[171].mxu1 }
 0x238   :  { %13281 = vst [vmem:[#allocation57_spill] sm:$0xff] %v11758_v32  ;;  %v297_v32 = vld [vmem:[%s12795_s0 + $0x8d8] sm:$0xff] }
 0x239   :  { %8152 = vmatmul.mubr.msk.f32.gmra.mrb[18].mxu1 %vm594_vm0, %v577_v43  ;;  %v11742_v43 = vpop.f32.mrb[170].mxu0  ;;  %v11781_v40 = vpop.f32.mrb[172].mxu1 }
 0x23a   :  { %7720 = vmatmul.mubr.msk.f32.gmra.mrb[18].mxu0 %vm594_vm0, %v289_v51  ;;  %8154 = vmatprep.mubr.msk.f32.mxu1 %vm594_vm0, %v578_v31  ;;  %v579_v51 = vld [vmem:[%s12795_s0 + $0x11a8] sm:$0xff]  ;;  %13278 = vst [vmem:[#allocation11_spill] sm:$0xff] %v11742_v43  ;;  %v11751_v31 = vpop.f32.mrb[171].mxu0  ;;  %13283 = vst [vmem:[#allocation25_spill] sm:$0xff] %v11781_v40 }
 0x23b   :  { %7722 = vmatprep.mubr.msk.f32.mxu0 %vm594_vm0, %v290_v62  ;;  %v580_v62 = vld [vmem:[%s12795_s0 + $0x11b0] sm:$0xff]  ;;  %13280 = vst [vmem:[#allocation56_spill] sm:$0xff] %v11751_v31  ;;  %v11790_v31 = vpop.f32.mrb[173].mxu1 }
 0x23c   :  { %13285 = vst [vmem:[#allocation43_spill] sm:$0xff] %v11790_v31  ;;  %v299_v31 = vld [vmem:[%s12795_s0 + $0x8e8] sm:$0xff] }
 0x23d   :  { %8155 = vmatmul.mubr.msk.f32.gmra.mrb[20].mxu1 %vm594_vm0, %v579_v51  ;;  %v11774_v51 = vpop.f32.mrb[172].mxu0 }
 0x23e   :  { %7723 = vmatmul.mubr.msk.f32.gmra.mrb[20].mxu0 %vm594_vm0, %v291_v5  ;;  %8157 = vmatprep.mubr.msk.f32.mxu1 %vm594_vm0, %v580_v62  ;;  %v581_v5 = vld [vmem:[%s12795_s0 + $0x11b8] sm:$0xff]  ;;  %13282 = vst [vmem:[#allocation58_spill] sm:$0xff] %v11774_v51  ;;  %v11783_v62 = vpop.f32.mrb[173].mxu0  ;;  %v11813_v51 = vpop.f32.mrb[174].mxu1 }
 0x23f   :  { %7725 = vmatprep.mubr.msk.f32.mxu0 %vm594_vm0, %v292_v28  ;;  %v582_v28 = vld [vmem:[%s12795_s0 + $0x11c0] sm:$0xff]  ;;  %13284 = vst [vmem:[#allocation31_spill] sm:$0xff] %v11783_v62  ;;  %13287 = vst [vmem:[#allocation44_spill] sm:$0xff] %v11813_v51  ;;  %v11822_v62 = vpop.f32.mrb[175].mxu1 }
 0x240   :  { %13289 = vst [vmem:[#allocation45_spill] sm:$0xff] %v11822_v62  ;;  %v301_v62 = vld [vmem:[%s12795_s0 + $0x8f8] sm:$0xff] }
 0x241   :  { %8158 = vmatmul.mubr.msk.f32.gmra.mrb[22].mxu1 %vm594_vm0, %v581_v5  ;;  %v11806_v5 = vpop.f32.mrb[174].mxu0 }
 0x242   :  { %7726 = vmatmul.mubr.msk.f32.gmra.mrb[22].mxu0 %vm594_vm0, %v293_v2  ;;  %8160 = vmatprep.mubr.msk.f32.mxu1 %vm594_vm0, %v582_v28  ;;  %v583_v2 = vld [vmem:[%s12795_s0 + $0x11c8] sm:$0xff]  ;;  %13286 = vst [vmem:[#allocation12_spill] sm:$0xff] %v11806_v5  ;;  %v11815_v28 = vpop.f32.mrb[175].mxu0 }
 0x243   :  { %7728 = vmatprep.mubr.msk.f32.mxu0 %vm594_vm0, %v294_v50  ;;  %v584_v50 = vld [vmem:[%s12795_s0 + $0x11d0] sm:$0xff]  ;;  %13288 = vst [vmem:[#allocation32_spill] sm:$0xff] %v11815_v28 }
 0x244   :  { %v11845_v5 = vpop.f32.mrb[176].mxu1 }
 0x245   :  { %8161 = vmatmul.mubr.msk.f32.gmra.mrb[24].mxu1 %vm594_vm0, %v583_v2  ;;  %v11838_v2 = vpop.f32.mrb[176].mxu0  ;;  %13291 = vst [vmem:[#allocation18_spill] sm:$0xff] %v11845_v5  ;;  %v11854_v28 = vpop.f32.mrb[177].mxu1 }
 0x246   :  { %7729 = vmatmul.mubr.msk.f32.gmra.mrb[24].mxu0 %vm594_vm0, %v295_v8  ;;  %8163 = vmatprep.mubr.msk.f32.mxu1 %vm594_vm0, %v584_v50  ;;  %v585_v8 = vld [vmem:[%s12795_s0 + $0x11d8] sm:$0xff]  ;;  %13290 = vst [vmem:[#allocation13_spill] sm:$0xff] %v11838_v2  ;;  %v11847_v50 = vpop.f32.mrb[177].mxu0  ;;  %13293 = vst [vmem:[#allocation19_spill] sm:$0xff] %v11854_v28 }
 0x247   :  { %7731 = vmatprep.mubr.msk.f32.mxu0 %vm594_vm0, %v296_v29  ;;  %v586_v29 = vld [vmem:[%s12795_s0 + $0x11e0] sm:$0xff]  ;;  %13292 = vst [vmem:[#allocation38_spill] sm:$0xff] %v11847_v50 }
 0x249   :  { %8164 = vmatmul.mubr.msk.f32.gmra.mrb[26].mxu1 %vm594_vm0, %v585_v8  ;;  %v11870_v8 = vpop.f32.mrb[178].mxu0  ;;  %v11877_v2 = vpop.f32.mrb[178].mxu1 }
 0x24a   :  { %7732 = vmatmul.mubr.msk.f32.gmra.mrb[26].mxu0 %vm594_vm0, %v297_v32  ;;  %8166 = vmatprep.mubr.msk.f32.mxu1 %vm594_vm0, %v586_v29  ;;  %v587_v32 = vld [vmem:[%s12795_s0 + $0x11e8] sm:$0xff]  ;;  %13294 = vst [vmem:[#allocation39_spill] sm:$0xff] %v11870_v8  ;;  %13295 = vst [vmem:[#allocation46_spill] sm:$0xff] %v11877_v2  ;;  %v11879_v29 = vpop.f32.mrb[179].mxu0  ;;  %v11886_v50 = vpop.f32.mrb[179].mxu1 }
 0x24b   :  { %7734 = vmatprep.mubr.msk.f32.mxu0 %vm594_vm0, %v298_v56  ;;  %v588_v56 = vld [vmem:[%s12795_s0 + $0x11f0] sm:$0xff]  ;;  %13296 = vst [vmem:[#allocation33_spill] sm:$0xff] %v11879_v29  ;;  %13297 = vst [vmem:[#allocation6_spill] sm:$0xff] %v11886_v50  ;;  %v7580_v19 = vpop.f32.mrb[180].mxu0 }
 0x24c   :  { %v3289_v29 = vpop.f32.mrb[181].mxu0 }
 0x24d   :  { %8167 = vmatmul.mubr.msk.f32.gmra.mrb[28].mxu1 %vm594_vm0, %v587_v32  ;;  %v8012_v28 = vpop.f32.mrb[180].mxu1 }
 0x24e   :  { %7735 = vmatmul.mubr.msk.f32.gmra.mrb[28].mxu0 %vm594_vm0, %v299_v31  ;;  %8169 = vmatprep.mubr.msk.f32.mxu1 %vm594_vm0, %v588_v56  ;;  %v589_v31 = vld [vmem:[%s12795_s0 + $0x11f8] sm:$0xff]  ;;  %v4729_v32 = vpop.f32.mrb[181].mxu1 }
 0x24f   :  { %7737 = vmatprep.mubr.msk.f32.mxu0 %vm594_vm0, %v300_v11 }
 0x251   :  { %8170 = vmatmul.mubr.msk.f32.gmra.mrb[30].mxu1 %vm594_vm0, %v589_v31  ;;  %v7583_v11 = vpop.f32.mrb[182].mxu0  ;;  %v8015_v25 = vpop.f32.mrb[182].mxu1 }
 0x252   :  { %7738 = vmatmul.mubr.msk.f32.gmra.mrb[30].mxu0 %vm594_vm0, %v301_v62  ;;  %v3299_v2 = vpop.f32.mrb[183].mxu0  ;;  %v11901_v57 = vpop.f32.mrb[183].mxu1 }
 0x255   :  { %v11903_v8 = vpop.f32.mrb[184].mxu0  ;;  %v11905_v56 = vpop.f32.mrb[184].mxu1 }
 0x256   :  { %v11907_v50 = vpop.f32.mrb[185].mxu0  ;;  %v11909_v58 = vpop.f32.mrb[185].mxu1 }
 0x259   :  { %v11911_v55 = vpop.f32.mrb[186].mxu0  ;;  %v11913_v20 = vpop.f32.mrb[186].mxu1 }
 0x25a   :  { %v11915_v62 = vpop.f32.mrb[187].mxu0  ;;  %v11917_v31 = vpop.f32.mrb[187].mxu1 }
 0x25d   :  { %v11919_v5 = vpop.f32.mrb[188].mxu0  ;;  %v11921_v7 = vpop.f32.mrb[188].mxu1 }
 0x25e   :  { %13298 = vst [vmem:[#allocation51_spill] sm:$0xff] %v11921_v7  ;;  %v11923_v23 = vpop.f32.mrb[189].mxu0  ;;  %v11925_v14 = vpop.f32.mrb[189].mxu1 }
 0x25f   :  { %13299 = vst [vmem:[#allocation26_spill] sm:$0xff] %v11923_v23  ;;  %13300 = vst [vmem:[#allocation52_spill] sm:$0xff] %v11925_v14 }
 0x261   :  { %v11927_v51 = vpop.f32.mrb[190].mxu0  ;;  %v11929_v39 = vpop.f32.mrb[190].mxu1 }
 0x262   :  { %13301 = vst [vmem:[#allocation7_spill] sm:$0xff] %v11927_v51  ;;  %13302 = vst [vmem:[#allocation53_spill] sm:$0xff] %v11929_v39  ;;  %v11931_v6 = vpop.f32.mrb[191].mxu0  ;;  %v11933_v16 = vpop.f32.mrb[191].mxu1 }
 0x263   :  { %13303 = vst [vmem:[#allocation20_spill] sm:$0xff] %v11931_v6  ;;  %13304 = vst [vmem:[#allocation40_spill] sm:$0xff] %v11933_v16 }
 0x265   :  { %v11935_v40 = vpop.f32.mrb[192].mxu0  ;;  %v11937_v37 = vpop.f32.mrb[192].mxu1 }
 0x266   :  { %13305 = vst [vmem:[#allocation21_spill] sm:$0xff] %v11935_v40  ;;  %13306 = vst [vmem:[#allocation41_spill] sm:$0xff] %v11937_v37  ;;  %v11939_v33 = vpop.f32.mrb[193].mxu0  ;;  %v11941_v1 = vpop.f32.mrb[193].mxu1 }
 0x267   :  { %13307 = vst [vmem:[#allocation27_spill] sm:$0xff] %v11939_v33  ;;  %13308 = vst [vmem:[#allocation54_spill] sm:$0xff] %v11941_v1 }
 0x269   :  { %v11943_v46 = vpop.f32.mrb[194].mxu0  ;;  %v11945_v3 = vpop.f32.mrb[194].mxu1 }
 0x26a   :  { %13309 = vst [vmem:[#allocation8_spill] sm:$0xff] %v11943_v46  ;;  %13310 = vst [vmem:[#allocation14_spill] sm:$0xff] %v11945_v3  ;;  %v11947_v14 = vpop.f32.mrb[195].mxu0  ;;  %v11949_v51 = vpop.f32.mrb[195].mxu1 }
 0x26b   :  { %13311 = vst [vmem:[#allocation28_spill] sm:$0xff] %v11947_v14  ;;  %13312 = vst [vmem:[#allocation34_spill] sm:$0xff] %v11949_v51  ;;  %v13317_v14 = vmax.f32 %v11370_v36, %v11614_v34  ;;  %v13320_v36 = vmax.f32 %v11388_v44, %v11630_v61 }
 0x26d   :  { %v11951_v39 = vpop.f32.mrb[196].mxu0  ;;  %v11953_v6 = vpop.f32.mrb[196].mxu1 }
 0x26e   :  { %13313 = vst [vmem:[#allocation9_spill] sm:$0xff] %v11951_v39  ;;  %13314 = vst [vmem:[#allocation15_spill] sm:$0xff] %v11953_v6  ;;  %v11955_v16 = vpop.f32.mrb[197].mxu0  ;;  %v11957_v40 = vpop.f32.mrb[197].mxu1  ;;  %v13318_v39 = vmax.f32 %v11372_v22, %v11621_v49 }
 0x26f   :  { %13315 = vst [vmem:[#allocation59_spill] sm:$0xff] %v11955_v16  ;;  %13316 = vst [vmem:[#allocation60_spill] sm:$0xff] %v11957_v40  ;;  %v13319_v16 = vmax.f32 %v11385_v30, %v11623_v18 }
 0x271   :  { %v7607_v37 = vpop.f32.mrb[198].mxu0  ;;  %v8039_v43 = vpop.f32.mrb[198].mxu1 }
 0x272   :  { %v5449_v33 = vmax.f32 %v7580_v19, %v7607_v37  ;;  %v3379_v1 = vpop.f32.mrb[199].mxu0  ;;  %v5521_v21 = vmax.f32 %v8012_v28, %v8039_v43  ;;  %v4819_v23 = vpop.f32.mrb[199].mxu1  ;;  %v11971_v37 = vld [vmem:[%s12796_s2] ss:$0 sm:$0xff] }
 0x273   :  { %v5448_v46 = vmax.f32 %v3289_v29, %v3379_v1  ;;  %v5520_v51 = vmax.f32 %v4729_v32, %v4819_v23  ;;  %v13325_v32 = vmax.f32 %v11446_v63, %v11678_v27 }
 0x274   :  { %v5593_v3 = vmax.f32 %v13317_v14, %v5449_v33  ;;  %v5665_v6 = vmax.f32 %v13318_v39, %v5521_v21 }
 0x275   :  { %v5592_v40 = vmax.f32 %v13319_v16, %v5448_v46  ;;  %v7610_v7 = vpop.f32.mrb[200].mxu0  ;;  %v5664_v33 = vmax.f32 %v13320_v36, %v5520_v51  ;;  %v8042_v23 = vpop.f32.mrb[200].mxu1  ;;  %v13322_v46 = vmax.f32 %v11412_v52, %v11653_v4 }
 0x276   :  { %v5744_v1 = vadd.f32 %v11971_v37, %v5593_v3  ;;  %v5451_v14 = vmax.f32 %v7583_v11, %v7610_v7  ;;  %v3389_v22 = vpop.f32.mrb[201].mxu0  ;;  %v5816_v21 = vadd.f32 %v11971_v37, %v5665_v6  ;;  %v5523_v16 = vmax.f32 %v8015_v25, %v8042_v23  ;;  %v4829_v19 = vpop.f32.mrb[201].mxu1 }
 0x277   :  { %v5743_v30 = vadd.f32 %v11971_v37, %v5592_v40  ;;  %v5450_v39 = vmax.f32 %v3299_v2, %v3389_v22  ;;  %v5815_v49 = vadd.f32 %v11971_v37, %v5664_v33  ;;  %v13321_v3 = vmax.f32 %v11410_v9, %v11646_v12 }
 0x278   :  { %v5888_v34 = vmax.f32 %v5744_v1, 0.0  ;;  %v5522_v44 = vmax.f32 %v11901_v57, %v4829_v19  ;;  %v5960_v61 = vmax.f32 %v5816_v21, 0.0  ;;  %v5667_v6 = vmax.f32 %v13322_v46, %v5523_v16 }
 0x279   :  { %v5595_v18 = vmax.f32 %v13321_v3, %v5451_v14  ;;  %v5887_v7 = vmax.f32 %v5743_v30, 0.0  ;;  %v13323_v25 = vmax.f32 %v11423_v26, %v11655_v24  ;;  %v7613_v43 = vpop.f32.mrb[202].mxu0  ;;  %v5959_v51 = vmax.f32 %v5815_v49, 0.0  ;;  %v8045_v52 = vpop.f32.mrb[202].mxu1 }
 0x27a   :  { %6032 = vst [vmem:[%s12797_s3 + $0x128] sm:$0xff] %v5888_v34  ;;  %v13324_v57 = vmax.f32 %v11426_v38, %v11662_v60  ;;  %v5453_v28 = vmax.f32 %v11903_v8, %v7613_v43  ;;  %v3399_v4 = vpop.f32.mrb[203].mxu0  ;;  %6104 = vst [vmem:[%s12797_s3 + $0x368] sm:$0xff] %v5960_v61  ;;  %v5818_v26 = vadd.f32 %v11971_v37, %v5667_v6  ;;  %v4839_v60 = vpop.f32.mrb[203].mxu1 }
 0x27b   :  { %v5594_v40 = vmax.f32 %v13323_v25, %v5450_v39  ;;  %v5746_v9 = vadd.f32 %v11971_v37, %v5595_v18  ;;  %6031 = vst [vmem:[%s12797_s3 + $0x120] sm:$0xff] %v5887_v7  ;;  %v5525_v2 = vmax.f32 %v11905_v56, %v8045_v52  ;;  %v5452_v38 = vmax.f32 %v11907_v50, %v3399_v4  ;;  %v13333_v25 = vld [vmem:[#allocation51_spill] sm:$0xff]  ;;  %v13338_v52 = vld [vmem:[#allocation52_spill] sm:$0xff] }
 0x27c   :  { %v5666_v12 = vmax.f32 %v13324_v57, %v5522_v44  ;;  %6103 = vst [vmem:[%s12797_s3 + $0x360] sm:$0xff] %v5959_v51  ;;  %v5597_v11 = vmax.f32 %v13325_v32, %v5453_v28  ;;  %v5524_v1 = vmax.f32 %v11909_v58, %v4839_v60  ;;  %v5962_v36 = vmax.f32 %v5818_v26, 0.0  ;;  %v13336_v57 = vld [vmem:[#allocation11_spill] sm:$0xff]  ;;  %v13343_v32 = vld [vmem:[#allocation56_spill] sm:$0xff] }
 0x27d   :  { %v5745_v24 = vadd.f32 %v11971_v37, %v5594_v40  ;;  %v5890_v8 = vmax.f32 %v5746_v9, 0.0  ;;  %v13326_v56 = vmax.f32 %v11448_v47, %v11685_v41  ;;  %v13327_v14 = vmax.f32 %v11453_v48, %v11687_v59  ;;  %v7616_v22 = vpop.f32.mrb[204].mxu0  ;;  %v8048_v47 = vpop.f32.mrb[204].mxu1  ;;  %v13335_v9 = vld [vmem:[#allocation35_spill] sm:$0xff] }
 0x27e   :  { %v5817_v29 = vadd.f32 %v11971_v37, %v5666_v12  ;;  %v5748_v63 = vadd.f32 %v11971_v37, %v5597_v11  ;;  %v13328_v58 = vmax.f32 %v11456_v54, %v11694_v35  ;;  %v5455_v30 = vmax.f32 %v11911_v55, %v7616_v22  ;;  %v3409_v41 = vpop.f32.mrb[205].mxu0  ;;  %6106 = vst [vmem:[%s12797_s3 + $0x378] sm:$0xff] %v5962_v36  ;;  %v4849_v35 = vpop.f32.mrb[205].mxu1 }
 0x27f   :  { %v5889_v33 = vmax.f32 %v5745_v24, 0.0  ;;  %v5669_v50 = vmax.f32 %v13326_v56, %v5525_v2  ;;  %v5596_v23 = vmax.f32 %v13327_v14, %v5452_v38  ;;  %6034 = vst [vmem:[%s12797_s3 + $0x138] sm:$0xff] %v5890_v8  ;;  %v5527_v16 = vmax.f32 %v11913_v20, %v8048_v47  ;;  %v13339_v2 = vld [vmem:[#allocation42_spill] sm:$0xff]  ;;  %v13340_v38 = vld [vmem:[#allocation55_spill] sm:$0xff]  ;;  %v13346_v14 = vld [vmem:[#allocation57_spill] sm:$0xff] }
 0x280   :  { %v5961_v21 = vmax.f32 %v5817_v29, 0.0  ;;  %v5668_v27 = vmax.f32 %v13328_v58, %v5524_v1  ;;  %v5454_v54 = vmax.f32 %v11915_v62, %v3409_v41  ;;  %v5892_v55 = vmax.f32 %v5748_v63, 0.0  ;;  %v13342_v29 = vld [vmem:[#allocation29_spill] sm:$0xff] }
 0x281   :  { %6033 = vst [vmem:[%s12797_s3 + $0x130] sm:$0xff] %v5889_v33  ;;  %v5820_v48 = vadd.f32 %v11971_v37, %v5669_v50  ;;  %v5747_v59 = vadd.f32 %v11971_v37, %v5596_v23  ;;  %v13329_v19 = vmax.f32 %v11470_v45, %v11710_v53  ;;  %v5526_v49 = vmax.f32 %v11917_v31, %v4849_v35  ;;  %v7619_v7 = vpop.f32.mrb[206].mxu0  ;;  %v13345_v50 = vld [vmem:[#allocation2_spill] sm:$0xff]  ;;  %v13349_v41 = vld [vmem:[#allocation53_spill] sm:$0xff] }
 0x282   :  { %6105 = vst [vmem:[%s12797_s3 + $0x370] sm:$0xff] %v5961_v21  ;;  %v5819_v39 = vadd.f32 %v11971_v37, %v5668_v27  ;;  %v13330_v20 = vmax.f32 %v11472_v10, %v11717_v17  ;;  %v13331_v44 = vmax.f32 %v11477_v0, %v11719_v13  ;;  %6036 = vst [vmem:[%s12797_s3 + $0x148] sm:$0xff] %v5892_v55  ;;  %v8051_v10 = vpop.f32.mrb[206].mxu1  ;;  %v3419_v17 = vpop.f32.mrb[207].mxu0  ;;  %v13348_v21 = vld [vmem:[#allocation7_spill] sm:$0xff] }
 0x283   :  { %v5599_v34 = vmax.f32 %v13329_v19, %v5455_v30  ;;  %v5964_v3 = vmax.f32 %v5820_v48, 0.0  ;;  %v5891_v18 = vmax.f32 %v5747_v59, 0.0  ;;  %v13332_v53 = vmax.f32 %v11480_v15, %v11726_v42  ;;  %v13334_v15 = vld [vmem:[#allocation26_spill] sm:$0xff]  ;;  %v4859_v43 = vpop.f32.mrb[207].mxu1  ;;  %v13350_v59 = vld [vmem:[#allocation20_spill] sm:$0xff] }
 0x284   :  { %v5671_v62 = vmax.f32 %v13330_v20, %v5527_v16  ;;  %v5598_v61 = vmax.f32 %v13331_v44, %v5454_v54  ;;  %v5963_v46 = vmax.f32 %v5819_v39, 0.0  ;;  %v5457_v6 = vmax.f32 %v11919_v5, %v7619_v7  ;;  %v13351_v39 = vld [vmem:[#allocation47_spill] sm:$0xff]  ;;  %v13352_v19 = vld [vmem:[#allocation58_spill] sm:$0xff] }
 0x285   :  { %v5750_v45 = vadd.f32 %v11971_v37, %v5599_v34  ;;  %v5670_v31 = vmax.f32 %v13332_v53, %v5526_v49  ;;  %6108 = vst [vmem:[%s12797_s3 + $0x388] sm:$0xff] %v5964_v3  ;;  %6035 = vst [vmem:[%s12797_s3 + $0x140] sm:$0xff] %v5891_v18  ;;  %v5529_v40 = vmax.f32 %v13333_v25, %v8051_v10  ;;  %v7622_v36 = vpop.f32.mrb[208].mxu0  ;;  %v8054_v58 = vpop.f32.mrb[208].mxu1  ;;  %v13354_v3 = vld [vmem:[#allocation40_spill] sm:$0xff]  ;;  %v13355_v44 = vld [vmem:[#allocation22_spill] sm:$0xff] }
 0x286   :  { %v5822_v0 = vadd.f32 %v11971_v37, %v5671_v62  ;;  %v5749_v13 = vadd.f32 %v11971_v37, %v5598_v61  ;;  %v5456_v42 = vmax.f32 %v13334_v15, %v3419_v17  ;;  %6107 = vst [vmem:[%s12797_s3 + $0x380] sm:$0xff] %v5963_v46  ;;  %v13337_v12 = vmax.f32 %v13335_v9, %v13336_v57  ;;  %v3429_v27 = vpop.f32.mrb[209].mxu0  ;;  %v4869_v54 = vpop.f32.mrb[209].mxu1  ;;  %v13356_v61 = vld [vmem:[#allocation25_spill] sm:$0xff]  ;;  %v13359_v53 = vld [vmem:[#allocation31_spill] sm:$0xff] }
 0x287   :  { %v5894_v5 = vmax.f32 %v5750_v45, 0.0  ;;  %v5821_v51 = vadd.f32 %v11971_v37, %v5670_v31  ;;  %v5528_v4 = vmax.f32 %v13338_v52, %v4859_v43  ;;  %v13341_v60 = vmax.f32 %v13339_v2, %v13340_v38  ;;  %v13358_v45 = vld [vmem:[#allocation48_spill] sm:$0xff]  ;;  %v13362_v25 = vld [vmem:[#allocation43_spill] sm:$0xff]  ;;  %v13367_v38 = vld [vmem:[#allocation49_spill] sm:$0xff] }
 0x288   :  { %v5601_v28 = vmax.f32 %v13337_v12, %v5457_v6  ;;  %v5966_v26 = vmax.f32 %v5822_v0, 0.0  ;;  %v5893_v24 = vmax.f32 %v5749_v13, 0.0  ;;  %v13344_v11 = vmax.f32 %v13342_v29, %v13343_v32  ;;  %v13361_v13 = vld [vmem:[#allocation3_spill] sm:$0xff]  ;;  %v13365_v12 = vld [vmem:[#allocation41_spill] sm:$0xff]  ;;  %v13370_v32 = vld [vmem:[#allocation54_spill] sm:$0xff] }
 0x289   :  { %v5673_v8 = vmax.f32 %v13341_v60, %v5529_v40  ;;  %6038 = vst [vmem:[%s12797_s3 + $0x158] sm:$0xff] %v5894_v5  ;;  %v5965_v33 = vmax.f32 %v5821_v51, 0.0  ;;  %v13347_v23 = vmax.f32 %v13345_v50, %v13346_v14  ;;  %v5459_v63 = vmax.f32 %v13348_v21, %v7622_v36  ;;  %v7625_v10 = vpop.f32.mrb[210].mxu0  ;;  %v8057_v5 = vpop.f32.mrb[210].mxu1  ;;  %v13366_v52 = vld [vmem:[#allocation27_spill] sm:$0xff]  ;;  %v13368_v60 = vld [vmem:[#allocation12_spill] sm:$0xff] }
 0x28a   :  { %v5600_v1 = vmax.f32 %v13344_v11, %v5456_v42  ;;  %v5752_v56 = vadd.f32 %v11971_v37, %v5601_v28  ;;  %6110 = vst [vmem:[%s12797_s3 + $0x398] sm:$0xff] %v5966_v26  ;;  %6037 = vst [vmem:[%s12797_s3 + $0x150] sm:$0xff] %v5893_v24  ;;  %v5531_v48 = vmax.f32 %v13349_v41, %v8054_v58  ;;  %v13364_v42 = vld [vmem:[#allocation21_spill] sm:$0xff]  ;;  %v3439_v51 = vpop.f32.mrb[211].mxu0  ;;  %v4879_v26 = vpop.f32.mrb[211].mxu1 }
 0x28b   :  { %v5672_v22 = vmax.f32 %v13347_v23, %v5528_v4  ;;  %v5824_v30 = vadd.f32 %v11971_v37, %v5673_v8  ;;  %v5458_v16 = vmax.f32 %v13350_v59, %v3429_v27  ;;  %6109 = vst [vmem:[%s12797_s3 + $0x390] sm:$0xff] %v5965_v33  ;;  %v13353_v34 = vmax.f32 %v13351_v39, %v13352_v19  ;;  %v13371_v33 = vld [vmem:[#allocation16_spill] sm:$0xff]  ;;  %v13378_v41 = vld [vmem:[#allocation45_spill] sm:$0xff] }
 0x28c   :  { %v5751_v47 = vadd.f32 %v11971_v37, %v5600_v1  ;;  %v5896_v35 = vmax.f32 %v5752_v56, 0.0  ;;  %v5530_v18 = vmax.f32 %v13354_v3, %v4869_v54  ;;  %v13357_v7 = vmax.f32 %v13355_v44, %v13356_v61  ;;  %v13372_v56 = vld [vmem:[#allocation44_spill] sm:$0xff]  ;;  %v13383_v61 = vld [vmem:[#allocation37_spill] sm:$0xff] }
 0x28d   :  { %v5823_v55 = vadd.f32 %v11971_v37, %v5672_v22  ;;  %v5603_v49 = vmax.f32 %v13353_v34, %v5459_v63  ;;  %v5968_v20 = vmax.f32 %v5824_v30, 0.0  ;;  %v13360_v31 = vmax.f32 %v13358_v45, %v13359_v53  ;;  %v13374_v23 = vld [vmem:[#allocation36_spill] sm:$0xff]  ;;  %v7628_v58 = vpop.f32.mrb[212].mxu0  ;;  %v13381_v34 = vld [vmem:[#allocation14_spill] sm:$0xff] }
 0x28e   :  { %v5895_v62 = vmax.f32 %v5751_v47, 0.0  ;;  %v5675_v46 = vmax.f32 %v13357_v7, %v5531_v48  ;;  %6040 = vst [vmem:[%s12797_s3 + $0x168] sm:$0xff] %v5896_v35  ;;  %v13363_v40 = vmax.f32 %v13361_v13, %v13362_v25  ;;  %v5461_v43 = vmax.f32 %v13364_v42, %v7625_v10  ;;  %v13375_v22 = vld [vmem:[#allocation32_spill] sm:$0xff]  ;;  %v13377_v47 = vld [vmem:[#allocation17_spill] sm:$0xff]  ;;  %v8060_v35 = vpop.f32.mrb[212].mxu1  ;;  %v13386_v53 = vld [vmem:[#allocation34_spill] sm:$0xff] }
 0x28f   :  { %v5602_v6 = vmax.f32 %v13360_v31, %v5458_v16  ;;  %v5967_v17 = vmax.f32 %v5823_v55, 0.0  ;;  %v5754_v0 = vadd.f32 %v11971_v37, %v5603_v49  ;;  %6112 = vst [vmem:[%s12797_s3 + $0x3a8] sm:$0xff] %v5968_v20  ;;  %v5533_v28 = vmax.f32 %v13365_v12, %v8057_v5  ;;  %v13380_v16 = vld [vmem:[#allocation8_spill] sm:$0xff]  ;;  %v3449_v55 = vpop.f32.mrb[213].mxu0  ;;  %v4889_v20 = vpop.f32.mrb[213].mxu1  ;;  %v13384_v7 = vld [vmem:[#allocation13_spill] sm:$0xff] }
 0x290   :  { %v5674_v15 = vmax.f32 %v13363_v40, %v5530_v18  ;;  %6039 = vst [vmem:[%s12797_s3 + $0x160] sm:$0xff] %v5895_v62  ;;  %v5826_v9 = vadd.f32 %v11971_v37, %v5675_v46  ;;  %v5460_v4 = vmax.f32 %v13366_v52, %v3439_v51  ;;  %v13369_v8 = vmax.f32 %v13367_v38, %v13368_v60  ;;  %v13382_v3 = vld [vmem:[#allocation28_spill] sm:$0xff]  ;;  %v13390_v40 = vld [vmem:[#allocation50_spill] sm:$0xff]  ;;  %v13394_v12 = vld [vmem:[#allocation19_spill] sm:$0xff] }
 0x291   :  { %v5753_v57 = vadd.f32 %v11971_v37, %v5602_v6  ;;  %6111 = vst [vmem:[%s12797_s3 + $0x3a0] sm:$0xff] %v5967_v17  ;;  %v5898_v24 = vmax.f32 %v5754_v0, 0.0  ;;  %v5532_v11 = vmax.f32 %v13370_v32, %v4879_v26  ;;  %v13373_v50 = vmax.f32 %v13371_v33, %v13372_v56  ;;  %v13387_v17 = vld [vmem:[#allocation23_spill] sm:$0xff]  ;;  %v13388_v0 = vld [vmem:[#allocation18_spill] sm:$0xff]  ;;  %v7631_v5 = vpop.f32.mrb[214].mxu0 }
 0x292   :  { %v5825_v2 = vadd.f32 %v11971_v37, %v5674_v15  ;;  %v5605_v29 = vmax.f32 %v13369_v8, %v5461_v43  ;;  %v5970_v1 = vmax.f32 %v5826_v9, 0.0  ;;  %v13376_v21 = vmax.f32 %v13374_v23, %v13375_v22  ;;  %v13391_v15 = vld [vmem:[#allocation38_spill] sm:$0xff]  ;;  %v13397_v8 = vld [vmem:[#allocation15_spill] sm:$0xff]  ;;  %v13402_v22 = vld [vmem:[#allocation60_spill] sm:$0xff] }
 0x293   :  { %v5897_v36 = vmax.f32 %v5753_v57, 0.0  ;;  %v5677_v14 = vmax.f32 %v13373_v50, %v5533_v28  ;;  %6042 = vst [vmem:[%s12797_s3 + $0x178] sm:$0xff] %v5898_v24  ;;  %v13379_v48 = vmax.f32 %v13377_v47, %v13378_v41  ;;  %v5463_v54 = vmax.f32 %v13380_v16, %v7628_v58  ;;  %v13393_v57 = vld [vmem:[#allocation4_spill] sm:$0xff]  ;;  %v8063_v24 = vpop.f32.mrb[214].mxu1  ;;  %v13398_v32 = vld [vmem:[#allocation59_spill] sm:$0xff]  ;;  %v13399_v56 = vld [vmem:[#allocation10_spill] sm:$0xff] }
 0x294   :  { %v5604_v63 = vmax.f32 %v13376_v21, %v5460_v4  ;;  %v5969_v27 = vmax.f32 %v5825_v2, 0.0  ;;  %v5756_v30 = vadd.f32 %v11971_v37, %v5605_v29  ;;  %6114 = vst [vmem:[%s12797_s3 + $0x3b8] sm:$0xff] %v5970_v1  ;;  %v5535_v49 = vmax.f32 %v13381_v34, %v8060_v35  ;;  %v13396_v4 = vld [vmem:[#allocation9_spill] sm:$0xff]  ;;  %v3459_v2 = vpop.f32.mrb[215].mxu0  ;;  %v4899_v1 = vpop.f32.mrb[215].mxu1  ;;  %v13400_v50 = vld [vmem:[#allocation39_spill] sm:$0xff] }
 0x295   :  { %v5676_v59 = vmax.f32 %v13379_v48, %v5532_v11  ;;  %6041 = vst [vmem:[%s12797_s3 + $0x170] sm:$0xff] %v5897_v36  ;;  %v5828_v39 = vadd.f32 %v11971_v37, %v5677_v14  ;;  %v5462_v18 = vmax.f32 %v13382_v3, %v3449_v55  ;;  %v13385_v46 = vmax.f32 %v13383_v61, %v13384_v7  ;;  %v13406_v48 = vld [vmem:[#allocation30_spill] sm:$0xff]  ;;  %v12214_v35 = vpop.f32.mrb[216].mxu0 }
 0x296   :  { %v5755_v19 = vadd.f32 %v11971_v37, %v5604_v63  ;;  %6113 = vst [vmem:[%s12797_s3 + $0x3b0] sm:$0xff] %v5969_v27  ;;  %v5900_v62 = vmax.f32 %v5756_v30, 0.0  ;;  %v5534_v31 = vmax.f32 %v13386_v53, %v4889_v20  ;;  %v13389_v13 = vmax.f32 %v13387_v17, %v13388_v0  ;;  %v13403_v27 = vld [vmem:[#allocation24_spill] sm:$0xff]  ;;  %v13404_v30 = vld [vmem:[#allocation46_spill] sm:$0xff]  ;;  %v12225_v20 = vpop.f32.mrb[217].mxu0 }
 0x297   :  { %v5827_v44 = vadd.f32 %v11971_v37, %v5676_v59  ;;  %v5607_v45 = vmax.f32 %v13385_v46, %v5463_v54  ;;  %v5972_v6 = vmax.f32 %v5828_v39, 0.0  ;;  %v13392_v42 = vmax.f32 %v13390_v40, %v13391_v15  ;;  %v13407_v59 = vld [vmem:[#allocation33_spill] sm:$0xff]  ;;  %v13410_v34 = vld [vmem:[#allocation6_spill] sm:$0xff] }
 0x298   :  { %v5899_v10 = vmax.f32 %v5755_v19, 0.0  ;;  %v5679_v25 = vmax.f32 %v13389_v13, %v5535_v49  ;;  %6044 = vst [vmem:[%s12797_s3 + $0x188] sm:$0xff] %v5900_v62  ;;  %v13395_v28 = vmax.f32 %v13393_v57, %v13394_v12  ;;  %v5465_v26 = vmax.f32 %v13396_v4, %v7631_v5  ;;  %v13409_v19 = vld [vmem:[#allocation5_spill] sm:$0xff] }
 0x299   :  { %v5606_v43 = vmax.f32 %v13392_v42, %v5462_v18  ;;  %v5971_v51 = vmax.f32 %v5827_v44, 0.0  ;;  %v5758_v9 = vadd.f32 %v11971_v37, %v5607_v45  ;;  %6116 = vst [vmem:[%s12797_s3 + $0x3c8] sm:$0xff] %v5972_v6  ;;  %v5537_v29 = vmax.f32 %v13397_v8, %v8063_v24  ;;  %v12223_v18 = vpop.f32.mrb[216].mxu1 }
 0x29a   :  { %v5678_v52 = vmax.f32 %v13395_v28, %v5534_v31  ;;  %6043 = vst [vmem:[%s12797_s3 + $0x180] sm:$0xff] %v5899_v10  ;;  %v5830_v38 = vadd.f32 %v11971_v37, %v5679_v25  ;;  %v5464_v11 = vmax.f32 %v13398_v32, %v3459_v2  ;;  %v13401_v14 = vmax.f32 %v13399_v56, %v13400_v50  ;;  %v12235_v61 = vpop.f32.mrb[217].mxu1  ;;  %v12241_v31 = vpop.f32.mrb[218].mxu0 }
 0x29b   :  { %v5757_v60 = vadd.f32 %v11971_v37, %v5606_v43  ;;  %6115 = vst [vmem:[%s12797_s3 + $0x3c0] sm:$0xff] %v5971_v51  ;;  %v5902_v36 = vmax.f32 %v5758_v9, 0.0  ;;  %v5536_v21 = vmax.f32 %v13402_v22, %v4899_v1  ;;  %v13405_v47 = vmax.f32 %v13403_v27, %v13404_v30  ;;  %v12246_v10 = vpop.f32.mrb[218].mxu1  ;;  %v12248_v17 = vpop.f32.mrb[219].mxu0 }
 0x29c   :  { %v5829_v33 = vadd.f32 %v11971_v37, %v5678_v52  ;;  %v5609_v23 = vmax.f32 %v13401_v14, %v5465_v26  ;;  %v5974_v63 = vmax.f32 %v5830_v38, 0.0  ;;  %v13408_v16 = vmax.f32 %v13406_v48, %v13407_v59  ;;  %v12256_v0 = vpop.f32.mrb[219].mxu1 }
 0x29d   :  { %v5901_v58 = vmax.f32 %v5757_v60, 0.0  ;;  %v5681_v41 = vmax.f32 %v13405_v47, %v5537_v29  ;;  %6046 = vst [vmem:[%s12797_s3 + $0x198] sm:$0xff] %v5902_v36  ;;  %v13411_v49 = vmax.f32 %v13409_v19, %v13410_v34  ;;  %v12261_v13 = vpop.f32.mrb[220].mxu0  ;;  %v12263_v25 = vpop.f32.mrb[220].mxu1 }
 0x29e   :  { %v5608_v54 = vmax.f32 %v13408_v16, %v5464_v11  ;;  %v5973_v55 = vmax.f32 %v5829_v33, 0.0  ;;  %v5760_v39 = vadd.f32 %v11971_v37, %v5609_v23  ;;  %6118 = vst [vmem:[%s12797_s3 + $0x3d8] sm:$0xff] %v5974_v63  ;;  %v12265_v40 = vpop.f32.mrb[221].mxu0  ;;  %v12267_v15 = vpop.f32.mrb[221].mxu1 }
 0x29f   :  { %v5680_v3 = vmax.f32 %v13411_v49, %v5536_v21  ;;  %6045 = vst [vmem:[%s12797_s3 + $0x190] sm:$0xff] %v5901_v58  ;;  %v5832_v62 = vadd.f32 %v11971_v37, %v5681_v41 }
 0x2a0   :  { %v5759_v44 = vadd.f32 %v11971_v37, %v5608_v54  ;;  %6117 = vst [vmem:[%s12797_s3 + $0x3d0] sm:$0xff] %v5973_v55  ;;  %v5904_v7 = vmax.f32 %v5760_v39, 0.0 }
 0x2a1   :  { %v5831_v46 = vadd.f32 %v11971_v37, %v5680_v3  ;;  %v5976_v45 = vmax.f32 %v5832_v62, 0.0  ;;  %v12269_v42 = vpop.f32.mrb[222].mxu0  ;;  %v12271_v43 = vpop.f32.mrb[222].mxu1 }
 0x2a2   :  { %v5903_v53 = vmax.f32 %v5759_v44, 0.0  ;;  %6048 = vst [vmem:[%s12797_s3 + $0x1a8] sm:$0xff] %v5904_v7  ;;  %v12273_v5 = vpop.f32.mrb[223].mxu0  ;;  %v12275_v51 = vpop.f32.mrb[223].mxu1 }
 0x2a3   :  { %v5975_v6 = vmax.f32 %v5831_v46, 0.0  ;;  %6120 = vst [vmem:[%s12797_s3 + $0x3e8] sm:$0xff] %v5976_v45 }
 0x2a4   :  { %6047 = vst [vmem:[%s12797_s3 + $0x1a0] sm:$0xff] %v5903_v53 }
 0x2a5   :  { %6119 = vst [vmem:[%s12797_s3 + $0x3e0] sm:$0xff] %v5975_v6  ;;  %v12277_v9 = vpop.f32.mrb[224].mxu0  ;;  %v12279_v57 = vpop.f32.mrb[224].mxu1 }
 0x2a6   :  { %13412 = vst [vmem:[#allocation51_spill] sm:$0xff] %v12277_v9  ;;  %13413 = vst [vmem:[#allocation26_spill] sm:$0xff] %v12279_v57  ;;  %v12281_v12 = vpop.f32.mrb[225].mxu0  ;;  %v12283_v28 = vpop.f32.mrb[225].mxu1 }
 0x2a7   :  { %13414 = vst [vmem:[#allocation35_spill] sm:$0xff] %v12281_v12  ;;  %13415 = vst [vmem:[#allocation11_spill] sm:$0xff] %v12283_v28 }
 0x2a9   :  { %v12285_v52 = vpop.f32.mrb[226].mxu0  ;;  %v12287_v4 = vpop.f32.mrb[226].mxu1 }
 0x2aa   :  { %13416 = vst [vmem:[#allocation52_spill] sm:$0xff] %v12285_v52  ;;  %13417 = vst [vmem:[#allocation42_spill] sm:$0xff] %v12287_v4  ;;  %v12289_v26 = vpop.f32.mrb[227].mxu0  ;;  %v12291_v24 = vpop.f32.mrb[227].mxu1 }
 0x2ab   :  { %13418 = vst [vmem:[#allocation55_spill] sm:$0xff] %v12289_v26  ;;  %13419 = vst [vmem:[#allocation29_spill] sm:$0xff] %v12291_v24 }
 0x2ad   :  { %v12293_v2 = vpop.f32.mrb[228].mxu0  ;;  %v12295_v38 = vpop.f32.mrb[228].mxu1 }
 0x2ae   :  { %13420 = vst [vmem:[#allocation56_spill] sm:$0xff] %v12293_v2  ;;  %13421 = vst [vmem:[#allocation2_spill] sm:$0xff] %v12295_v38  ;;  %v12297_v60 = vpop.f32.mrb[229].mxu0  ;;  %v12299_v8 = vpop.f32.mrb[229].mxu1 }
 0x2af   :  { %13422 = vst [vmem:[#allocation57_spill] sm:$0xff] %v12297_v60  ;;  %13423 = vst [vmem:[#allocation7_spill] sm:$0xff] %v12299_v8 }
 0x2b1   :  { %v12301_v29 = vpop.f32.mrb[230].mxu0  ;;  %v12303_v32 = vpop.f32.mrb[230].mxu1 }
 0x2b2   :  { %13424 = vst [vmem:[#allocation53_spill] sm:$0xff] %v12301_v29  ;;  %13425 = vst [vmem:[#allocation20_spill] sm:$0xff] %v12303_v32  ;;  %v12305_v11 = vpop.f32.mrb[231].mxu0  ;;  %v12307_v1 = vpop.f32.mrb[231].mxu1 }
 0x2b3   :  { %13426 = vst [vmem:[#allocation47_spill] sm:$0xff] %v12305_v11  ;;  %13427 = vst [vmem:[#allocation58_spill] sm:$0xff] %v12307_v1 }
 0x2b5   :  { %v12309_v36 = vpop.f32.mrb[232].mxu0  ;;  %v12311_v33 = vpop.f32.mrb[232].mxu1 }
 0x2b6   :  { %13428 = vst [vmem:[#allocation40_spill] sm:$0xff] %v12309_v36  ;;  %13429 = vst [vmem:[#allocation22_spill] sm:$0xff] %v12311_v33  ;;  %v12313_v56 = vpop.f32.mrb[233].mxu0  ;;  %v12315_v50 = vpop.f32.mrb[233].mxu1 }
 0x2b7   :  { %13430 = vst [vmem:[#allocation25_spill] sm:$0xff] %v12313_v56  ;;  %13431 = vst [vmem:[#allocation48_spill] sm:$0xff] %v12315_v50 }
 0x2b9   :  { %v12317_v14 = vpop.f32.mrb[234].mxu0  ;;  %v12321_v22 = vpop.f32.mrb[234].mxu1 }
 0x2ba   :  { %v12323_v21 = vpop.f32.mrb[235].mxu0  ;;  %v12329_v27 = vpop.f32.mrb[235].mxu1 }
 0x2bd   :  { %v12333_v47 = vpop.f32.mrb[236].mxu0 }
 0x2be   :  { %v12337_v48 = vpop.f32.mrb[236].mxu1  ;;  %v12339_v59 = vpop.f32.mrb[237].mxu0 }
 0x2bf   :  { %v12345_v55 = vpop.f32.mrb[237].mxu1 }
 0x2c1   :  { %v12349_v19 = vpop.f32.mrb[238].mxu0 }
 0x2c2   :  { %v12353_v49 = vpop.f32.mrb[238].mxu1  ;;  %v12355_v3 = vpop.f32.mrb[239].mxu0 }
 0x2c3   :  { %v12361_v7 = vpop.f32.mrb[239].mxu1 }
 0x2c5   :  { %v12365_v45 = vpop.f32.mrb[240].mxu0 }
 0x2c6   :  { %v12371_v34 = vpop.f32.mrb[241].mxu0 }
 0x2c7   :  { %v12369_v6 = vpop.f32.mrb[240].mxu1 }
 0x2c8   :  { %v12377_v39 = vpop.f32.mrb[241].mxu1 }
 0x2c9   :  { %v12381_v54 = vpop.f32.mrb[242].mxu0 }
 0x2ca   :  { %13432 = vst [vmem:[#allocation31_spill] sm:$0xff] %v12381_v54  ;;  %v12387_v41 = vpop.f32.mrb[243].mxu0 }
 0x2cb   :  { %v12385_v16 = vpop.f32.mrb[242].mxu1  ;;  %13434 = vst [vmem:[#allocation43_spill] sm:$0xff] %v12387_v41 }
 0x2cc   :  { %13433 = vst [vmem:[#allocation3_spill] sm:$0xff] %v12385_v16  ;;  %v12393_v30 = vpop.f32.mrb[243].mxu1 }
 0x2cd   :  { %13435 = vst [vmem:[#allocation21_spill] sm:$0xff] %v12393_v30  ;;  %v12397_v58 = vpop.f32.mrb[244].mxu0 }
 0x2ce   :  { %13436 = vst [vmem:[#allocation41_spill] sm:$0xff] %v12397_v58  ;;  %v12403_v23 = vpop.f32.mrb[245].mxu0 }
 0x2cf   :  { %v12401_v63 = vpop.f32.mrb[244].mxu1  ;;  %13438 = vst [vmem:[#allocation49_spill] sm:$0xff] %v12403_v23 }
 0x2d0   :  { %13437 = vst [vmem:[#allocation27_spill] sm:$0xff] %v12401_v63  ;;  %v12409_v41 = vpop.f32.mrb[245].mxu1 }
 0x2d1   :  { %13439 = vst [vmem:[#allocation12_spill] sm:$0xff] %v12409_v41  ;;  %v12413_v30 = vpop.f32.mrb[246].mxu0 }
 0x2d2   :  { %13440 = vst [vmem:[#allocation54_spill] sm:$0xff] %v12413_v30  ;;  %v12419_v52 = vpop.f32.mrb[247].mxu0 }
 0x2d3   :  { %v12417_v58 = vpop.f32.mrb[246].mxu1  ;;  %13442 = vst [vmem:[#allocation44_spill] sm:$0xff] %v12419_v52 }
 0x2d4   :  { %13441 = vst [vmem:[#allocation16_spill] sm:$0xff] %v12417_v58  ;;  %v12425_v23 = vpop.f32.mrb[247].mxu1 }
 0x2d5   :  { %13443 = vst [vmem:[#allocation36_spill] sm:$0xff] %v12425_v23  ;;  %v12429_v41 = vpop.f32.mrb[248].mxu0 }
 0x2d6   :  { %13444 = vst [vmem:[#allocation32_spill] sm:$0xff] %v12429_v41  ;;  %v12435_v2 = vpop.f32.mrb[249].mxu0 }
 0x2d7   :  { %v12433_v30 = vpop.f32.mrb[248].mxu1  ;;  %13446 = vst [vmem:[#allocation45_spill] sm:$0xff] %v12435_v2 }
 0x2d8   :  { %13445 = vst [vmem:[#allocation17_spill] sm:$0xff] %v12433_v30  ;;  %v12441_v52 = vpop.f32.mrb[249].mxu1 }
 0x2d9   :  { %13447 = vst [vmem:[#allocation8_spill] sm:$0xff] %v12441_v52 }
 0x2da   :  { %v12445_v23 = vpop.f32.mrb[250].mxu0 }
 0x2db   :  { %13448 = vst [vmem:[#allocation14_spill] sm:$0xff] %v12445_v23  ;;  %v12449_v41 = vpop.f32.mrb[250].mxu1  ;;  %v12451_v29 = vpop.f32.mrb[251].mxu0 }
 0x2dc   :  { %13449 = vst [vmem:[#allocation28_spill] sm:$0xff] %v12449_v41  ;;  %13450 = vst [vmem:[#allocation37_spill] sm:$0xff] %v12451_v29  ;;  %v12457_v2 = vpop.f32.mrb[251].mxu1 }
 0x2dd   :  { %13451 = vst [vmem:[#allocation13_spill] sm:$0xff] %v12457_v2 }
 0x2df   :  { %v7688_v52 = vpop.f32.mrb[252].mxu0 }
 0x2e0   :  { %v8120_v1 = vpop.f32.mrb[252].mxu1  ;;  %v3649_v11 = vpop.f32.mrb[253].mxu0 }
 0x2e1   :  { %v5089_v30 = vpop.f32.mrb[253].mxu1 }
 0x2e4   :  { %v8123_v23 = vpop.f32.mrb[254].mxu1 }
 0x2e5   :  { %v7691_v53 = vpop.f32.mrb[254].mxu0  ;;  %v12461_v32 = vpop.f32.mrb[255].mxu1 }
 0x2e6   :  { %v3659_v36 = vpop.f32.mrb[255].mxu0 }
 0x2e8   :  { %v12465_v62 = vpop.f32.mrb[0].mxu1 }
 0x2e9   :  { %v12463_v8 = vpop.f32.mrb[0].mxu0  ;;  %v12469_v44 = vpop.f32.mrb[1].mxu1 }
 0x2ea   :  { %v12467_v41 = vpop.f32.mrb[1].mxu0 }
 0x2ec   :  { %v12473_v46 = vpop.f32.mrb[2].mxu1 }
 0x2ed   :  { %v12471_v29 = vpop.f32.mrb[2].mxu0  ;;  %v12477_v50 = vpop.f32.mrb[3].mxu1 }
 0x2ee   :  { %v12475_v2 = vpop.f32.mrb[3].mxu0 }
 0x2f0   :  { %v12481_v33 = vpop.f32.mrb[4].mxu1 }
 0x2f1   :  { %v12479_v56 = vpop.f32.mrb[4].mxu0  ;;  %13453 = vst [vmem:[#allocation23_spill] sm:$0xff] %v12481_v33  ;;  %v12485_v58 = vpop.f32.mrb[5].mxu1 }
 0x2f2   :  { %13452 = vst [vmem:[#allocation34_spill] sm:$0xff] %v12479_v56  ;;  %v12483_v60 = vpop.f32.mrb[5].mxu0  ;;  %13455 = vst [vmem:[#allocation50_spill] sm:$0xff] %v12485_v58 }
 0x2f3   :  { %13454 = vst [vmem:[#allocation18_spill] sm:$0xff] %v12483_v60 }
 0x2f4   :  { %v12489_v24 = vpop.f32.mrb[6].mxu1 }
 0x2f5   :  { %v12487_v38 = vpop.f32.mrb[6].mxu0  ;;  %13457 = vst [vmem:[#allocation4_spill] sm:$0xff] %v12489_v24  ;;  %v12493_v63 = vpop.f32.mrb[7].mxu1 }
 0x2f6   :  { %13456 = vst [vmem:[#allocation38_spill] sm:$0xff] %v12487_v38  ;;  %v12491_v26 = vpop.f32.mrb[7].mxu0  ;;  %13459 = vst [vmem:[#allocation9_spill] sm:$0xff] %v12493_v63 }
 0x2f7   :  { %13458 = vst [vmem:[#allocation19_spill] sm:$0xff] %v12491_v26 }
 0x2f8   :  { %v12497_v28 = vpop.f32.mrb[8].mxu1 }
 0x2f9   :  { %v12495_v4 = vpop.f32.mrb[8].mxu0  ;;  %13461 = vst [vmem:[#allocation59_spill] sm:$0xff] %v12497_v28  ;;  %v12501_v16 = vpop.f32.mrb[9].mxu1 }
 0x2fa   :  { %13460 = vst [vmem:[#allocation15_spill] sm:$0xff] %v12495_v4  ;;  %v12499_v12 = vpop.f32.mrb[9].mxu0  ;;  %13463 = vst [vmem:[#allocation39_spill] sm:$0xff] %v12501_v16 }
 0x2fb   :  { %13462 = vst [vmem:[#allocation10_spill] sm:$0xff] %v12499_v12 }
 0x2fc   :  { %v12505_v54 = vpop.f32.mrb[10].mxu1 }
 0x2fd   :  { %v12503_v57 = vpop.f32.mrb[10].mxu0  ;;  %13465 = vst [vmem:[#allocation24_spill] sm:$0xff] %v12505_v54  ;;  %v12509_v38 = vpop.f32.mrb[11].mxu1 }
 0x2fe   :  { %13464 = vst [vmem:[#allocation60_spill] sm:$0xff] %v12503_v57  ;;  %v12507_v58 = vpop.f32.mrb[11].mxu0  ;;  %13467 = vst [vmem:[#allocation30_spill] sm:$0xff] %v12509_v38 }
 0x2ff   :  { %13466 = vst [vmem:[#allocation46_spill] sm:$0xff] %v12507_v58  ;;  %v13472_v58 = vmax.f32 %v12214_v35, %v12317_v14 }
 0x300   :  { %v12513_v26 = vpop.f32.mrb[12].mxu1 }
 0x301   :  { %v12511_v24 = vpop.f32.mrb[12].mxu0  ;;  %13469 = vst [vmem:[#allocation5_spill] sm:$0xff] %v12513_v26  ;;  %v12517_v4 = vpop.f32.mrb[13].mxu1 }
 0x302   :  { %13468 = vst [vmem:[#allocation33_spill] sm:$0xff] %v12511_v24  ;;  %v12515_v63 = vpop.f32.mrb[13].mxu0  ;;  %13471 = vst [vmem:[#allocation61_spill] sm:$0xff] %v12517_v4  ;;  %v13473_v24 = vmax.f32 %v12223_v18, %v12321_v22 }
 0x303   :  { %13470 = vst [vmem:[#allocation6_spill] sm:$0xff] %v12515_v63  ;;  %v13474_v63 = vmax.f32 %v12225_v20, %v12323_v21  ;;  %v13477_v21 = vmax.f32 %v12246_v10, %v12337_v48 }
 0x304   :  { %v8147_v9 = vpop.f32.mrb[14].mxu1 }
 0x305   :  { %v7715_v28 = vpop.f32.mrb[14].mxu0  ;;  %v5539_v60 = vmax.f32 %v8120_v1, %v8147_v9  ;;  %v5179_v33 = vpop.f32.mrb[15].mxu1  ;;  %v13475_v9 = vmax.f32 %v12235_v61, %v12329_v27 }
 0x306   :  { %v5467_v12 = vmax.f32 %v7688_v52, %v7715_v28  ;;  %v3739_v16 = vpop.f32.mrb[15].mxu0  ;;  %v5538_v38 = vmax.f32 %v5089_v30, %v5179_v33 }
 0x307   :  { %v5466_v57 = vmax.f32 %v3649_v11, %v3739_v16  ;;  %v5683_v26 = vmax.f32 %v13473_v24, %v5539_v60 }
 0x308   :  { %v5611_v54 = vmax.f32 %v13472_v58, %v5467_v12  ;;  %v5682_v52 = vmax.f32 %v13475_v9, %v5538_v38  ;;  %v8150_v1 = vpop.f32.mrb[16].mxu1 }
 0x309   :  { %v5610_v4 = vmax.f32 %v13474_v63, %v5466_v57  ;;  %v7718_v56 = vpop.f32.mrb[16].mxu0  ;;  %v5834_v12 = vadd.f32 %v11971_v37, %v5683_v26  ;;  %v5541_v18 = vmax.f32 %v8123_v23, %v8150_v1  ;;  %v5189_v60 = vpop.f32.mrb[17].mxu1  ;;  %v13476_v57 = vmax.f32 %v12241_v31, %v12333_v47 }
 0x30a   :  { %v5762_v28 = vadd.f32 %v11971_v37, %v5611_v54  ;;  %v5469_v11 = vmax.f32 %v7691_v53, %v7718_v56  ;;  %v3749_v35 = vpop.f32.mrb[17].mxu0  ;;  %v5833_v20 = vadd.f32 %v11971_v37, %v5682_v52  ;;  %v5540_v61 = vmax.f32 %v12461_v32, %v5189_v60 }
 0x30b   :  { %v5761_v33 = vadd.f32 %v11971_v37, %v5610_v4  ;;  %v5468_v24 = vmax.f32 %v3659_v36, %v3749_v35  ;;  %v5978_v38 = vmax.f32 %v5834_v12, 0.0  ;;  %v5685_v26 = vmax.f32 %v13477_v21, %v5541_v18  ;;  %v13488_v21 = vld [vmem:[#allocation34_spill] sm:$0xff] }
 0x30c   :  { %v5906_v14 = vmax.f32 %v5762_v28, 0.0  ;;  %v5613_v22 = vmax.f32 %v13476_v57, %v5469_v11  ;;  %v13478_v4 = vmax.f32 %v12248_v17, %v12339_v59  ;;  %v5977_v63 = vmax.f32 %v5833_v20, 0.0  ;;  %v8153_v10 = vpop.f32.mrb[18].mxu1 }
 0x30d   :  { %v5905_v56 = vmax.f32 %v5761_v33, 0.0  ;;  %v7721_v23 = vpop.f32.mrb[18].mxu0  ;;  %v13479_v32 = vmax.f32 %v12256_v0, %v12345_v55  ;;  %6122 = vst [vmem:[%s12797_s3 + $0x3f8] sm:$0xff] %v5978_v38  ;;  %v5836_v17 = vadd.f32 %v11971_v37, %v5685_v26  ;;  %v5543_v48 = vmax.f32 %v12465_v62, %v8153_v10  ;;  %v5199_v59 = vpop.f32.mrb[19].mxu1 }
 0x30e   :  { %v5612_v36 = vmax.f32 %v13478_v4, %v5468_v24  ;;  %6050 = vst [vmem:[%s12797_s3 + $0x1b8] sm:$0xff] %v5906_v14  ;;  %v5764_v31 = vadd.f32 %v11971_v37, %v5613_v22  ;;  %v5471_v27 = vmax.f32 %v12463_v8, %v7721_v23  ;;  %v3759_v30 = vpop.f32.mrb[19].mxu0  ;;  %6121 = vst [vmem:[%s12797_s3 + $0x3f0] sm:$0xff] %v5977_v63  ;;  %v13489_v4 = vld [vmem:[#allocation23_spill] sm:$0xff] }
 0x30f   :  { %v5684_v58 = vmax.f32 %v13479_v32, %v5540_v61  ;;  %6049 = vst [vmem:[%s12797_s3 + $0x1b0] sm:$0xff] %v5905_v56  ;;  %v5470_v0 = vmax.f32 %v12467_v41, %v3759_v30  ;;  %v13480_v54 = vmax.f32 %v12261_v13, %v12349_v19  ;;  %v5542_v53 = vmax.f32 %v12469_v44, %v5199_v59  ;;  %v13491_v32 = vld [vmem:[#allocation51_spill] sm:$0xff]  ;;  %v13494_v30 = vld [vmem:[#allocation50_spill] sm:$0xff] }
 0x310   :  { %v5763_v47 = vadd.f32 %v11971_v37, %v5612_v36  ;;  %v5908_v8 = vmax.f32 %v5764_v31, 0.0  ;;  %v5980_v28 = vmax.f32 %v5836_v17, 0.0  ;;  %v13481_v62 = vmax.f32 %v12263_v25, %v12353_v49  ;;  %v8156_v25 = vpop.f32.mrb[20].mxu1  ;;  %v13496_v59 = vld [vmem:[#allocation3_spill] sm:$0xff] }
 0x311   :  { %v5835_v16 = vadd.f32 %v11971_v37, %v5684_v58  ;;  %v5615_v55 = vmax.f32 %v13480_v54, %v5471_v27  ;;  %v13482_v52 = vmax.f32 %v12265_v40, %v12355_v3  ;;  %v7724_v1 = vpop.f32.mrb[20].mxu0  ;;  %v13483_v19 = vmax.f32 %v12267_v15, %v12361_v7  ;;  %v5209_v7 = vpop.f32.mrb[21].mxu1  ;;  %v13492_v58 = vld [vmem:[#allocation31_spill] sm:$0xff] }
 0x312   :  { %v5907_v9 = vmax.f32 %v5763_v47, 0.0  ;;  %v5687_v41 = vmax.f32 %v13481_v62, %v5543_v48  ;;  %6052 = vst [vmem:[%s12797_s3 + $0x1c8] sm:$0xff] %v5908_v8  ;;  %v5473_v12 = vmax.f32 %v12471_v29, %v7724_v1  ;;  %v3769_v49 = vpop.f32.mrb[21].mxu0  ;;  %6124 = vst [vmem:[%s12797_s3 + $0x408] sm:$0xff] %v5980_v28  ;;  %v5545_v33 = vmax.f32 %v12473_v46, %v8156_v25  ;;  %v13498_v54 = vld [vmem:[#allocation35_spill] sm:$0xff] }
 0x313   :  { %v5614_v11 = vmax.f32 %v13482_v52, %v5470_v0  ;;  %v5979_v35 = vmax.f32 %v5835_v16, 0.0  ;;  %v5766_v13 = vadd.f32 %v11971_v37, %v5615_v55  ;;  %v5686_v44 = vmax.f32 %v13483_v19, %v5542_v53  ;;  %v13495_v0 = vld [vmem:[#allocation26_spill] sm:$0xff]  ;;  %v13499_v55 = vld [vmem:[#allocation43_spill] sm:$0xff] }
 0x314   :  { %6051 = vst [vmem:[%s12797_s3 + $0x1c0] sm:$0xff] %v5907_v9  ;;  %v5838_v40 = vadd.f32 %v11971_v37, %v5687_v41  ;;  %v5472_v15 = vmax.f32 %v12475_v2, %v3769_v49  ;;  %v13484_v24 = vmax.f32 %v12269_v42, %v12365_v45  ;;  %v5544_v14 = vmax.f32 %v12477_v50, %v5209_v7  ;;  %v13501_v52 = vld [vmem:[#allocation11_spill] sm:$0xff] }
 0x315   :  { %v5765_v3 = vadd.f32 %v11971_v37, %v5614_v11  ;;  %6123 = vst [vmem:[%s12797_s3 + $0x400] sm:$0xff] %v5979_v35  ;;  %v5910_v29 = vmax.f32 %v5766_v13, 0.0  ;;  %v5837_v18 = vadd.f32 %v11971_v37, %v5686_v44  ;;  %v13485_v46 = vmax.f32 %v12271_v43, %v12369_v6  ;;  %v7727_v38 = vpop.f32.mrb[22].mxu0  ;;  %v8159_v43 = vpop.f32.mrb[22].mxu1  ;;  %v13502_v11 = vld [vmem:[#allocation21_spill] sm:$0xff]  ;;  %v13504_v13 = vld [vmem:[#allocation38_spill] sm:$0xff] }
 0x316   :  { %v5617_v60 = vmax.f32 %v13484_v24, %v5473_v12  ;;  %v5982_v20 = vmax.f32 %v5838_v40, 0.0  ;;  %v13486_v22 = vmax.f32 %v12273_v5, %v12371_v34  ;;  %v13487_v50 = vmax.f32 %v12275_v51, %v12377_v39  ;;  %v3779_v6 = vpop.f32.mrb[23].mxu0  ;;  %v13490_v51 = vld [vmem:[#allocation18_spill] sm:$0xff]  ;;  %v5219_v23 = vpop.f32.mrb[23].mxu1  ;;  %v13505_v40 = vld [vmem:[#allocation4_spill] sm:$0xff] }
 0x317   :  { %v5909_v57 = vmax.f32 %v5765_v3, 0.0  ;;  %v5689_v2 = vmax.f32 %v13485_v46, %v5545_v33  ;;  %6054 = vst [vmem:[%s12797_s3 + $0x1d8] sm:$0xff] %v5910_v29  ;;  %v5981_v56 = vmax.f32 %v5837_v18, 0.0  ;;  %v5475_v26 = vmax.f32 %v13488_v21, %v7727_v38  ;;  %v13506_v33 = vld [vmem:[#allocation19_spill] sm:$0xff]  ;;  %v13507_v24 = vld [vmem:[#allocation52_spill] sm:$0xff] }
 0x318   :  { %v5616_v61 = vmax.f32 %v13486_v22, %v5472_v15  ;;  %v5768_v42 = vadd.f32 %v11971_v37, %v5617_v60  ;;  %v5688_v45 = vmax.f32 %v13487_v50, %v5544_v14  ;;  %6126 = vst [vmem:[%s12797_s3 + $0x418] sm:$0xff] %v5982_v20  ;;  %v5547_v36 = vmax.f32 %v13489_v4, %v8159_v43  ;;  %v8162_v44 = vpop.f32.mrb[24].mxu1  ;;  %v13508_v60 = vld [vmem:[#allocation41_spill] sm:$0xff]  ;;  %v13512_v38 = vld [vmem:[#allocation27_spill] sm:$0xff]  ;;  %v13518_v4 = vld [vmem:[#allocation12_spill] sm:$0xff] }
 0x319   :  { %6053 = vst [vmem:[%s12797_s3 + $0x1d0] sm:$0xff] %v5909_v57  ;;  %v5840_v5 = vadd.f32 %v11971_v37, %v5689_v2  ;;  %v5474_v39 = vmax.f32 %v13490_v51, %v3779_v6  ;;  %6125 = vst [vmem:[%s12797_s3 + $0x410] sm:$0xff] %v5981_v56  ;;  %v13493_v27 = vmax.f32 %v13491_v32, %v13492_v58  ;;  %v7730_v9 = vpop.f32.mrb[24].mxu0  ;;  %v5229_v7 = vpop.f32.mrb[25].mxu1  ;;  %v13510_v57 = vld [vmem:[#allocation9_spill] sm:$0xff]  ;;  %v13514_v50 = vld [vmem:[#allocation55_spill] sm:$0xff] }
 0x31a   :  { %v5767_v34 = vadd.f32 %v11971_v37, %v5616_v61  ;;  %v5912_v63 = vmax.f32 %v5768_v42, 0.0  ;;  %v5839_v31 = vadd.f32 %v11971_v37, %v5688_v45  ;;  %v5546_v17 = vmax.f32 %v13494_v30, %v5219_v23  ;;  %v3789_v12 = vpop.f32.mrb[25].mxu0  ;;  %v13511_v61 = vld [vmem:[#allocation42_spill] sm:$0xff]  ;;  %v13515_v45 = vld [vmem:[#allocation49_spill] sm:$0xff] }
 0x31b   :  { %v5619_v10 = vmax.f32 %v13493_v27, %v5475_v26  ;;  %v5984_v47 = vmax.f32 %v5840_v5, 0.0  ;;  %v13497_v8 = vmax.f32 %v13495_v0, %v13496_v59  ;;  %v13500_v53 = vmax.f32 %v13498_v54, %v13499_v55  ;;  %v13521_v27 = vld [vmem:[#allocation59_spill] sm:$0xff]  ;;  %v13522_v30 = vld [vmem:[#allocation10_spill] sm:$0xff]  ;;  %v13523_v59 = vld [vmem:[#allocation56_spill] sm:$0xff] }
 0x31c   :  { %v5911_v48 = vmax.f32 %v5767_v34, 0.0  ;;  %6056 = vst [vmem:[%s12797_s3 + $0x1e8] sm:$0xff] %v5912_v63  ;;  %v5983_v62 = vmax.f32 %v5839_v31, 0.0  ;;  %v13503_v1 = vmax.f32 %v13501_v52, %v13502_v11  ;;  %v5477_v19 = vmax.f32 %v13504_v13, %v7730_v9  ;;  %v13517_v34 = vld [vmem:[#allocation29_spill] sm:$0xff]  ;;  %v8165_v63 = vpop.f32.mrb[26].mxu1  ;;  %v13526_v55 = vld [vmem:[#allocation39_spill] sm:$0xff] }
 0x31d   :  { %v5691_v16 = vmax.f32 %v13497_v8, %v5547_v36  ;;  %v5618_v28 = vmax.f32 %v13500_v53, %v5474_v39  ;;  %v5770_v41 = vadd.f32 %v11971_v37, %v5619_v10  ;;  %6128 = vst [vmem:[%s12797_s3 + $0x428] sm:$0xff] %v5984_v47  ;;  %v5549_v3 = vmax.f32 %v13505_v40, %v8162_v44  ;;  %v7733_v43 = vpop.f32.mrb[26].mxu0  ;;  %v13520_v39 = vld [vmem:[#allocation15_spill] sm:$0xff]  ;;  %v5239_v47 = vpop.f32.mrb[27].mxu1  ;;  %v13524_v8 = vld [vmem:[#allocation54_spill] sm:$0xff]  ;;  %v13534_v40 = vld [vmem:[#allocation36_spill] sm:$0xff] }
 0x31e   :  { %v5690_v35 = vmax.f32 %v13503_v1, %v5546_v17  ;;  %6055 = vst [vmem:[%s12797_s3 + $0x1e0] sm:$0xff] %v5911_v48  ;;  %v5476_v15 = vmax.f32 %v13506_v33, %v3789_v12  ;;  %6127 = vst [vmem:[%s12797_s3 + $0x420] sm:$0xff] %v5983_v62  ;;  %v13509_v14 = vmax.f32 %v13507_v24, %v13508_v60  ;;  %v3799_v31 = vpop.f32.mrb[27].mxu0  ;;  %v13527_v62 = vld [vmem:[#allocation2_spill] sm:$0xff]  ;;  %v13530_v1 = vld [vmem:[#allocation57_spill] sm:$0xff] }
 0x31f   :  { %v5842_v25 = vadd.f32 %v11971_v37, %v5691_v16  ;;  %v5769_v49 = vadd.f32 %v11971_v37, %v5618_v28  ;;  %v5914_v29 = vmax.f32 %v5770_v41, 0.0  ;;  %v5548_v46 = vmax.f32 %v13510_v57, %v5229_v7  ;;  %v13528_v41 = vld [vmem:[#allocation16_spill] sm:$0xff]  ;;  %v13538_v57 = vld [vmem:[#allocation46_spill] sm:$0xff] }
 0x320   :  { %v5841_v18 = vadd.f32 %v11971_v37, %v5690_v35  ;;  %v5621_v20 = vmax.f32 %v13509_v14, %v5477_v19  ;;  %v13513_v56 = vmax.f32 %v13511_v61, %v13512_v38  ;;  %v13516_v21 = vmax.f32 %v13514_v50, %v13515_v45  ;;  %v13531_v35 = vld [vmem:[#allocation44_spill] sm:$0xff]  ;;  %v8186_v61 = vld [vmem:[%s12796_s2] ss:$0 sm:$0xff] }
 0x321   :  { %v5986_v2 = vmax.f32 %v5842_v25, 0.0  ;;  %v5913_v22 = vmax.f32 %v5769_v49, 0.0  ;;  %6058 = vst [vmem:[%s12797_s3 + $0x1f8] sm:$0xff] %v5914_v29  ;;  %v13519_v36 = vmax.f32 %v13517_v34, %v13518_v4  ;;  %v5479_v23 = vmax.f32 %v13520_v39, %v7733_v43  ;;  %v7736_v44 = vpop.f32.mrb[28].mxu0  ;;  %v13533_v49 = vld [vmem:[#allocation7_spill] sm:$0xff]  ;;  %v8168_v29 = vpop.f32.mrb[28].mxu1 }
 0x322   :  { %v5693_v42 = vmax.f32 %v13513_v56, %v5549_v3  ;;  %v5620_v26 = vmax.f32 %v13516_v21, %v5476_v15  ;;  %v5985_v6 = vmax.f32 %v5841_v18, 0.0  ;;  %v5772_v5 = vadd.f32 %v11971_v37, %v5621_v20  ;;  %v13536_v15 = vld [vmem:[#allocation60_spill] sm:$0xff]  ;;  %v3809_v18 = vpop.f32.mrb[29].mxu0  ;;  %v13539_v56 = vld [vmem:[#allocation53_spill] sm:$0xff] }
 0x323   :  { %v5692_v51 = vmax.f32 %v13519_v36, %v5548_v46  ;;  %6130 = vst [vmem:[%s12797_s3 + $0x438] sm:$0xff] %v5986_v2  ;;  %6057 = vst [vmem:[%s12797_s3 + $0x1f0] sm:$0xff] %v5913_v22  ;;  %v5551_v10 = vmax.f32 %v13521_v27, %v8165_v63  ;;  %v5478_v17 = vmax.f32 %v13522_v30, %v3799_v31  ;;  %v13537_v14 = vld [vmem:[#allocation24_spill] sm:$0xff]  ;;  %v5249_v2 = vpop.f32.mrb[29].mxu1  ;;  %v13546_v36 = vld [vmem:[#allocation47_spill] sm:$0xff] }
 0x324   :  { %v5844_v32 = vadd.f32 %v11971_v37, %v5693_v42  ;;  %v5771_v58 = vadd.f32 %v11971_v37, %v5620_v26  ;;  %6129 = vst [vmem:[%s12797_s3 + $0x430] sm:$0xff] %v5985_v6  ;;  %v5916_v48 = vmax.f32 %v5772_v5, 0.0  ;;  %v13525_v16 = vmax.f32 %v13523_v59, %v13524_v8  ;;  %v13540_v42 = vld [vmem:[#allocation32_spill] sm:$0xff]  ;;  %v13544_v5 = vld [vmem:[#allocation17_spill] sm:$0xff] }
 0x325   :  { %v5843_v0 = vadd.f32 %v11971_v37, %v5692_v51  ;;  %v5550_v53 = vmax.f32 %v13526_v55, %v5239_v47  ;;  %v13529_v52 = vmax.f32 %v13527_v62, %v13528_v41  ;;  %v13532_v13 = vmax.f32 %v13530_v1, %v13531_v35  ;;  %v13543_v6 = vld [vmem:[#allocation20_spill] sm:$0xff]  ;;  %v13547_v51 = vld [vmem:[#allocation45_spill] sm:$0xff]  ;;  %v7739_v63 = vpop.f32.mrb[30].mxu0  ;;  %v13554_v55 = vld [vmem:[#allocation6_spill] sm:$0xff] }
 0x326   :  { %v5623_v54 = vmax.f32 %v13525_v16, %v5479_v23  ;;  %v5988_v28 = vmax.f32 %v5844_v32, 0.0  ;;  %v5915_v9 = vmax.f32 %v5771_v58, 0.0  ;;  %6060 = vst [vmem:[%s12797_s3 + $0x208] sm:$0xff] %v5916_v48  ;;  %v13535_v3 = vmax.f32 %v13533_v49, %v13534_v40  ;;  %v13549_v58 = vld [vmem:[#allocation58_spill] sm:$0xff]  ;;  %v13550_v27 = vld [vmem:[#allocation8_spill] sm:$0xff]  ;;  %v8171_v48 = vpop.f32.mrb[30].mxu1 }
 0x327   :  { %v5695_v11 = vmax.f32 %v13529_v52, %v5551_v10  ;;  %v5622_v19 = vmax.f32 %v13532_v13, %v5478_v17  ;;  %v5987_v12 = vmax.f32 %v5843_v0, 0.0  ;;  %v5481_v7 = vmax.f32 %v13536_v15, %v7736_v44  ;;  %v13552_v17 = vld [vmem:[#allocation33_spill] sm:$0xff]  ;;  %v3819_v0 = vpop.f32.mrb[31].mxu0  ;;  %v13555_v41 = vld [vmem:[#allocation40_spill] sm:$0xff]  ;;  %v13556_v52 = vld [vmem:[#allocation14_spill] sm:$0xff] }
 0x328   :  { %v5774_v25 = vadd.f32 %v11971_v37, %v5623_v54  ;;  %v5694_v33 = vmax.f32 %v13535_v3, %v5550_v53  ;;  %6132 = vst [vmem:[%s12797_s3 + $0x448] sm:$0xff] %v5988_v28  ;;  %6059 = vst [vmem:[%s12797_s3 + $0x200] sm:$0xff] %v5915_v9  ;;  %v5553_v20 = vmax.f32 %v13537_v14, %v8168_v29  ;;  %v13553_v16 = vld [vmem:[#allocation5_spill] sm:$0xff]  ;;  %v5259_v28 = vpop.f32.mrb[31].mxu1 }
 0x329   :  { %v5846_v24 = vadd.f32 %v11971_v37, %v5695_v11  ;;  %v5773_v60 = vadd.f32 %v11971_v37, %v5622_v19  ;;  %v5480_v46 = vmax.f32 %v13538_v57, %v3809_v18  ;;  %6131 = vst [vmem:[%s12797_s3 + $0x440] sm:$0xff] %v5987_v12  ;;  %v13541_v50 = vmax.f32 %v13539_v56, %v13540_v42  ;;  %v13542_v37 = vld [vmem:[#allocation30_spill] sm:$0xff]  ;;  %v13558_v35 = vld [vmem:[#allocation61_spill] sm:$0xff] }
 0x32a   :  { %v5918_v22 = vmax.f32 %v5774_v25, 0.0  ;;  %v5845_v38 = vadd.f32 %v8186_v61, %v5694_v33  ;;  %v5552_v21 = vmax.f32 %v13542_v37, %v5249_v2  ;;  %v13545_v34 = vmax.f32 %v13543_v6, %v13544_v5  ;;  %v13559_v12 = vld [vmem:[#allocation22_spill] sm:$0xff]  ;;  %v13560_v25 = vld [vmem:[#allocation28_spill] sm:$0xff]  ;;  %v13562_v3 = vld [vmem:[#allocation25_spill] sm:$0xff] }
 0x32b   :  { %v5625_v45 = vmax.f32 %v13541_v50, %v5481_v7  ;;  %v5990_v26 = vmax.f32 %v5846_v24, 0.0  ;;  %v5917_v43 = vmax.f32 %v5773_v60, 0.0  ;;  %v13548_v39 = vmax.f32 %v13546_v36, %v13547_v51  ;;  %v13563_v33 = vld [vmem:[#allocation37_spill] sm:$0xff]  ;;  %v13565_v24 = vld [vmem:[#allocation48_spill] sm:$0xff] }
 0x32c   :  { %v5697_v4 = vmax.f32 %v13545_v34, %v5553_v20  ;;  %6062 = vst [vmem:[%s12797_s3 + $0x218] sm:$0xff] %v5918_v22  ;;  %v5989_v31 = vmax.f32 %v5845_v38, 0.0  ;;  %v13551_v10 = vmax.f32 %v13549_v58, %v13550_v27  ;;  %v5483_v47 = vmax.f32 %v13552_v17, %v7739_v63  ;;  %v13566_v60 = vld [vmem:[#allocation13_spill] sm:$0xff] }
 0x32d   :  { %v5624_v23 = vmax.f32 %v13548_v39, %v5480_v46  ;;  %v5776_v32 = vadd.f32 %v8186_v61, %v5625_v45  ;;  %6134 = vst [vmem:[%s12797_s3 + $0x458] sm:$0xff] %v5990_v26  ;;  %6061 = vst [vmem:[%s12797_s3 + $0x210] sm:$0xff] %v5917_v43  ;;  %v5555_v54 = vmax.f32 %v13553_v16, %v8171_v48 }
 0x32e   :  { %v5696_v30 = vmax.f32 %v13551_v10, %v5552_v21  ;;  %v5848_v59 = vadd.f32 %v8186_v61, %v5697_v4  ;;  %v5482_v53 = vmax.f32 %v13554_v55, %v3819_v0  ;;  %6133 = vst [vmem:[%s12797_s3 + $0x450] sm:$0xff] %v5989_v31  ;;  %v13557_v11 = vmax.f32 %v13555_v41, %v13556_v52 }
 0x32f   :  { %v5775_v8 = vadd.f32 %v8186_v61, %v5624_v23  ;;  %v5920_v9 = vmax.f32 %v5776_v32, 0.0  ;;  %v5554_v13 = vmax.f32 %v13558_v35, %v5259_v28  ;;  %v13561_v49 = vmax.f32 %v13559_v12, %v13560_v25 }
 0x330   :  { %v5847_v62 = vadd.f32 %v8186_v61, %v5696_v30  ;;  %v5627_v1 = vmax.f32 %v13557_v11, %v5483_v47  ;;  %v5992_v19 = vmax.f32 %v5848_v59, 0.0  ;;  %v13564_v15 = vmax.f32 %v13562_v3, %v13563_v33 }
 0x331   :  { %v5919_v44 = vmax.f32 %v5775_v8, 0.0  ;;  %v5699_v40 = vmax.f32 %v13561_v49, %v5555_v54  ;;  %6064 = vst [vmem:[%s12797_s3 + $0x228] sm:$0xff] %v5920_v9  ;;  %v13567_v14 = vmax.f32 %v13565_v24, %v13566_v60 }
 0x332   :  { %v5626_v7 = vmax.f32 %v13564_v15, %v5482_v53  ;;  %v5991_v29 = vmax.f32 %v5847_v62, 0.0  ;;  %v5778_v18 = vadd.f32 %v8186_v61, %v5627_v1  ;;  %6136 = vst [vmem:[%s12797_s3 + $0x468] sm:$0xff] %v5992_v19 }
 0x333   :  { %v5698_v20 = vmax.f32 %v13567_v14, %v5554_v13  ;;  %6063 = vst [vmem:[%s12797_s3 + $0x220] sm:$0xff] %v5919_v44  ;;  %v5850_v57 = vadd.f32 %v8186_v61, %v5699_v40 }
 0x334   :  { %v5777_v46 = vadd.f32 %v8186_v61, %v5626_v7  ;;  %6135 = vst [vmem:[%s12797_s3 + $0x460] sm:$0xff] %v5991_v29  ;;  %v5922_v2 = vmax.f32 %v5778_v18, 0.0 }
 0x335   :  { %v5849_v22 = vadd.f32 %v8186_v61, %v5698_v20  ;;  %v5994_v38 = vmax.f32 %v5850_v57, 0.0 }
 0x336   :  { %v5921_v56 = vmax.f32 %v5777_v46, 0.0  ;;  %6066 = vst [vmem:[%s12797_s3 + $0x238] sm:$0xff] %v5922_v2 }
 0x337   :  { %v5993_v42 = vmax.f32 %v5849_v22, 0.0  ;;  %6138 = vst [vmem:[%s12797_s3 + $0x478] sm:$0xff] %v5994_v38 }
 0x338   :  { %6065 = vst [vmem:[%s12797_s3 + $0x230] sm:$0xff] %v5921_v56 }
 0x339   :  { %6137 = vst [vmem:[%s12797_s3 + $0x470] sm:$0xff] %v5993_v42 }

</bundles_post_ra>
